<compile_context>
chip_gen: v7x
topology: tpu7x:2x2x1
jax: 0.10.0
libtpu: 0.0.40
codegen_flags: <defaults>
</compile_context>

<pallas_src>
import functools

import jax
import jax.numpy as jnp
from jax.experimental import pallas as pl
from jax.experimental.pallas import tpu as pltpu

C = 512              # conv output channels (fixed by the module)
KS = (2, 3, 4)       # conv kernel heights
KMAX = max(KS)
CC = C * len(KS)     # 1536 = width of the concatenated conv bank


def _use_bf16_transcendentals():
    """bf16 EUP exists on v6e/v7x; keep f32 transcendentals on v5e and older."""
    try:
        kind = jax.devices()[0].device_kind.lower()
    except Exception:
        return False
    return ("v6" in kind) or ("v7" in kind) or ("7x" in kind)


def textcnn_kernel(x_ref, w_ref, b_ref, mask_ref, wfc_ref, out_ref, *,
                   batch_tile, seq_pad, bf16_eup):
    # x_ref:    (tn*Lp, KMAX*F) bf16  wrapper-built im2col tile (pipelined per grid step)
    # w_ref:    (KMAX*F, 3C)    bf16  packed conv bank                     (resident)
    # b_ref:    (1, 3C)         f32   conv biases                          (resident)
    # mask_ref: (Lp, 3C)        f32   0 valid / -1e30 invalid conv pos     (resident)
    # wfc_ref:  (3C, O_pad)     f32   fc weight, lane-padded               (resident)
    # out_ref:  (tn, O_pad)     f32
    tn, lp = batch_tile, seq_pad

    # All three convs / all taps in a single bf16 MXU matmul, f32 accumulation.
    y = jnp.dot(x_ref[...], w_ref[...], preferred_element_type=jnp.float32)
    y = y + b_ref[...]                                      # (tn*Lp, 3C)

    # Mish: y * tanh(softplus(y)) = y * (e^2 + 2e) / (e^2 + 2e + 2),  e = exp(y).
    # Clamp before exp for stability; for y > 20 the factor is 1.0 to f32 precision.
    yc = jnp.minimum(y, 20.0)
    if bf16_eup:
        e = jnp.exp(yc.astype(jnp.bfloat16)).astype(jnp.float32)   # bf16 EUP exp
    else:
        e = jnp.exp(yc)                                            # f32 exp (v5e)
    num = e * (e + 2.0)
    act = y * (num * pl.reciprocal(num + 2.0, approx=True))

    # Mask invalid conv positions (per-kernel tail + Lp-L padding rows), then a single
    # reshaped max-pool over time.  Lp is a multiple of 8 -> layout-preserving reshape.
    masked = act.reshape(tn, lp, CC) + mask_ref[...]        # (Lp,3C) broadcasts over tn
    pooled = jnp.max(masked, axis=1)                        # (tn, 3C) f32

    # nn.Dropout(0.5): identity at inference.
    # TODO(synk): original forward reads stdin (`s = input()`); no Pallas equivalent.
    # FC kept in f32: tiny matmul, preserves accuracy of the pooled features.
    out_ref[...] = jnp.dot(pooled, wfc_ref[...], preferred_element_type=jnp.float32)


def textcnn_forward(x_nchw, kernel_params, *, batch_tile=None):
    # x_nchw: (N, 1, L, F) like the PyTorch module.
    x = x_nchw[:, 0, :, :]                            # (N, L, F)
    N, L, Fdim = x.shape
    assert L >= KMAX, "sequence length must be >= largest conv kernel height"
    O = kernel_params["out_features"]

    w_pack = kernel_params["w_pack"]                  # (KMAX*F, 3C) bf16
    b_pack = kernel_params["b_pack"]                  # (1, 3C)      f32
    wfc_pad = kernel_params["wfc_pad"]                # (3C, O_pad)  f32
    O_pad = wfc_pad.shape[1]
    KF = KMAX * Fdim

    Lp = ((L + 7) // 8) * 8                           # pad time to a sublane multiple

    # Batch tile: aim for ~1024 rows per grid step; keep >=2 grid tiles when the batch
    # allows it so v7x's second TensorCore is used (v5e/v6e unaffected).
    if batch_tile is None:
        batch_tile = max(1, 1024 // Lp)
    tn = max(1, min(batch_tile, N))
    if N >= 2 and tn >= N:
        tn = -(-N // 2)
    n_tiles = pl.cdiv(N, tn)
    Npad = n_tiles * tn

    # Wrapper-side im2col: zero-pad time, build the KMAX taps with static slices and
    # concat along features -> lane-dense bf16 tiles.  4x x HBM bytes, negligible vs
    # the (rows, 1536) f32 activation work; removes all in-kernel relayouts.
    xp = jnp.pad(x, ((0, Npad - N), (0, (Lp - L) + (KMAX - 1)), (0, 0)))
    col = jnp.concatenate([xp[:, i:i + Lp, :] for i in range(KMAX)], axis=-1)
    col = col.reshape(n_tiles, tn * Lp, KF).astype(jnp.bfloat16)

    # Additive max-pool mask: position t is valid for a height-k conv iff t < L-k+1
    # (this also masks the Lp-L padded rows and any zero-padded partial sums).
    t_idx = jnp.arange(Lp, dtype=jnp.int32)[:, None]                    # (Lp, 1)
    lout = jnp.concatenate(
        [jnp.full((1, C), L - k + 1, jnp.int32) for k in KS], axis=1)   # (1, 3C)
    neg_mask = jnp.where(t_idx < lout, 0.0, -1e30).astype(jnp.float32)  # (Lp, 3C)

    rows = Npad * Lp
    cost = pl.CostEstimate(
        flops=2 * rows * KF * CC + 2 * Npad * CC * O_pad,
        transcendentals=2 * rows * CC,          # exp + approx reciprocal per element
        bytes_accessed=(col.size * 2 + w_pack.size * 2 + b_pack.size * 4
                        + neg_mask.size * 4 + wfc_pad.size * 4 + Npad * O_pad * 4))

    kernel = functools.partial(textcnn_kernel, batch_tile=tn, seq_pad=Lp,
                               bf16_eup=_use_bf16_transcendentals())

    def _call(single_buffer_weights):
        # Constant-index resident operands: single-buffer to reclaim VMEM headroom.
        res_kw = {"pipeline_mode": pl.Buffered(1)} if single_buffer_weights else {}
        in_specs = [
            pl.BlockSpec((None, tn * Lp, KF), lambda b: (b, 0, 0)),   # im2col tile
            pl.BlockSpec((KF, CC), lambda b: (0, 0), **res_kw),       # conv bank
            pl.BlockSpec((1, CC), lambda b: (0, 0), **res_kw),        # biases
            pl.BlockSpec((Lp, CC), lambda b: (0, 0), **res_kw),       # pool mask
            pl.BlockSpec((CC, O_pad), lambda b: (0, 0), **res_kw),    # fc weight
        ]
        return pl.pallas_call(
            kernel,
            out_shape=jax.ShapeDtypeStruct((n_tiles, tn, O_pad), jnp.float32),
            grid=(n_tiles,),
            in_specs=in_specs,
            out_specs=pl.BlockSpec((None, tn, O_pad), lambda b: (b, 0, 0)),
            compiler_params=pltpu.CompilerParams(
                dimension_semantics=("parallel",),        # megacore split on v7x
                vmem_limit_bytes=48 * 1024 * 1024,        # fits v7x's 64 MiB / TC
            ),
            cost_estimate=cost,
        )(col, w_pack, b_pack, neg_mask, wfc_pad)

    try:
        out = _call(True)
    except Exception:
        # pipeline_mode=pl.Buffered(1) not supported on this jax version; fall back to
        # default double-buffered resident operands (~1 MiB extra VMEM, same results).
        out = _call(False)

    return out.reshape(Npad, O_pad)[:N, :O]


def init_torch_params(key, in_features, out_features):
    """PyTorch-layout parameters with PyTorch-default / xavier-uniform init."""
    params = {}
    keys = jax.random.split(key, 2 * len(KS) + 1)
    for idx, k in enumerate(KS):
        fan_in = 1 * k * in_features                  # Conv2d default init bound
        bound = 1.0 / (fan_in ** 0.5)
        params[f"w{k}"] = jax.random.uniform(keys[2 * idx], (C, 1, k, in_features),
                                             jnp.float32, -bound, bound)
        params[f"b{k}"] = jax.random.uniform(keys[2 * idx + 1], (C,),
                                             jnp.float32, -bound, bound)
    lim = (6.0 / (3 * C + out_features)) ** 0.5       # xavier_uniform, bias=False
    params["wfc"] = jax.random.uniform(keys[-1], (out_features, 3 * C),
                                       jnp.float32, -lim, lim)
    return params


def pack_params(torch_params, in_features, out_features):
    """Pack torch-layout params into the fused-kernel layout."""
    F = in_features
    w_pack = jnp.zeros((KMAX * F, CC), jnp.float32)
    b_parts = []
    for g, k in enumerate(KS):
        w = jnp.transpose(torch_params[f"w{k}"][:, 0, :, :], (1, 2, 0))   # (k, F, C)
        for i in range(k):
            w_pack = w_pack.at[i * F:(i + 1) * F, g * C:(g + 1) * C].set(w[i])
        b_parts.append(torch_params[f"b{k}"].reshape(1, C))
    b_pack = jnp.concatenate(b_parts, axis=1)                              # (1, 3C)
    O_pad = ((out_features + 127) // 128) * 128
    wfc_pad = jnp.zeros((CC, O_pad), jnp.float32)
    wfc_pad = wfc_pad.at[:, :out_features].set(torch_params["wfc"].T)
    return {"w_pack": w_pack.astype(jnp.bfloat16),
            "b_pack": b_pack,
            "wfc_pad": wfc_pad,                        # f32: keeps the tiny FC exact
            "out_features": out_features}


def textcnn_reference(x_nchw, torch_params):
    """Pure-JAX f32 reference mirroring the PyTorch forward (eval mode)."""
    x = x_nchw[:, 0].astype(jnp.float32)              # (N, L, F)
    feats = []
    for k in KS:
        w = torch_params[f"w{k}"][:, 0]               # (C, k, F)
        b = torch_params[f"b{k}"]
        Lout = x.shape[1] - k + 1
        acc = jnp.zeros((x.shape[0], Lout, C), jnp.float32)
        for i in range(k):
            acc = acc + jnp.einsum("nlf,cf->nlc", x[:, i:i + Lout], w[:, i])
        acc = acc + b
        acc = acc * jnp.tanh(jnp.logaddexp(acc, 0.0))  # Mish
        feats.append(jnp.max(acc, axis=1))             # max_pool1d over full length
    h = jnp.concatenate(feats, axis=1)                  # (N, 3C)
    return h @ torch_params["wfc"].T                    # Linear, bias=False


if __name__ == "__main__":
    N, L, in_features, out_features = 2, 8, 32, 16
    root = jax.random.PRNGKey(0)
    kx, kp = jax.random.split(root)

    x_nchw = jax.random.normal(kx, (N, 1, L, in_features), jnp.float32)
    torch_params = init_torch_params(kp, in_features, out_features)
    kernel_params = pack_params(torch_params, in_features, out_features)

    out = textcnn_forward(x_nchw, kernel_params)
    out = jax.block_until_ready(out)
    assert out.shape == (N, out_features)
    assert bool(jnp.all(jnp.isfinite(out)))

    # Loose tolerance: kernel uses bf16 conv-matmul operands (+ bf16 exp on v6e/v7x)
    # and an approx reciprocal in Mish.
    ref = textcnn_reference(x_nchw, torch_params)
    assert bool(jnp.allclose(out, ref, atol=0.2, rtol=0.2)), \
        float(jnp.max(jnp.abs(out - ref)))
    print("KERNEL_OK")
</pallas_src>

<mosaic_0001>
module attributes {stable_mosaic.version = 11 : i64} {
  func.func @textcnn_kernel(%arg0: i32, %arg1: memref<1x8x128xbf16, #tpu.memory_space<vmem>>, %arg2: memref<128x1536xbf16, #tpu.memory_space<vmem>>, %arg3: memref<1x1536xf32, #tpu.memory_space<vmem>>, %arg4: memref<8x1536xf32, #tpu.memory_space<vmem>>, %arg5: memref<1536x128xf32, #tpu.memory_space<vmem>>, %arg6: memref<1x1x128xf32, #tpu.memory_space<vmem>>) attributes {dimension_semantics = [#tpu.dimension_semantics<parallel>], iteration_bounds = array<i64: 2>, scalar_prefetch = 0 : i64, scratch_operands = 0 : i64, tpu.core_type = #tpu.core_type<tc>, window_params = [{transform_indices = @transform_0, window_bounds = array<i64: 1, 8, 128>}, {pipeline_mode = #tpu.pipeline_mode<synchronous>, transform_indices = @transform_1, window_bounds = array<i64: 128, 1536>}, {pipeline_mode = #tpu.pipeline_mode<synchronous>, transform_indices = @transform_2, window_bounds = array<i64: 1, 1536>}, {pipeline_mode = #tpu.pipeline_mode<synchronous>, transform_indices = @transform_3, window_bounds = array<i64: 8, 1536>}, {pipeline_mode = #tpu.pipeline_mode<synchronous>, transform_indices = @transform_4, window_bounds = array<i64: 1536, 128>}, {transform_indices = @transform_5, window_bounds = array<i64: 1, 1, 128>}]} {
    %c0 = arith.constant 0 : index
    %c0_0 = arith.constant 0 : index
    %c0_1 = arith.constant 0 : index
    %0 = vector.load %arg1[%c0, %c0_0, %c0_1] : memref<1x8x128xbf16, #tpu.memory_space<vmem>>, vector<1x8x128xbf16>
    %1 = vector.shape_cast %0 : vector<1x8x128xbf16> to vector<8x128xbf16>
    %c0_2 = arith.constant 0 : index
    %c0_3 = arith.constant 0 : index
    %2 = vector.load %arg2[%c0_2, %c0_3] : memref<128x1536xbf16, #tpu.memory_space<vmem>>, vector<128x1536xbf16>
    %cst = arith.constant dense<0.000000e+00> : vector<8x1536xf32>
    %3 = tpu.matmul %1, %2, %cst {dimension_numbers = #tpu.dot_dimension_numbers<[1], [0], [0], [1], [0, 0, 1, 1], [], []>} : vector<8x128xbf16>, vector<128x1536xbf16>, vector<8x1536xf32> -> vector<8x1536xf32>
    %c0_4 = arith.constant 0 : index
    %c0_5 = arith.constant 0 : index
    %4 = vector.load %arg3[%c0_4, %c0_5] : memref<1x1536xf32, #tpu.memory_space<vmem>>, vector<1x1536xf32>
    %5 = vector.broadcast %4 : vector<1x1536xf32> to vector<8x1536xf32>
    %6 = arith.addf %3, %5 : vector<8x1536xf32>
    %cst_6 = arith.constant 2.000000e+01 : f32
    %7 = vector.broadcast %cst_6 : f32 to vector<8x1536xf32>
    %8 = arith.minimumf %6, %7 : vector<8x1536xf32>
    %9 = math.exp %8 : vector<8x1536xf32>
    %cst_7 = arith.constant 2.000000e+00 : f32
    %10 = vector.broadcast %cst_7 : f32 to vector<8x1536xf32>
    %11 = arith.addf %9, %10 : vector<8x1536xf32>
    %12 = arith.mulf %9, %11 : vector<8x1536xf32>
    %cst_8 = arith.constant 2.000000e+00 : f32
    %13 = vector.broadcast %cst_8 : f32 to vector<8x1536xf32>
    %14 = arith.addf %12, %13 : vector<8x1536xf32>
    %15 = tpu.reciprocal %14 {approx = true} : vector<8x1536xf32> -> vector<8x1536xf32>
    %16 = arith.mulf %12, %15 : vector<8x1536xf32>
    %17 = arith.mulf %6, %16 : vector<8x1536xf32>
    %18 = vector.shape_cast %17 : vector<8x1536xf32> to vector<1x8x1536xf32>
    %c0_9 = arith.constant 0 : index
    %c0_10 = arith.constant 0 : index
    %19 = vector.load %arg4[%c0_9, %c0_10] : memref<8x1536xf32, #tpu.memory_space<vmem>>, vector<8x1536xf32>
    %20 = vector.shape_cast %19 : vector<8x1536xf32> to vector<1x8x1536xf32>
    %21 = arith.addf %18, %20 : vector<1x8x1536xf32>
    %cst_11 = arith.constant dense<0xFF800000> : vector<1x1536xf32>
    %22 = vector.multi_reduction <maximumf>, %21, %cst_11 [1] : vector<1x8x1536xf32> to vector<1x1536xf32>
    %c0_12 = arith.constant 0 : index
    %c0_13 = arith.constant 0 : index
    %23 = vector.load %arg5[%c0_12, %c0_13] : memref<1536x128xf32, #tpu.memory_space<vmem>>, vector<1536x128xf32>
    %cst_14 = arith.constant dense<0.000000e+00> : vector<1x128xf32>
    %24 = tpu.matmul %22, %23, %cst_14 {dimension_numbers = #tpu.dot_dimension_numbers<[1], [0], [0], [1], [0, 0, 1, 1], [], []>} : vector<1x1536xf32>, vector<1536x128xf32>, vector<1x128xf32> -> vector<1x128xf32>
    %c0_15 = arith.constant 0 : index
    %c0_16 = arith.constant 0 : index
    %c0_17 = arith.constant 0 : index
    %25 = vector.load %arg6[%c0_15, %c0_16, %c0_17] : memref<1x1x128xf32, #tpu.memory_space<vmem>>, vector<1x1x128xf32>
    %26 = vector.shape_cast %25 : vector<1x1x128xf32> to vector<1x128xf32>
    %27 = vector.shape_cast %24 : vector<1x128xf32> to vector<1x1x128xf32>
    tpu.vector_store %arg6[%c0_15, %c0_16, %c0_17], %27 {strides = array<i32>} : memref<1x1x128xf32, #tpu.memory_space<vmem>>, vector<1x1x128xf32>,
    return
  }
  func.func @transform_0(%arg0: i32) -> (i32, i32, i32) {
    %c0_i32 = arith.constant 0 : i32
    %c0_i32_0 = arith.constant 0 : i32
    %c0_i32_1 = arith.constant 0 : i32
    return %arg0, %c0_i32, %c0_i32_0 : i32, i32, i32
  }
  func.func @transform_1(%arg0: i32) -> (i32, i32) {
    %c0_i32 = arith.constant 0 : i32
    %c0_i32_0 = arith.constant 0 : i32
    %c0_i32_1 = arith.constant 0 : i32
    return %c0_i32, %c0_i32_0 : i32, i32
  }
  func.func @transform_2(%arg0: i32) -> (i32, i32) {
    %c0_i32 = arith.constant 0 : i32
    %c0_i32_0 = arith.constant 0 : i32
    %c0_i32_1 = arith.constant 0 : i32
    return %c0_i32, %c0_i32_0 : i32, i32
  }
  func.func @transform_3(%arg0: i32) -> (i32, i32) {
    %c0_i32 = arith.constant 0 : i32
    %c0_i32_0 = arith.constant 0 : i32
    %c0_i32_1 = arith.constant 0 : i32
    return %c0_i32, %c0_i32_0 : i32, i32
  }
  func.func @transform_4(%arg0: i32) -> (i32, i32) {
    %c0_i32 = arith.constant 0 : i32
    %c0_i32_0 = arith.constant 0 : i32
    %c0_i32_1 = arith.constant 0 : i32
    return %c0_i32, %c0_i32_0 : i32, i32
  }
  func.func @transform_5(%arg0: i32) -> (i32, i32, i32) {
    %c0_i32 = arith.constant 0 : i32
    %c0_i32_0 = arith.constant 0 : i32
    %c0_i32_1 = arith.constant 0 : i32
    return %arg0, %c0_i32, %c0_i32_0 : i32, i32, i32
  }
}

module attributes {stable_mosaic.version = 11 : i64} {
  func.func @textcnn_kernel(%arg0: i32, %arg1: memref<1x8x128xbf16, #tpu.memory_space<vmem>>, %arg2: memref<128x1536xbf16, #tpu.memory_space<vmem>>, %arg3: memref<1x1536xf32, #tpu.memory_space<vmem>>, %arg4: memref<8x1536xf32, #tpu.memory_space<vmem>>, %arg5: memref<1536x128xf32, #tpu.memory_space<vmem>>, %arg6: memref<1x1x128xf32, #tpu.memory_space<vmem>>) attributes {dimension_semantics = [#tpu.dimension_semantics<parallel>], iteration_bounds = array<i64: 2>, scalar_prefetch = 0 : i64, scratch_operands = 0 : i64, tpu.core_type = #tpu.core_type<tc>, window_params = [{transform_indices = @transform_0, window_bounds = array<i64: 1, 8, 128>}, {pipeline_mode = #tpu.pipeline_mode<synchronous>, transform_indices = @transform_1, window_bounds = array<i64: 128, 1536>}, {pipeline_mode = #tpu.pipeline_mode<synchronous>, transform_indices = @transform_2, window_bounds = array<i64: 1, 1536>}, {pipeline_mode = #tpu.pipeline_mode<synchronous>, transform_indices = @transform_3, window_bounds = array<i64: 8, 1536>}, {pipeline_mode = #tpu.pipeline_mode<synchronous>, transform_indices = @transform_4, window_bounds = array<i64: 1536, 128>}, {transform_indices = @transform_5, window_bounds = array<i64: 1, 1, 128>}]} {
    %c0 = arith.constant 0 : index
    %c0_0 = arith.constant 0 : index
    %c0_1 = arith.constant 0 : index
    %0 = vector.load %arg1[%c0, %c0_0, %c0_1] : memref<1x8x128xbf16, #tpu.memory_space<vmem>>, vector<1x8x128xbf16>
    %1 = vector.shape_cast %0 : vector<1x8x128xbf16> to vector<8x128xbf16>
    %c0_2 = arith.constant 0 : index
    %c0_3 = arith.constant 0 : index
    %2 = vector.load %arg2[%c0_2, %c0_3] : memref<128x1536xbf16, #tpu.memory_space<vmem>>, vector<128x1536xbf16>
    %cst = arith.constant dense<0.000000e+00> : vector<8x1536xf32>
    %3 = tpu.matmul %1, %2, %cst {dimension_numbers = #tpu.dot_dimension_numbers<[1], [0], [0], [1], [0, 0, 1, 1], [], []>} : vector<8x128xbf16>, vector<128x1536xbf16>, vector<8x1536xf32> -> vector<8x1536xf32>
    %c0_4 = arith.constant 0 : index
    %c0_5 = arith.constant 0 : index
    %4 = vector.load %arg3[%c0_4, %c0_5] : memref<1x1536xf32, #tpu.memory_space<vmem>>, vector<1x1536xf32>
    %5 = vector.broadcast %4 : vector<1x1536xf32> to vector<8x1536xf32>
    %6 = arith.addf %3, %5 : vector<8x1536xf32>
    %cst_6 = arith.constant 2.000000e+01 : f32
    %7 = vector.broadcast %cst_6 : f32 to vector<8x1536xf32>
    %8 = arith.minimumf %6, %7 : vector<8x1536xf32>
    %9 = math.exp %8 : vector<8x1536xf32>
    %cst_7 = arith.constant 2.000000e+00 : f32
    %10 = vector.broadcast %cst_7 : f32 to vector<8x1536xf32>
    %11 = arith.addf %9, %10 : vector<8x1536xf32>
    %12 = arith.mulf %9, %11 : vector<8x1536xf32>
    %cst_8 = arith.constant 2.000000e+00 : f32
    %13 = vector.broadcast %cst_8 : f32 to vector<8x1536xf32>
    %14 = arith.addf %12, %13 : vector<8x1536xf32>
    %15 = tpu.reciprocal %14 {approx = true} : vector<8x1536xf32> -> vector<8x1536xf32>
    %16 = arith.mulf %12, %15 : vector<8x1536xf32>
    %17 = arith.mulf %6, %16 : vector<8x1536xf32>
    %18 = vector.shape_cast %17 : vector<8x1536xf32> to vector<1x8x1536xf32>
    %c0_9 = arith.constant 0 : index
    %c0_10 = arith.constant 0 : index
    %19 = vector.load %arg4[%c0_9, %c0_10] : memref<8x1536xf32, #tpu.memory_space<vmem>>, vector<8x1536xf32>
    %20 = vector.shape_cast %19 : vector<8x1536xf32> to vector<1x8x1536xf32>
    %21 = arith.addf %18, %20 : vector<1x8x1536xf32>
    %cst_11 = arith.constant dense<0xFF800000> : vector<1x1536xf32>
    %22 = vector.multi_reduction <maximumf>, %21, %cst_11 [1] : vector<1x8x1536xf32> to vector<1x1536xf32>
    %c0_12 = arith.constant 0 : index
    %c0_13 = arith.constant 0 : index
    %23 = vector.load %arg5[%c0_12, %c0_13] : memref<1536x128xf32, #tpu.memory_space<vmem>>, vector<1536x128xf32>
    %cst_14 = arith.constant dense<0.000000e+00> : vector<1x128xf32>
    %24 = tpu.matmul %22, %23, %cst_14 {dimension_numbers = #tpu.dot_dimension_numbers<[1], [0], [0], [1], [0, 0, 1, 1], [], []>} : vector<1x1536xf32>, vector<1536x128xf32>, vector<1x128xf32> -> vector<1x128xf32>
    %c0_15 = arith.constant 0 : index
    %c0_16 = arith.constant 0 : index
    %c0_17 = arith.constant 0 : index
    %25 = vector.load %arg6[%c0_15, %c0_16, %c0_17] : memref<1x1x128xf32, #tpu.memory_space<vmem>>, vector<1x1x128xf32>
    %26 = vector.shape_cast %25 : vector<1x1x128xf32> to vector<1x128xf32>
    %27 = vector.shape_cast %24 : vector<1x128xf32> to vector<1x1x128xf32>
    tpu.vector_store %arg6[%c0_15, %c0_16, %c0_17], %27 {strides = array<i32>} : memref<1x1x128xf32, #tpu.memory_space<vmem>>, vector<1x1x128xf32>,
    return
  }
  func.func @transform_0(%arg0: i32) -> (i32, i32, i32) {
    %c0_i32 = arith.constant 0 : i32
    %c0_i32_0 = arith.constant 0 : i32
    %c0_i32_1 = arith.constant 0 : i32
    return %arg0, %c0_i32, %c0_i32_0 : i32, i32, i32
  }
  func.func @transform_1(%arg0: i32) -> (i32, i32) {
    %c0_i32 = arith.constant 0 : i32
    %c0_i32_0 = arith.constant 0 : i32
    %c0_i32_1 = arith.constant 0 : i32
    return %c0_i32, %c0_i32_0 : i32, i32
  }
  func.func @transform_2(%arg0: i32) -> (i32, i32) {
    %c0_i32 = arith.constant 0 : i32
    %c0_i32_0 = arith.constant 0 : i32
    %c0_i32_1 = arith.constant 0 : i32
    return %c0_i32, %c0_i32_0 : i32, i32
  }
  func.func @transform_3(%arg0: i32) -> (i32, i32) {
    %c0_i32 = arith.constant 0 : i32
    %c0_i32_0 = arith.constant 0 : i32
    %c0_i32_1 = arith.constant 0 : i32
    return %c0_i32, %c0_i32_0 : i32, i32
  }
  func.func @transform_4(%arg0: i32) -> (i32, i32) {
    %c0_i32 = arith.constant 0 : i32
    %c0_i32_0 = arith.constant 0 : i32
    %c0_i32_1 = arith.constant 0 : i32
    return %c0_i32, %c0_i32_0 : i32, i32
  }
  func.func @transform_5(%arg0: i32) -> (i32, i32, i32) {
    %c0_i32 = arith.constant 0 : i32
    %c0_i32_0 = arith.constant 0 : i32
    %c0_i32_1 = arith.constant 0 : i32
    return %arg0, %c0_i32, %c0_i32_0 : i32, i32, i32
  }
}

</mosaic_0001>

<bundles_post_ra>
// kernel: tpu_custom_call.1
= control target key start
LH: loop header
LB: loop body
LE: loop exit
PB: predicated region body
PF: predicated region fallthrough
CT: control target
= control target key end

     0   :  { %10 = vsyncpa [#allocation3], 0  ;;  %s3623_s0 = inlined_call_operand.hbm [shape: bf16[2,8,128], index: 0, kind: input, shape index: {}]   ;;  %s3624_s1 = inlined_call_operand.hbm [shape: bf16[128,1536], index: 1, kind: input, shape index: {}]   ;;  %s3625_s2 = inlined_call_operand.hbm [shape: f32[1,1536], index: 2, kind: input, shape index: {}]   ;;  %s3626_s3 = inlined_call_operand.hbm [shape: f32[8,1536], index: 3, kind: input, shape index: {}]   ;;  %s3627_s4 = inlined_call_operand.hbm [shape: f32[1536,128], index: 4, kind: input, shape index: {}]   ;;  %s3628_s5 = inlined_call_operand.hbm [shape: f32[2,1,128], index: 5, kind: output, shape index: {}]  }
   0x1   :  { %12 = vsyncpa [#allocation3 + $0x1], 0 }
   0x2   :  { %13 = vsyncpa [#allocation6], 0 }
   0x3   :  { %14 = vsyncpa [#allocation9], 0 }
   0x4   :  { %15 = vsyncpa [#allocation4], 0 }
   0x5   :  { %17 = vsyncpa [#allocation4 + $0x1], 0  ;;  %s3174_s18 = smov 0   ;;  %s3176_s19 = smov 0  }
   0x6   :  { %s3178_s20 = smov 0   ;;  %s3180_s21 = smov 0  }
   0x7 LB: > { %s3133_s22 = smov [#allocation5]   ;;  %s3195_s24 = sadd.s32 4294967295, %s3131_s21   ;;  %s3131_s21 = sphi %s3180_s21, %s3652_s21   ;;  %s3127_s20 = sphi %s3178_s20, %s3651_s20   ;;  %s3123_s19 = sphi %s3176_s19, %s3650_s19   ;;  %s3119_s18 = sphi %s3174_s18, %s3649_s18  }
   0x8   : > { %s176_s23 = sshll.u32 %s3133_s22, 4  ;;  %p2116_p0 = scmp.ge.s32.totalorder %s3131_s21, 1  ;;  %s3200_s23 = int_to_ptr.vmem [resolvable:$true] %s176_s23 }
   0x9   : > { %p3629_p1 = scmp.eq.s32.totalorder %s3195_s24, 0  ;;  %p164_p2 = scmp.lt.s32.totalorder %s3131_s21, 3 }
   0xa   : > { %s3134_s26 = smov [#allocation8]   ;;  %s3135_s29 = smov [#allocation7]  }
   0xb   : > { %p3202_p3 = pnand %p2116_p0, %p164_p2  ;;  %s201_s27 = sshll.u32 %s3134_s26, 4  ;;  %s3215_s27 = int_to_ptr.vmem [resolvable:$true] %s201_s27 }
   0xc   : > { %s190_s30 = sshll.u32 %s3135_s29, 4  ;;  %s2915_s8 = scalar_lea.hbm %s3624_s1, 12288  ;;  %s3217_s30 = int_to_ptr.vmem [resolvable:$true] %s190_s30 }
   0xd   : > { %s3632_s25 = scalar_select %p3202_p3, 1, 0 }
   0xe   : > { %p2651_p5 = pneg %p3202_p3  ;;  %p2916_p7 = scmp.ne.s32.totalorder %s3624_s1, %s2915_s8 }
   0xf   : > { %p2922_p11 = scmp.lt.u32.totalorder %s2915_s8, %s3624_s1 }
  0x10   : > { %p3211_p6 = pnand %p2651_p5, %p3629_p1 }
  0x12   : > { %p3227_p8 = pneg %p3211_p6 }
  0x14   : > { %p2918_p9 = pnand %p3227_p8, %p2916_p7 }
  0x16   : > { %p2919_p10 = pneg %p2918_p9 }
  0x18   : > { %p2924_p12 = pnand %p2922_p11, %p2919_p10 }
  0x1a   : > { %2927 = shalt.err (!%p2924_p12)
}
  0x1b   : > { %s2928_s14 = scalar_lea.vmem %s3200_s23, 12288  ;;  %p2936_p5 = scmp.lt.s32.totalorder %s3200_s23, %s3200_s23 }
  0x1c   : > { %p2929_p13 = scmp.ne.s32.totalorder %s3200_s23, %s2928_s14  ;;  %p2937_p4 = scmp.lt.s32.totalorder %s2928_s14, %s2928_s14 }
  0x1e   : > { %p2931_p0 = pnand %p2929_p13, %p3227_p8  ;;  %p2938_p7 = por %p2937_p4, %p2936_p5 }
  0x20   : > { %p2932_p2 = pneg %p2931_p0 }
  0x22   : > { %p2939_p9 = pnand %p2938_p7, %p2932_p2 }
  0x24   : > { %2942 = shalt.err (!%p2939_p9)
}
  0x25   : > { %s3136_s15 = smov 768   ;;  %s3137_s16 = smov 48  }
  0x26   : > { %2654 = dma.hbm_to_vmem [thread:$0]  (!%p3211_p6), %s3624_s1, 12288, %s3200_s23, [#allocation6], %s3136_s15, %s3136_s15, %s3137_s16  }
  0x27   : > { %s2943_s6 = scalar_lea.hbm %s3626_s3, 1536 }
  0x28   : > { %p2944_p4 = scmp.ne.s32.totalorder %s3626_s3, %s2943_s6  ;;  %p2950_p12 = scmp.lt.u32.totalorder %s2943_s6, %s3626_s3 }
  0x2a   : > { %p2946_p10 = pnand %p2944_p4, %p3227_p8 }
  0x2c   : > { %p2947_p11 = pneg %p2946_p10 }
  0x2e   : > { %p2952_p13 = pnand %p2950_p12, %p2947_p11 }
  0x30   : > { %2955 = shalt.err (!%p2952_p13)
}
  0x31   : > { %s2956_s23 = scalar_lea.vmem %s3215_s27, 1536  ;;  %p2964_p7 = scmp.lt.s32.totalorder %s3215_s27, %s3215_s27 }
  0x32   : > { %p2957_p0 = scmp.ne.s32.totalorder %s3215_s27, %s2956_s23  ;;  %p2965_p9 = scmp.lt.s32.totalorder %s2956_s23, %s2956_s23 }
  0x34   : > { %p2959_p2 = pnand %p2957_p0, %p3227_p8  ;;  %p2966_p4 = por %p2965_p9, %p2964_p7 }
  0x36   : > { %p2960_p5 = pneg %p2959_p2 }
  0x38   : > { %p2967_p10 = pnand %p2966_p4, %p2960_p5 }
  0x3a   : > { %2970 = shalt.err (!%p2967_p10)
}
  0x3b   : > { %2660 = dma.hbm_to_vmem [thread:$0]  (!%p3211_p6), %s3626_s3, 1536, %s3215_s27, [#allocation9]  }
  0x3c   : > { %s2971_s16 = scalar_lea.hbm %s3625_s2, 192 }
  0x3d   : > { %p2972_p11 = scmp.ne.s32.totalorder %s3625_s2, %s2971_s16  ;;  %p2978_p0 = scmp.lt.u32.totalorder %s2971_s16, %s3625_s2 }
  0x3f   : > { %p2974_p12 = pnand %p2972_p11, %p3227_p8 }
  0x41   : > { %p2975_p13 = pneg %p2974_p12 }
  0x43   : > { %p2980_p2 = pnand %p2978_p0, %p2975_p13 }
  0x45   : > { %2983 = shalt.err (!%p2980_p2)
}
  0x46   : > { %s2984_s27 = scalar_lea.vmem %s3217_s30, 192  ;;  %p2992_p4 = scmp.lt.s32.totalorder %s3217_s30, %s3217_s30 }
  0x47   : > { %p2985_p5 = scmp.ne.s32.totalorder %s3217_s30, %s2984_s27  ;;  %p2993_p10 = scmp.lt.s32.totalorder %s2984_s27, %s2984_s27 }
  0x49   : > { %p2987_p7 = pnand %p2985_p5, %p3227_p8  ;;  %p2994_p11 = por %p2993_p10, %p2992_p4 }
  0x4b   : > { %p2988_p9 = pneg %p2987_p7 }
  0x4d   : > { %p2995_p12 = pnand %p2994_p11, %p2988_p9 }
  0x4f   : > { %2998 = shalt.err (!%p2995_p12)
}
  0x50   : > { %2657 = dma.hbm_to_vmem [thread:$0]  (!%p3211_p6), %s3625_s2, 192, %s3217_s30, [#allocation6]  }
  0x51   : > { %s3138_s8 = smov [#allocation10]   ;;  %s2999_s12 = scalar_lea.hbm %s3627_s4, 24576 }
  0x52   : > { %s211_s9 = sshll.u32 %s3138_s8, 4  ;;  %p3000_p13 = scmp.ne.s32.totalorder %s3627_s4, %s2999_s12  ;;  %s212_s9 = int_to_ptr.vmem [resolvable:$true] %s211_s9 }
  0x53   : > { %p3006_p5 = scmp.lt.u32.totalorder %s2999_s12, %s3627_s4 }
  0x54   : > { %p3002_p0 = pnand %p3000_p13, %p3227_p8 }
  0x56   : > { %p3003_p2 = pneg %p3002_p0 }
  0x58   : > { %p3008_p7 = pnand %p3006_p5, %p3003_p2 }
  0x5a   : > { %3011 = shalt.err (!%p3008_p7)
}
  0x5b   : > { %s3012_s30 = scalar_lea.vmem %s212_s9, 24576  ;;  %p3020_p11 = scmp.lt.s32.totalorder %s212_s9, %s212_s9 }
  0x5c   : > { %p3013_p9 = scmp.ne.s32.totalorder %s212_s9, %s3012_s30  ;;  %p3021_p12 = scmp.lt.s32.totalorder %s3012_s30, %s3012_s30 }
  0x5e   : > { %p3015_p4 = pnand %p3013_p9, %p3227_p8  ;;  %p3022_p1 = por %p3021_p12, %p3020_p11 }
  0x60   : > { %p3016_p10 = pneg %p3015_p4 }
  0x62   : > { %p3023_p3 = pnand %p3022_p1, %p3016_p10 }
  0x64   : > { %3026 = shalt.err (!%p3023_p3)
}
  0x65   : > { %s3139_s17 = smov 128   ;;  %s3140_s11 = smov 8  }
  0x66   : > { %2663 = dma.hbm_to_vmem [thread:$0]  (!%p3211_p6), %s3627_s4, 24576, %s212_s9, [#allocation9], %s3139_s17, %s3139_s17, %s3140_s11  }
  0x67   : > { %s2115_s29 = sadd.s32 4294967294, %s3131_s21   ;;  %s3314_s27 = sadd.s32 1, %s3131_s21  }
  0x68   : > { %s27_s6 = ssub.s32 %s3131_s21, %s3314_s27  ;;  %s30_s7 = sadd.s32 1, %s3127_s20 }
  0x69   : > { %p28_p1 = scmp.eq.s32.totalorder %s27_s6, 0  ;;  %p37_p3 = scmp.ne.s32.totalorder %s3127_s20, %s3123_s19 }
  0x6a   : > { %p38_p8 = scmp.eq.s32.totalorder %s3131_s21, 0  ;;  %p43_p13 = scmp.ne.s32.totalorder %s3123_s19, %s3119_s18 }
  0x6b   : > { %s3325_s8 = scalar_select %p28_p1, %s3127_s20, %s30_s7  }
  0x6c   : > { %p3327_p0 = por %p38_p8, %p37_p3  ;;  %p3636_p2 = scmp.eq.s32.totalorder %s3195_s24, 0 }
  0x6d   : > { %p151_p5 = scmp.eq.s32.totalorder %s3195_s24, 1  ;;  %p157_p7 = scmp.eq.s32.totalorder %s2115_s29, 1 }
  0x6e   : > { %p3333_p6 = por %p3636_p2, %p43_p13  ;;  %p2676_p9 = scmp.lt.s32.totalorder %s3131_s21, 2 }
  0x6f   : > { %s225_s10 = sand.u32 1, %s3127_s20   ;;  %p3340_p4 = por %p151_p5, %p37_p3 }
  0x70   : > { %p3344_p10 = por %p157_p7, %p43_p13  ;;  %s2122_s13 = sshll.u32 %s225_s10, 2 }
  0x71   : > { %s3638_s23 = scalar_select %p3340_p4, 1, 0 }
  0x72   : > { %s3639_s12 = scalar_select %p3344_p10, 1, 0 }
  0x73   : > { %s2123_s14 = sshll.u32 %s3131_s21, 6  ;;  %s229_s17 = scalar_lea.vmem [#allocation2], %s2122_s13 }
  0x74   : > { %s3352_s30 = scalar_lea.hbm %s3623_s0, %s2123_s14  ;;  %s236_s11 = sshll.u32 %s229_s17, 4  ;;  %s3354_s11 = int_to_ptr.vmem [resolvable:$true] %s236_s11 }
  0x75   : > { %p3358_p11 = pnand %p2676_p9, %p3327_p0  ;;  %s226_s26 = scalar_lea.sflag [#allocation3], %s225_s10 }
  0x76   : > { %s3027_s29 = scalar_lea.hbm %s3352_s30, 64  ;;  %s3032_s13 = scalar_lea.hbm %s3623_s0, 128 }
  0x77   : > { %p3028_p12 = scmp.ne.s32.totalorder %s3352_s30, %s3027_s29  ;;  %p3029_p1 = pneg %p3358_p11 }
  0x78   : > { %p3033_p13 = scmp.lt.u32.totalorder %s3352_s30, %s3623_s0  ;;  %p3034_p0 = scmp.lt.u32.totalorder %s3032_s13, %s3027_s29 }
  0x79   : > { %p3030_p3 = pnand %p3029_p1, %p3028_p12  ;;  %p3036_p5 = scmp.lt.u32.totalorder %s3027_s29, %s3352_s30 }
  0x7a   : > { %p3035_p2 = por %p3034_p0, %p3033_p13 }
  0x7b   : > { %p3031_p8 = pneg %p3030_p3 }
  0x7c   : > { %p3037_p7 = por %p3036_p5, %p3035_p2 }
  0x7e   : > { %p3038_p9 = pnand %p3037_p7, %p3031_p8 }
  0x80   : > { %3041 = shalt.err (!%p3038_p9)
}
  0x81   : > { %s3042_s10 = scalar_lea.vmem %s3354_s11, 64  ;;  %s3141_s15 = smov [#allocation2]  }
  0x82   : > { %p3043_p12 = scmp.ne.s32.totalorder %s3354_s11, %s3042_s10  ;;  %s3047_s16 = sshll.u32 %s3141_s15, 4  ;;  %s3048_s16 = int_to_ptr.vmem [resolvable:$false] %s3047_s16 }
  0x83   : > { %s3049_s17 = scalar_lea.vmem %s3048_s16, 128  ;;  %p3050_p4 = scmp.lt.s32.totalorder %s3354_s11, %s3048_s16 }
  0x84   : > { %p3045_p3 = pnand %p3043_p12, %p3029_p1  ;;  %p3051_p13 = scmp.lt.s32.totalorder %s3049_s17, %s3042_s10 }
  0x86   : > { %p3046_p10 = pneg %p3045_p3  ;;  %p3052_p0 = por %p3051_p13, %p3050_p4 }
  0x88   : > { %p3053_p2 = pnand %p3052_p0, %p3046_p10 }
  0x8a   : > { %3056 = shalt.err (!%p3053_p2)
}
  0x8b   : > { %2667 = dma.hbm_to_vmem [thread:$0]  (!%p3358_p11), %s3352_s30, 64, %s3354_s11, %s226_s26  }
  0x8c   : > { %p3641_p8 = scmp.ne.s32.totalorder %s3632_s25, 0 }
  0x8d   : > { %s3390_s29 = sand.u32 (!%p3641_p8), 1, %s3123_s19  }
  0x8e   : > { %245 = sbr.rel (%p3641_p8) target bundleno = 755 (0x2f3), region = 40  ;;  %s2125_s6 = sshll.u32 (!%p3641_p8), %s3390_s29, 2 }
  0x8f   : > { %s248_s7 = scalar_lea.sflag (!%p3641_p8), [#allocation3], %s3390_s29  ;;  %s3394_s13 = scalar_lea.vmem (!%p3641_p8), [#allocation2], %s2125_s6 }
  0x95   : > { %3102 = dma.done.wait (%p3333_p6), %s248_s7, 64  }
  0x96   : > { %3104 = vsyncadd (%p3333_p6), %s248_s7, 4294967232  ;;  %p3642_p4 = scmp.eq.s32.totalorder %s3195_s24, 0 }
  0x98   : > { %3106 = dma.done.wait (%p3642_p4), [#allocation6], 12480   ;;  %p3643_p10 = pmov %p3642_p4 }
  0x99   : > { %p3644_p11 = pmov %p3642_p4 }
  0x9a   : > { %3108 = vsyncadd (%p3643_p10), [#allocation6], 4294954816 }
  0x9b   : > { %3110 = dma.done.wait (%p3644_p11), [#allocation9], 26112   ;;  %p3645_p1 = pmov %p3642_p4 }
  0x9c   : > { %v3142_v0 = vmov 0   ;;  %v2723_v1 = vld [vmem:[#allocation5 + $0x4] ss:$48 sps:$4 sm:$0xff]   ;;  %v2725_v2 = vld [vmem:[#allocation5 + $0xc] ss:$48 sps:$4 sm:$0xff]   ;;  %s2226_s25 = sshll.u32 %s3195_s24, 4 }
  0x9d   : > { %3112 = vsyncadd (%p3645_p1), [#allocation9], 4294941184  ;;  %967 = vmatprep.mubr.bf16.mxu0 %v3142_v0  ;;  %1008 = vmatprep.mubr.bf16.mxu1 %v3142_v0  ;;  %v2727_v3 = vld [vmem:[#allocation5] ss:$48 sps:$4 sm:$0xff]   ;;  %v2728_v4 = vld [vmem:[#allocation5 + $0x8] ss:$48 sps:$4 sm:$0xff]   ;;  %s3579_s26 = scalar_lea.hbm %s3628_s5, %s2226_s25 }
  0x9e   : > { %935 = vmatprep.subr.bf16.mxu0 %v2723_v1  ;;  %976 = vmatprep.subr.bf16.mxu1 %v2725_v2  ;;  %v2729_v5 = vld [vmem:[#allocation5 + $0x64] ss:$48 sps:$4 sm:$0xff]   ;;  %v2731_v6 = vld [vmem:[#allocation5 + $0x6c] ss:$48 sps:$4 sm:$0xff]   ;;  %v2733_v7 = vld [vmem:[#allocation5 + $0x60] ss:$48 sps:$4 sm:$0xff]  }
  0x9f   : > { %936 = vmatpush1.bf16.msra.mxu0 %v2727_v3  ;;  %977 = vmatpush1.bf16.msra.mxu1 %v2728_v4  ;;  %v2734_v8 = vld [vmem:[#allocation5 + $0x68] ss:$48 sps:$4 sm:$0xff]   ;;  %v2735_v9 = vld [vmem:[#allocation5 + $0xc4] ss:$48 sps:$4 sm:$0xff]   ;;  %v2737_v10 = vld [vmem:[#allocation5 + $0xcc] ss:$48 sps:$4 sm:$0xff]  }
  0xa0   : > { %937 = vmatprep.subr.bf16.mxu0 %v2729_v5  ;;  %978 = vmatprep.subr.bf16.mxu1 %v2731_v6  ;;  %v2739_v11 = vld [vmem:[#allocation5 + $0xc0] ss:$48 sps:$4 sm:$0xff]   ;;  %v2740_v12 = vld [vmem:[#allocation5 + $0xc8] ss:$48 sps:$4 sm:$0xff]   ;;  %v2741_v13 = vld [vmem:[#allocation5 + $0x124] ss:$48 sps:$4 sm:$0xff]  }
  0xa1   : > { %v2743_v14 = vld [vmem:[#allocation5 + $0x12c] ss:$48 sps:$4 sm:$0xff]   ;;  %v2745_v15 = vld [vmem:[#allocation5 + $0x120] ss:$48 sps:$4 sm:$0xff]   ;;  %v2746_v16 = vld [vmem:[#allocation5 + $0x128] ss:$48 sps:$4 sm:$0xff]  }
  0xa2   : > { %v2747_v17 = vld [vmem:[#allocation5 + $0x184] ss:$48 sps:$4 sm:$0xff]   ;;  %v2749_v18 = vld [vmem:[#allocation5 + $0x18c] ss:$48 sps:$4 sm:$0xff]   ;;  %v2751_v19 = vld [vmem:[#allocation5 + $0x180] ss:$48 sps:$4 sm:$0xff]  }
  0xa3   : > { %938 = vmatpush1.bf16.msra.mxu0 %v2733_v7  ;;  %979 = vmatpush1.bf16.msra.mxu1 %v2734_v8  ;;  %v2752_v20 = vld [vmem:[#allocation5 + $0x188] ss:$48 sps:$4 sm:$0xff]   ;;  %v2753_v21 = vld [vmem:[#allocation5 + $0x1e4] ss:$48 sps:$4 sm:$0xff]   ;;  %v2755_v22 = vld [vmem:[#allocation5 + $0x1ec] ss:$48 sps:$4 sm:$0xff]  }
  0xa4   : > { %939 = vmatprep.subr.bf16.mxu0 %v2735_v9  ;;  %980 = vmatprep.subr.bf16.mxu1 %v2737_v10  ;;  %v2757_v23 = vld [vmem:[#allocation5 + $0x1e0] ss:$48 sps:$4 sm:$0xff]   ;;  %v2758_v24 = vld [vmem:[#allocation5 + $0x1e8] ss:$48 sps:$4 sm:$0xff]   ;;  %v2759_v25 = vld [vmem:[#allocation5 + $0x244] ss:$48 sps:$4 sm:$0xff]  }
  0xa5   : > { %v2761_v26 = vld [vmem:[#allocation5 + $0x24c] ss:$48 sps:$4 sm:$0xff]   ;;  %v2763_v27 = vld [vmem:[#allocation5 + $0x240] ss:$48 sps:$4 sm:$0xff]   ;;  %v2764_v28 = vld [vmem:[#allocation5 + $0x248] ss:$48 sps:$4 sm:$0xff]  }
  0xa6   : > { %v2765_v29 = vld [vmem:[#allocation5 + $0x2a4] ss:$48 sps:$4 sm:$0xff]   ;;  %v2767_v30 = vld [vmem:[#allocation5 + $0x2ac] ss:$48 sps:$4 sm:$0xff]   ;;  %v2769_v31 = vld [vmem:[#allocation5 + $0x2a0] ss:$48 sps:$4 sm:$0xff]  }
  0xa7   : > { %940 = vmatpush1.bf16.msra.mxu0 %v2739_v11  ;;  %981 = vmatpush1.bf16.msra.mxu1 %v2740_v12  ;;  %v2770_v32 = vld [vmem:[#allocation5 + $0x2a8] ss:$48 sps:$4 sm:$0xff]   ;;  %v2773_v33 = vld [vmem:[#allocation5 + $0x14] ss:$48 sps:$4 sm:$0xff]   ;;  %v2776_v34 = vld [vmem:[#allocation5 + $0x1c] ss:$48 sps:$4 sm:$0xff]  }
  0xa8   : > { %941 = vmatprep.subr.bf16.mxu0 %v2741_v13  ;;  %982 = vmatprep.subr.bf16.mxu1 %v2743_v14  ;;  %v3411_v35 = vld [vmem:[%s3394_s13] sm:$0xf]  ;;  %v2771_v36 = vld [vmem:[#allocation5 + $0x10] ss:$48 sps:$4 sm:$0xff]   ;;  %v2779_v38 = vld [vmem:[#allocation5 + $0x74] ss:$48 sps:$4 sm:$0xff]  }
  0xa9   : > { %v2774_v37 = vld [vmem:[#allocation5 + $0x18] ss:$48 sps:$4 sm:$0xff]   ;;  %v2782_v39 = vld [vmem:[#allocation5 + $0x7c] ss:$48 sps:$4 sm:$0xff]   ;;  %v2777_v40 = vld [vmem:[#allocation5 + $0x70] ss:$48 sps:$4 sm:$0xff]  }
  0xaa   : > { %v2780_v41 = vld [vmem:[#allocation5 + $0x78] ss:$48 sps:$4 sm:$0xff]   ;;  %v2785_v42 = vld [vmem:[#allocation5 + $0xd4] ss:$48 sps:$4 sm:$0xff]   ;;  %v2788_v43 = vld [vmem:[#allocation5 + $0xdc] ss:$48 sps:$4 sm:$0xff]  }
  0xab   : > { %942 = vmatpush1.bf16.msra.mxu0 %v2745_v15  ;;  %983 = vmatpush1.bf16.msra.mxu1 %v2746_v16  ;;  %v2783_v44 = vld [vmem:[#allocation5 + $0xd0] ss:$48 sps:$4 sm:$0xff]   ;;  %v2786_v45 = vld [vmem:[#allocation5 + $0xd8] ss:$48 sps:$4 sm:$0xff]   ;;  %v2791_v46 = vld [vmem:[#allocation5 + $0x134] ss:$48 sps:$4 sm:$0xff]  }
  0xac   : > { %943 = vmatprep.subr.bf16.mxu0 %v2747_v17  ;;  %984 = vmatprep.subr.bf16.mxu1 %v2749_v18  ;;  %v2794_v47 = vld [vmem:[#allocation5 + $0x13c] ss:$48 sps:$4 sm:$0xff]   ;;  %v2789_v48 = vld [vmem:[#allocation5 + $0x130] ss:$48 sps:$4 sm:$0xff]   ;;  %v2792_v49 = vld [vmem:[#allocation5 + $0x138] ss:$48 sps:$4 sm:$0xff]  }
  0xad   : > { %v2797_v50 = vld [vmem:[#allocation5 + $0x194] ss:$48 sps:$4 sm:$0xff]   ;;  %v2800_v51 = vld [vmem:[#allocation5 + $0x19c] ss:$48 sps:$4 sm:$0xff]   ;;  %v2795_v52 = vld [vmem:[#allocation5 + $0x190] ss:$48 sps:$4 sm:$0xff]  }
  0xae   : > { %v2798_v53 = vld [vmem:[#allocation5 + $0x198] ss:$48 sps:$4 sm:$0xff]   ;;  %v2803_v54 = vld [vmem:[#allocation5 + $0x1f4] ss:$48 sps:$4 sm:$0xff]   ;;  %v2806_v55 = vld [vmem:[#allocation5 + $0x1fc] ss:$48 sps:$4 sm:$0xff]  }
  0xaf   : > { %944 = vmatpush1.bf16.msra.mxu0 %v2751_v19  ;;  %985 = vmatpush1.bf16.msra.mxu1 %v2752_v20  ;;  %v2801_v56 = vld [vmem:[#allocation5 + $0x1f0] ss:$48 sps:$4 sm:$0xff]   ;;  %v2804_v57 = vld [vmem:[#allocation5 + $0x1f8] ss:$48 sps:$4 sm:$0xff]   ;;  %v2809_v58 = vld [vmem:[#allocation5 + $0x254] ss:$48 sps:$4 sm:$0xff]  }
  0xb0   : > { %945 = vmatprep.subr.bf16.mxu0 %v2753_v21  ;;  %986 = vmatprep.subr.bf16.mxu1 %v2755_v22  ;;  %v2812_v59 = vld [vmem:[#allocation5 + $0x25c] ss:$48 sps:$4 sm:$0xff]   ;;  %v2807_v60 = vld [vmem:[#allocation5 + $0x250] ss:$48 sps:$4 sm:$0xff]   ;;  %v2810_v61 = vld [vmem:[#allocation5 + $0x258] ss:$48 sps:$4 sm:$0xff]  }
  0xb1   : > { %v2815_v62 = vld [vmem:[#allocation5 + $0x2b4] ss:$48 sps:$4 sm:$0xff]   ;;  %v2818_v63 = vld [vmem:[#allocation5 + $0x2bc] ss:$48 sps:$4 sm:$0xff]   ;;  %v2813_v1 = vld [vmem:[#allocation5 + $0x2b0] ss:$48 sps:$4 sm:$0xff]  }
  0xb2   : > { %v2816_v2 = vld [vmem:[#allocation5 + $0x2b8] ss:$48 sps:$4 sm:$0xff]   ;;  %v2821_v3 = vld [vmem:[#allocation5 + $0x24] ss:$48 sps:$4 sm:$0xff]   ;;  %v2824_v4 = vld [vmem:[#allocation5 + $0x2c] ss:$48 sps:$4 sm:$0xff]  }
  0xb3   : > { %946 = vmatpush1.bf16.msra.mxu0 %v2757_v23  ;;  %987 = vmatpush1.bf16.msra.mxu1 %v2758_v24  ;;  %v2819_v5 = vld [vmem:[#allocation5 + $0x20] ss:$48 sps:$4 sm:$0xff]   ;;  %v2822_v6 = vld [vmem:[#allocation5 + $0x28] ss:$48 sps:$4 sm:$0xff]   ;;  %v2827_v7 = vld [vmem:[#allocation5 + $0x84] ss:$48 sps:$4 sm:$0xff]  }
  0xb4   : > { %947 = vmatprep.subr.bf16.mxu0 %v2759_v25  ;;  %988 = vmatprep.subr.bf16.mxu1 %v2761_v26  ;;  %v2830_v8 = vld [vmem:[#allocation5 + $0x8c] ss:$48 sps:$4 sm:$0xff]   ;;  %v2825_v9 = vld [vmem:[#allocation5 + $0x80] ss:$48 sps:$4 sm:$0xff]   ;;  %v2828_v10 = vld [vmem:[#allocation5 + $0x88] ss:$48 sps:$4 sm:$0xff]  }
  0xb5   : > { %v2833_v11 = vld [vmem:[#allocation5 + $0xe4] ss:$48 sps:$4 sm:$0xff]   ;;  %v2836_v12 = vld [vmem:[#allocation5 + $0xec] ss:$48 sps:$4 sm:$0xff]   ;;  %v2831_v13 = vld [vmem:[#allocation5 + $0xe0] ss:$48 sps:$4 sm:$0xff]  }
  0xb6   : > { %v2834_v14 = vld [vmem:[#allocation5 + $0xe8] ss:$48 sps:$4 sm:$0xff]   ;;  %v2839_v15 = vld [vmem:[#allocation5 + $0x144] ss:$48 sps:$4 sm:$0xff]   ;;  %v2842_v16 = vld [vmem:[#allocation5 + $0x14c] ss:$48 sps:$4 sm:$0xff]  }
  0xb7   : > { %948 = vmatpush1.bf16.msra.mxu0 %v2763_v27  ;;  %989 = vmatpush1.bf16.msra.mxu1 %v2764_v28  ;;  %v2837_v17 = vld [vmem:[#allocation5 + $0x140] ss:$48 sps:$4 sm:$0xff]   ;;  %v2840_v18 = vld [vmem:[#allocation5 + $0x148] ss:$48 sps:$4 sm:$0xff]   ;;  %v2845_v19 = vld [vmem:[#allocation5 + $0x1a4] ss:$48 sps:$4 sm:$0xff]  }
  0xb8   : > { %949 = vmatprep.subr.bf16.mxu0 %v2765_v29  ;;  %990 = vmatprep.subr.bf16.mxu1 %v2767_v30  ;;  %v2848_v20 = vld [vmem:[#allocation5 + $0x1ac] ss:$48 sps:$4 sm:$0xff]   ;;  %v2843_v21 = vld [vmem:[#allocation5 + $0x1a0] ss:$48 sps:$4 sm:$0xff]   ;;  %v2851_v22 = vld [vmem:[#allocation5 + $0x204] ss:$48 sps:$4 sm:$0xff]  }
  0xb9   : > { %v2854_v23 = vld [vmem:[#allocation5 + $0x20c] ss:$48 sps:$4 sm:$0xff]   ;;  %v2849_v24 = vld [vmem:[#allocation5 + $0x200] ss:$48 sps:$4 sm:$0xff]   ;;  %v2852_v25 = vld [vmem:[#allocation5 + $0x208] ss:$48 sps:$4 sm:$0xff]  }
  0xba   : > { %v2857_v26 = vld [vmem:[#allocation5 + $0x264] ss:$48 sps:$4 sm:$0xff]   ;;  %v2860_v27 = vld [vmem:[#allocation5 + $0x26c] ss:$48 sps:$4 sm:$0xff]   ;;  %v2855_v28 = vld [vmem:[#allocation5 + $0x260] ss:$48 sps:$4 sm:$0xff]  }
  0xbb   : > { %950 = vmatpush1.bf16.msra.mxu0 %v2769_v31  ;;  %991 = vmatpush1.bf16.msra.mxu1 %v2770_v32  ;;  %v2858_v29 = vld [vmem:[#allocation5 + $0x268] ss:$48 sps:$4 sm:$0xff]   ;;  %v2863_v30 = vld [vmem:[#allocation5 + $0x2c4] ss:$48 sps:$4 sm:$0xff]   ;;  %v2866_v31 = vld [vmem:[#allocation5 + $0x2cc] ss:$48 sps:$4 sm:$0xff]  }
  0xbc   : > { %1017 = vmatprep.subr.bf16.mxu0 %v2773_v33  ;;  %1058 = vmatprep.subr.bf16.mxu1 %v2776_v34  ;;  %v2861_v32 = vld [vmem:[#allocation5 + $0x2c0] ss:$48 sps:$4 sm:$0xff]   ;;  %v2864_v33 = vld [vmem:[#allocation5 + $0x2c8] ss:$48 sps:$4 sm:$0xff]   ;;  %s292_s9 = scalar_lea.vmem [#allocation11], %s3390_s29  ;;  %s1999_s28 = scalar_lea.sflag [#allocation4], %s3390_s29 }
  0xbd   : > { %v1401_v34 = vld [vmem:[#allocation10 + $0x80] sm:$0xff]  ;;  %s2011_s30 = sshll.u32 %s292_s9, 4  ;;  %p3646_p5 = scmp.ne.s32.totalorder %s3638_s23, 0  ;;  %s3581_s30 = int_to_ptr.vmem [resolvable:$true] %s2011_s30 }
  0xbe   : > { %968 = vmatmul.mubr.bf16.vlgmr.msra.gmra.mrb[0].mxu0 %v3411_v35  ;;  %1009 = vmatmul.mubr.bf16.vlgmr.msra.gmra.mrb[0].mxu1 %v3411_v35  ;;  %s3057_s14 = scalar_lea.vmem %s3581_s30, 16  ;;  %s3143_s24 = smov [#allocation11]  }
  0xbf   : > { %1018 = vmatpush1.bf16.msra.mxu0 %v2771_v36  ;;  %1059 = vmatpush1.bf16.msra.mxu1 %v2774_v37  ;;  %v1402_v36 = vld [vmem:[#allocation10 + $0x88] sm:$0xff]  ;;  %v1433_v37 = vld [vmem:[#allocation10 + $0x180] sm:$0xff]  ;;  %p3058_p6 = scmp.ne.s32.totalorder %s3581_s30, %s3057_s14  ;;  %s3061_s10 = sshll.u32 %s3143_s24, 4  ;;  %s3062_s10 = int_to_ptr.vmem [resolvable:$false] %s3061_s10 }
  0xc0   : > { %1019 = vmatprep.subr.bf16.mxu0 %v2779_v38  ;;  %1060 = vmatprep.subr.bf16.mxu1 %v2782_v39  ;;  %v2439_v38 = vpack.c.bf16 %v1402_v36, %v1401_v34  ;;  %v1434_v39 = vld [vmem:[#allocation10 + $0x188] sm:$0xff]  ;;  %v1444_v34 = vld [vmem:[#allocation10 + $0x1d8] sm:$0xff]  ;;  %v1395_v36 = vld [vmem:[#allocation10 + $0x50] sm:$0xff]  ;;  %s3063_s15 = scalar_lea.vmem %s3062_s10, 32  ;;  %p3064_p12 = scmp.lt.s32.totalorder %s3581_s30, %s3062_s10 }
  0xc1   : > { %1049 = vmatprep.mubr.bf16.mxu0 %v3142_v0  ;;  %1090 = vmatprep.mubr.bf16.mxu1 %v3142_v0  ;;  %p3059_p7 = pnand %p3058_p6, %p3646_p5  ;;  %p3065_p3 = scmp.lt.s32.totalorder %s3063_s15, %s3057_s14 }
  0xc3   : > { %1020 = vmatpush1.bf16.msra.mxu0 %v2777_v40  ;;  %1061 = vmatpush1.bf16.msra.mxu1 %v2780_v41  ;;  %v1385_v40 = vld [vmem:[#allocation10] sm:$0xff]  ;;  %v1386_v41 = vld [vmem:[#allocation10 + $0x8] sm:$0xff]  ;;  %p3060_p9 = pneg %p3059_p7  ;;  %p3066_p13 = por %p3065_p3, %p3064_p12 }
  0xc4   : > { %1021 = vmatprep.subr.bf16.mxu0 %v2785_v42  ;;  %1062 = vmatprep.subr.bf16.mxu1 %v2788_v43  ;;  %v2471_v42 = vpack.c.bf16 %v1434_v39, %v1433_v37  ;;  %v2441_v43 = vpack.c.bf16 %v1386_v41, %v1385_v40  ;;  %v1396_v37 = vld [vmem:[#allocation10 + $0x58] sm:$0xff]  ;;  %v1427_v40 = vld [vmem:[#allocation10 + $0x150] sm:$0xff] }
  0xc5   : > { %v2461_v39 = vpack.c.bf16 %v1396_v37, %v1395_v36  ;;  %v1428_v41 = vld [vmem:[#allocation10 + $0x158] sm:$0xff]  ;;  %p3067_p0 = pnand %p3066_p13, %p3060_p9 }
  0xc7   : > { %1022 = vmatpush1.bf16.msra.mxu0 %v2783_v44  ;;  %1063 = vmatpush1.bf16.msra.mxu1 %v2786_v45  ;;  %v1417_v44 = vld [vmem:[#allocation10 + $0x100] sm:$0xff]  ;;  %v1418_v45 = vld [vmem:[#allocation10 + $0x108] sm:$0xff] }
  0xc8   : > { %1023 = vmatprep.subr.bf16.mxu0 %v2791_v46  ;;  %1064 = vmatprep.subr.bf16.mxu1 %v2794_v47  ;;  %v2473_v46 = vpack.c.bf16 %v1418_v45, %v1417_v44  ;;  %v1403_v47 = vld [vmem:[#allocation10 + $0x90] sm:$0xff]  ;;  %v1414_v44 = vld [vmem:[#allocation10 + $0xe8] sm:$0xff]  ;;  %v1445_v45 = vld [vmem:[#allocation10 + $0x1e0] sm:$0xff] }
  0xcb   : > { %1024 = vmatpush1.bf16.msra.mxu0 %v2789_v48  ;;  %1065 = vmatpush1.bf16.msra.mxu1 %v2792_v49  ;;  %v1404_v48 = vld [vmem:[#allocation10 + $0x98] sm:$0xff]  ;;  %v1435_v49 = vld [vmem:[#allocation10 + $0x190] sm:$0xff] }
  0xcc   : > { %1025 = vmatprep.subr.bf16.mxu0 %v2797_v50  ;;  %1066 = vmatprep.subr.bf16.mxu1 %v2800_v51  ;;  %v1436_v50 = vld [vmem:[#allocation10 + $0x198] sm:$0xff]  ;;  %v1387_v51 = vld [vmem:[#allocation10 + $0x10] sm:$0xff] }
  0xcf   : > { %1026 = vmatpush1.bf16.msra.mxu0 %v2795_v52  ;;  %1067 = vmatpush1.bf16.msra.mxu1 %v2798_v53  ;;  %v1388_v52 = vld [vmem:[#allocation10 + $0x18] sm:$0xff]  ;;  %v2475_v53 = vpack.c.bf16 %v1436_v50, %v1435_v49  ;;  %v1398_v49 = vld [vmem:[#allocation10 + $0x68] sm:$0xff] }
  0xd0   : > { %1027 = vmatprep.subr.bf16.mxu0 %v2803_v54  ;;  %1068 = vmatprep.subr.bf16.mxu1 %v2806_v55  ;;  %v2445_v54 = vpack.c.bf16 %v1388_v52, %v1387_v51  ;;  %v1419_v55 = vld [vmem:[#allocation10 + $0x110] sm:$0xff]  ;;  %v1429_v51 = vld [vmem:[#allocation10 + $0x160] sm:$0xff]  ;;  %v1430_v52 = vld [vmem:[#allocation10 + $0x168] sm:$0xff] }
  0xd3   : > { %1028 = vmatpush1.bf16.msra.mxu0 %v2801_v56  ;;  %1069 = vmatpush1.bf16.msra.mxu1 %v2804_v57  ;;  %v1420_v56 = vld [vmem:[#allocation10 + $0x118] sm:$0xff] }
  0xd4   : > { %1029 = vmatprep.subr.bf16.mxu0 %v2809_v58  ;;  %1070 = vmatprep.subr.bf16.mxu1 %v2812_v59  ;;  %v2477_v57 = vpack.c.bf16 %v1420_v56, %v1419_v55  ;;  %v1405_v58 = vld [vmem:[#allocation10 + $0xa0] sm:$0xff]  ;;  %v1406_v59 = vld [vmem:[#allocation10 + $0xa8] sm:$0xff]  ;;  %v1416_v55 = vld [vmem:[#allocation10 + $0xf8] sm:$0xff] }
  0xd5   : > { %v1447_v56 = vld [vmem:[#allocation10 + $0x1f0] sm:$0xff] }
  0xd7   : > { %1030 = vmatpush1.bf16.msra.mxu0 %v2807_v60  ;;  %1071 = vmatpush1.bf16.msra.mxu1 %v2810_v61  ;;  %v1437_v60 = vld [vmem:[#allocation10 + $0x1a0] sm:$0xff]  ;;  %v2447_v61 = vpack.c.bf16 %v1406_v59, %v1405_v58  ;;  %v1448_v58 = vld [vmem:[#allocation10 + $0x1f8] sm:$0xff]  ;;  %v1399_v59 = vld [vmem:[#allocation10 + $0x70] sm:$0xff] }
  0xd8   : > { %1031 = vmatprep.subr.bf16.mxu0 %v2815_v62  ;;  %1072 = vmatprep.subr.bf16.mxu1 %v2818_v63  ;;  %v1438_v62 = vld [vmem:[#allocation10 + $0x1a8] sm:$0xff]  ;;  %v1389_v63 = vld [vmem:[#allocation10 + $0x20] sm:$0xff] }
  0xdb   : > { %1032 = vmatpush1.bf16.msra.mxu0 %v2813_v1  ;;  %1073 = vmatpush1.bf16.msra.mxu1 %v2816_v2  ;;  %v1390_v1 = vld [vmem:[#allocation10 + $0x28] sm:$0xff]  ;;  %v2479_v2 = vpack.c.bf16 %v1438_v62, %v1437_v60  ;;  %v1400_v60 = vld [vmem:[#allocation10 + $0x78] sm:$0xff] }
  0xdc   : > { %1099 = vmatprep.subr.bf16.mxu0 %v2821_v3  ;;  %1140 = vmatprep.subr.bf16.mxu1 %v2824_v4  ;;  %v2449_v3 = vpack.c.bf16 %v1390_v1, %v1389_v63  ;;  %v1421_v4 = vld [vmem:[#allocation10 + $0x120] sm:$0xff]  ;;  %v2469_v62 = vpack.c.bf16 %v1400_v60, %v1399_v59  ;;  %v1431_v63 = vld [vmem:[#allocation10 + $0x170] sm:$0xff]  ;;  %v1432_v1 = vld [vmem:[#allocation10 + $0x178] sm:$0xff] }
  0xde   : > { %1050 = vmatmul.mubr.bf16.vlgmr.msra.gmra.mrb[4].mxu0 %v3411_v35  ;;  %1091 = vmatmul.mubr.bf16.vlgmr.msra.gmra.mrb[4].mxu1 %v3411_v35 }
  0xdf   : > { %1100 = vmatpush1.bf16.msra.mxu0 %v2819_v5  ;;  %1141 = vmatpush1.bf16.msra.mxu1 %v2822_v6  ;;  %v1422_v5 = vld [vmem:[#allocation10 + $0x128] sm:$0xff] }
  0xe0   : > { %1101 = vmatprep.subr.bf16.mxu0 %v2827_v7  ;;  %1142 = vmatprep.subr.bf16.mxu1 %v2830_v8  ;;  %v2481_v6 = vpack.c.bf16 %v1422_v5, %v1421_v4  ;;  %v1407_v7 = vld [vmem:[#allocation10 + $0xb0] sm:$0xff]  ;;  %v1408_v8 = vld [vmem:[#allocation10 + $0xb8] sm:$0xff]  ;;  %v1466_v4 = vld [vmem:[#allocation10 + $0x288] sm:$0xff] }
  0xe1   : > { %1131 = vmatprep.mubr.bf16.mxu0 %v3142_v0  ;;  %1172 = vmatprep.mubr.bf16.mxu1 %v3142_v0  ;;  %v2846_v0 = vld [vmem:[#allocation5 + $0x1a8] ss:$48 sps:$4 sm:$0xff]   ;;  %v1497_v5 = vld [vmem:[#allocation10 + $0x380] sm:$0xff] }
  0xe3   : > { %1102 = vmatpush1.bf16.msra.mxu0 %v2825_v9  ;;  %1143 = vmatpush1.bf16.msra.mxu1 %v2828_v10  ;;  %v1439_v9 = vld [vmem:[#allocation10 + $0x1b0] sm:$0xff]  ;;  %v2451_v10 = vpack.c.bf16 %v1408_v8, %v1407_v7  ;;  %v1498_v7 = vld [vmem:[#allocation10 + $0x388] sm:$0xff] }
  0xe4   : > { %1103 = vmatprep.subr.bf16.mxu0 %v2833_v11  ;;  %1144 = vmatprep.subr.bf16.mxu1 %v2836_v12  ;;  %v1440_v11 = vld [vmem:[#allocation10 + $0x1b8] sm:$0xff]  ;;  %v1391_v12 = vld [vmem:[#allocation10 + $0x30] sm:$0xff]  ;;  %v2535_v8 = vpack.c.bf16 %v1498_v7, %v1497_v5 }
  0xe7   : > { %1104 = vmatpush1.bf16.msra.mxu0 %v2831_v13  ;;  %1145 = vmatpush1.bf16.msra.mxu1 %v2834_v14  ;;  %v1392_v13 = vld [vmem:[#allocation10 + $0x38] sm:$0xff]  ;;  %v2483_v14 = vpack.c.bf16 %v1440_v11, %v1439_v9  ;;  %v395_v9 = vlaneseq }
  0xe8   : > { %1105 = vmatprep.subr.bf16.mxu0 %v2839_v15  ;;  %1146 = vmatprep.subr.bf16.mxu1 %v2842_v16  ;;  %v2453_v15 = vpack.c.bf16 %v1392_v13, %v1391_v12  ;;  %v1423_v16 = vld [vmem:[#allocation10 + $0x130] sm:$0xff] }
  0xe9   : > { %v391_v13 = vld [vmem:[#allocation7] sm:$0xff] }
  0xeb   : > { %1106 = vmatpush1.bf16.msra.mxu0 %v2837_v17  ;;  %1147 = vmatpush1.bf16.msra.mxu1 %v2840_v18  ;;  %v1424_v17 = vld [vmem:[#allocation10 + $0x138] sm:$0xff] }
  0xec   : > { %1107 = vmatprep.subr.bf16.mxu0 %v2845_v19  ;;  %1148 = vmatprep.subr.bf16.mxu1 %v2848_v20  ;;  %v2485_v18 = vpack.c.bf16 %v1424_v17, %v1423_v16  ;;  %v1409_v19 = vld [vmem:[#allocation10 + $0xc0] sm:$0xff]  ;;  %v1410_v20 = vld [vmem:[#allocation10 + $0xc8] sm:$0xff] }
  0xef   : > { %1108 = vmatpush1.bf16.msra.mxu0 %v2843_v21  ;;  %1149 = vmatpush1.bf16.msra.mxu1 %v2846_v0  ;;  %v1441_v21 = vld [vmem:[#allocation10 + $0x1c0] sm:$0xff]  ;;  %v2455_v0 = vpack.c.bf16 %v1410_v20, %v1409_v19 }
  0xf0   : > { %1109 = vmatprep.subr.bf16.mxu0 %v2851_v22  ;;  %1150 = vmatprep.subr.bf16.mxu1 %v2854_v23  ;;  %v1442_v22 = vld [vmem:[#allocation10 + $0x1c8] sm:$0xff]  ;;  %v1393_v23 = vld [vmem:[#allocation10 + $0x40] sm:$0xff] }
  0xf3   : > { %1110 = vmatpush1.bf16.msra.mxu0 %v2849_v24  ;;  %1151 = vmatpush1.bf16.msra.mxu1 %v2852_v25  ;;  %v2487_v24 = vpack.c.bf16 %v1442_v22, %v1441_v21  ;;  %v1394_v25 = vld [vmem:[#allocation10 + $0x48] sm:$0xff] }
  0xf4   : > { %1111 = vmatprep.subr.bf16.mxu0 %v2857_v26  ;;  %1152 = vmatprep.subr.bf16.mxu1 %v2860_v27  ;;  %v1425_v26 = vld [vmem:[#allocation10 + $0x140] sm:$0xff]  ;;  %v2457_v27 = vpack.c.bf16 %v1394_v25, %v1393_v23 }
  0xf7   : > { %1112 = vmatpush1.bf16.msra.mxu0 %v2855_v28  ;;  %1153 = vmatpush1.bf16.msra.mxu1 %v2858_v29  ;;  %v1426_v28 = vld [vmem:[#allocation10 + $0x148] sm:$0xff] }
  0xf8   : > { %1113 = vmatprep.subr.bf16.mxu0 %v2863_v30  ;;  %1154 = vmatprep.subr.bf16.mxu1 %v2866_v31  ;;  %v2489_v29 = vpack.c.bf16 %v1426_v28, %v1425_v26  ;;  %v1411_v30 = vld [vmem:[#allocation10 + $0xd0] sm:$0xff]  ;;  %v1412_v31 = vld [vmem:[#allocation10 + $0xd8] sm:$0xff] }
  0xfb   : > { %1114 = vmatpush1.bf16.msra.mxu0 %v2861_v32  ;;  %1155 = vmatpush1.bf16.msra.mxu1 %v2864_v33  ;;  %v1443_v32 = vld [vmem:[#allocation10 + $0x1d0] sm:$0xff]  ;;  %v2459_v33 = vpack.c.bf16 %v1412_v31, %v1411_v30 }
  0xfc   : > { %2440 = vmatprep.subr.bf16.mxu0 %v2439_v38  ;;  %2472 = vmatprep.subr.bf16.mxu1 %v2471_v42  ;;  %v2491_v38 = vpack.c.bf16 %v1444_v34, %v1443_v32  ;;  %v2493_v42 = vpack.c.bf16 %v1428_v41, %v1427_v40 }
  0xfe   : > { %1132 = vmatmul.mubr.bf16.vlgmr.msra.gmra.mrb[8].mxu0 %v3411_v35  ;;  %1173 = vmatmul.mubr.bf16.vlgmr.msra.gmra.mrb[8].mxu1 %v3411_v35  ;;  %v2443_v35 = vpack.c.bf16 %v1404_v48, %v1403_v47  ;;  %v1446_v47 = vld [vmem:[#allocation10 + $0x1e8] sm:$0xff]  ;;  %v1397_v48 = vld [vmem:[#allocation10 + $0x60] sm:$0xff] }
  0xff   : > { %2442 = vmatpush3.bf16.msra.mxu0 %v2441_v43  ;;  %2474 = vmatpush3.bf16.msra.mxu1 %v2473_v46  ;;  %v1413_v43 = vld [vmem:[#allocation10 + $0xe0] sm:$0xff]  ;;  %v2465_v50 = vpack.c.bf16 %v1398_v49, %v1397_v48 }
 0x100   : > { %2444 = vmatprep.subr.bf16.mxu0 %v2443_v35  ;;  %2476 = vmatprep.subr.bf16.mxu1 %v2475_v53  ;;  %v2463_v46 = vpack.c.bf16 %v1414_v44, %v1413_v43  ;;  %v2495_v35 = vpack.c.bf16 %v1446_v47, %v1445_v45  ;;  %v2497_v53 = vpack.c.bf16 %v1430_v52, %v1429_v51 }
 0x103   : > { %2446 = vmatpush3.bf16.msra.mxu0 %v2445_v54  ;;  %2478 = vmatpush3.bf16.msra.mxu1 %v2477_v57  ;;  %v1415_v54 = vld [vmem:[#allocation10 + $0xf0] sm:$0xff] }
 0x104   : > { %2448 = vmatprep.subr.bf16.mxu0 %v2447_v61  ;;  %2480 = vmatprep.subr.bf16.mxu1 %v2479_v2  ;;  %v2467_v57 = vpack.c.bf16 %v1416_v55, %v1415_v54  ;;  %v2499_v61 = vpack.c.bf16 %v1448_v58, %v1447_v56  ;;  %v2501_v2 = vpack.c.bf16 %v1432_v1, %v1431_v63 }
 0x107   : > { %2450 = vmatpush3.bf16.msra.mxu0 %v2449_v3  ;;  %2482 = vmatpush3.bf16.msra.mxu1 %v2481_v6  ;;  %v1465_v3 = vld [vmem:[#allocation10 + $0x280] sm:$0xff] }
 0x108   : > { %2452 = vmatprep.subr.bf16.mxu0 %v2451_v10  ;;  %2484 = vmatprep.subr.bf16.mxu1 %v2483_v14  ;;  %v2503_v6 = vpack.c.bf16 %v1466_v4, %v1465_v3  ;;  %v3423_v10 = vshrl.u32 %v395_v9, 7 }
 0x10a   : > { %v397_v11 = vsub.s32 0, %v3423_v10  ;;  %v405_v12 = vsub.s32 2, %v3423_v10  ;;  %v401_v14 = vsub.s32 1, %v3423_v10  ;;  %v413_v55 = vsub.s32 4, %v3423_v10 }
 0x10b   : > { %2454 = vmatpush3.bf16.msra.mxu0 %v2453_v15  ;;  %2486 = vmatpush3.bf16.msra.mxu1 %v2485_v18  ;;  %v409_v15 = vsub.s32 3, %v3423_v10  ;;  %v421_v56 = vsub.s32 6, %v3423_v10  ;;  %v425_v58 = vsub.s32 7, %v3423_v10 }
 0x10c   : > { %2456 = vmatprep.subr.bf16.mxu0 %v2455_v0  ;;  %2488 = vmatprep.subr.bf16.mxu1 %v2487_v24  ;;  %v398_v16 = vrot.slane %v391_v13, %v397_v11  ;;  %v406_v17 = vrot.slane %v391_v13, %v405_v12  ;;  %v402_v18 = vrot.slane %v391_v13, %v401_v14 }
 0x10d   : > { %v410_v19 = vrot.slane %v391_v13, %v409_v15  ;;  %v414_v59 = vrot.slane %v391_v13, %v413_v55  ;;  %v422_v60 = vrot.slane %v391_v13, %v421_v56 }
 0x10f   : > { %2458 = vmatpush3.bf16.msra.mxu0 %v2457_v27  ;;  %2490 = vmatpush3.bf16.msra.mxu1 %v2489_v29 }
 0x110   : > { %2460 = vmatprep.subr.bf16.mxu0 %v2459_v33  ;;  %2492 = vmatprep.subr.bf16.mxu1 %v2491_v38 }
 0x113   : > { %2462 = vmatpush3.bf16.msra.mxu0 %v2461_v39  ;;  %2494 = vmatpush3.bf16.msra.mxu1 %v2493_v42 }
 0x114   : > { %2464 = vmatprep.subr.bf16.mxu0 %v2463_v46  ;;  %2496 = vmatprep.subr.bf16.mxu1 %v2495_v35 }
 0x117   : > { %2466 = vmatpush3.bf16.msra.mxu0 %v2465_v50  ;;  %2498 = vmatpush3.bf16.msra.mxu1 %v2497_v53 }
 0x118   : > { %2468 = vmatprep.subr.bf16.mxu0 %v2467_v57  ;;  %2500 = vmatprep.subr.bf16.mxu1 %v2499_v61  ;;  %v417_v57 = vsub.s32 5, %v3423_v10 }
 0x11a   : > { %v418_v61 = vrot.slane %v391_v13, %v417_v57 }
 0x11b   : > { %2470 = vmatpush3.bf16.msra.mxu0 %v2469_v62  ;;  %2502 = vmatpush3.bf16.msra.mxu1 %v2501_v2  ;;  %v426_v62 = vrot.slane %v391_v13, %v425_v58 }
 0x11c   : > { %2504 = vmatprep.subr.bf16.mxu0 %v2503_v6  ;;  %2536 = vmatprep.subr.bf16.mxu1 %v2535_v8 }
 0x191   : > { %v969_v20 = vpop.f32.mrb[0].mxu0  ;;  %v1010_v21 = vpop.f32.mrb[0].mxu1 }
 0x192   : > { %v3437_v0 = vadd.f32 %v969_v20, %v398_v16  ;;  %v3439_v22 = vadd.f32 %v1010_v21, %v406_v17  ;;  %v971_v23 = vpop.f32.mrb[1].mxu0  ;;  %v1012_v24 = vpop.f32.mrb[1].mxu1 }
 0x193   : > { %v3441_v25 = vadd.f32 %v971_v23, %v402_v18  ;;  %v3443_v26 = vadd.f32 %v1012_v24, %v410_v19  ;;  %v973_v27 = vpop.f32.mrb[2].mxu0  ;;  %v1014_v28 = vpop.f32.mrb[2].mxu1  ;;  %v1289_v24 = vld [vmem:[#allocation8] sm:$0xff] }
 0x194   : > { %v1181_v29 = vmin.f32 %v3437_v0, 20.0  ;;  %v1183_v30 = vmin.f32 %v3439_v22, 20.0  ;;  %v974_v31 = vpop.f32.mrb[3].mxu0  ;;  %v1015_v32 = vpop.f32.mrb[3].mxu1 }
 0x195   : > { %v1182_v33 = vmin.f32 %v3441_v25, 20.0  ;;  %v1184_v34 = vmin.f32 %v3443_v26, 20.0  ;;  %v1291_v32 = vld [vmem:[#allocation8 + $0x10] sm:$0xff] }
 0x196   : > { %v1193_v36 = vmul.f32 1.442695, %v1181_v29  ;;  %v1197_v37 = vmul.f32 1.442695, %v1183_v30 }
 0x197   : > { %v1195_v38 = vmul.f32 1.442695, %v1182_v33  ;;  %v1199_v39 = vmul.f32 1.442695, %v1184_v34 }
 0x198   : > { %2867 = vpow2.f32 %v1193_v36 }
 0x199   : > { %2869 = vpow2.f32 %v1197_v37 }
 0x19a   : > { %2871 = vpow2.f32 %v1195_v38  ;;  %v1290_v38 = vld [vmem:[#allocation8 + $0x8] sm:$0xff] }
 0x19b   : > { %2873 = vpow2.f32 %v1199_v39 }
 0x1a2   : > { %v2868_v40 = vpop.eup %2867 }
 0x1a3   : > { %v2870_v41 = vpop.eup %2869  ;;  %v1217_v42 = vadd.f32 2.0, %v2868_v40 }
 0x1a4   : > { %v2872_v43 = vpop.eup %2871  ;;  %v1219_v44 = vadd.f32 2.0, %v2870_v41 }
 0x1a5   : > { %v2874_v45 = vpop.eup %2873  ;;  %v1229_v46 = vmul.f32 %v2868_v40, %v1217_v42  ;;  %v1218_v47 = vadd.f32 2.0, %v2872_v43 }
 0x1a6   : > { %v1231_v48 = vmul.f32 %v2870_v41, %v1219_v44  ;;  %v1220_v49 = vadd.f32 2.0, %v2874_v45  ;;  %v1292_v44 = vld [vmem:[#allocation8 + $0x18] sm:$0xff] }
 0x1a7   : > { %v1241_v35 = vadd.f32 2.0, %v1229_v46  ;;  %v1230_v50 = vmul.f32 %v2872_v43, %v1218_v47 }
 0x1a8   : > { %v1243_v51 = vadd.f32 2.0, %v1231_v48  ;;  %v1232_v52 = vmul.f32 %v2874_v45, %v1220_v49 }
 0x1a9   : > { %2875 = vrcp.f32 %v1241_v35  ;;  %v1242_v53 = vadd.f32 2.0, %v1230_v50 }
 0x1aa   : > { %2877 = vrcp.f32 %v1243_v51  ;;  %v1244_v54 = vadd.f32 2.0, %v1232_v52 }
 0x1ab   : > { %2879 = vrcp.f32 %v1242_v53 }
 0x1ac   : > { %2881 = vrcp.f32 %v1244_v54 }
 0x1b1   : > { %v1051_v63 = vpop.f32.mrb[4].mxu0  ;;  %v1092_v1 = vpop.f32.mrb[4].mxu1 }
 0x1b2   : > { %v3453_v2 = vadd.f32 %v1051_v63, %v414_v59  ;;  %v3455_v3 = vadd.f32 %v1092_v1, %v422_v60  ;;  %v1053_v4 = vpop.f32.mrb[5].mxu0  ;;  %v1094_v5 = vpop.f32.mrb[5].mxu1  ;;  %v1450_v59 = vld [vmem:[#allocation10 + $0x208] sm:$0xff] }
 0x1b3   : > { %v2876_v6 = vpop.eup %2875  ;;  %v3457_v7 = vadd.f32 %v1053_v4, %v418_v61  ;;  %v3459_v8 = vadd.f32 %v1094_v5, %v426_v62  ;;  %v1055_v9 = vpop.f32.mrb[6].mxu0  ;;  %v1481_v62 = vld [vmem:[#allocation10 + $0x300] sm:$0xff]  ;;  %v1482_v63 = vld [vmem:[#allocation10 + $0x308] sm:$0xff] }
 0x1b4   : > { %v1096_v16 = vpop.f32.mrb[6].mxu1  ;;  %v2878_v17 = vpop.eup %2877  ;;  %v1265_v18 = vmul.f32 %v2876_v6, %v1229_v46  ;;  %v1185_v19 = vmin.f32 %v3453_v2, 20.0  ;;  %v1187_v13 = vmin.f32 %v3455_v3, 20.0  ;;  %v1467_v9 = vld [vmem:[#allocation10 + $0x290] sm:$0xff] }
 0x1b5   : > { %v1056_v20 = vpop.f32.mrb[7].mxu0  ;;  %v1097_v21 = vpop.f32.mrb[7].mxu1  ;;  %v1267_v27 = vmul.f32 %v2878_v17, %v1231_v48  ;;  %v1186_v28 = vmin.f32 %v3457_v7, 20.0  ;;  %v1188_v29 = vmin.f32 %v3459_v8, 20.0  ;;  %v1468_v16 = vld [vmem:[#allocation10 + $0x298] sm:$0xff] }
 0x1b6   : > { %v2880_v23 = vpop.eup %2879  ;;  %v1277_v31 = vmul.f32 %v1265_v18, %v3437_v0  ;;  %v1201_v34 = vmul.f32 1.442695, %v1185_v19  ;;  %v1205_v36 = vmul.f32 1.442695, %v1187_v13 }
 0x1b7   : > { %v2882_v30 = vpop.eup %2881  ;;  %v1266_v33 = vmul.f32 %v2880_v23, %v1230_v50  ;;  %v1279_v37 = vmul.f32 %v1267_v27, %v3439_v22  ;;  %v1203_v40 = vmul.f32 1.442695, %v1186_v28  ;;  %v1207_v41 = vmul.f32 1.442695, %v1188_v29  ;;  %v1499_v29 = vld [vmem:[#allocation10 + $0x390] sm:$0xff] }
 0x1b8   : > { %v1268_v39 = vmul.f32 %v2882_v30, %v1232_v52  ;;  %v1301_v42 = vadd.f32 %v1289_v24, %v1277_v31  ;;  %2883 = vpow2.f32 %v1201_v34  ;;  %v2537_v28 = vpack.c.bf16 %v1482_v63, %v1481_v62  ;;  %v1500_v30 = vld [vmem:[#allocation10 + $0x398] sm:$0xff]  ;;  %v3481_v62 = vld [vmem:[#allocation10 + $0x230] sm:$0xff] }
 0x1b9   : > { %v1278_v43 = vmul.f32 %v1266_v33, %v3441_v25  ;;  %v1303_v45 = vadd.f32 %v1291_v32, %v1279_v37  ;;  %2885 = vpow2.f32 %v1205_v36  ;;  %v2507_v34 = vpack.c.bf16 %v1468_v16, %v1467_v9  ;;  %v3483_v63 = vld [vmem:[#allocation10 + $0x238] sm:$0xff]  ;;  %v3489_v9 = vld [vmem:[#allocation10 + $0x330] sm:$0xff] }
 0x1ba   : > { %v1280_v46 = vmul.f32 %v1268_v39, %v3443_v26  ;;  %v1313_v0 = vrot.slane %v1301_v42, 4  ;;  %2887 = vpow2.f32 %v1203_v40  ;;  %v1449_v26 = vld [vmem:[#allocation10 + $0x200] sm:$0xff]  ;;  %v1451_v40 = vld [vmem:[#allocation10 + $0x210] sm:$0xff]  ;;  %v3491_v16 = vld [vmem:[#allocation10 + $0x338] sm:$0xff] }
 0x1bb   : > { %v1302_v47 = vadd.f32 %v1290_v38, %v1278_v43  ;;  %v1325_v48 = vrot.slane %v1303_v45, 4  ;;  %2889 = vpow2.f32 %v1207_v41  ;;  %v2505_v20 = vpack.c.bf16 %v1450_v59, %v1449_v26  ;;  %v1452_v41 = vld [vmem:[#allocation10 + $0x218] sm:$0xff]  ;;  %v1471_v26 = vld [vmem:[#allocation10 + $0x2b0] sm:$0xff] }
 0x1bc   : > { %v1304_v49 = vadd.f32 %v1292_v44, %v1280_v46  ;;  %v1314_v22 = vmax.f32 %v1301_v42, %v1313_v0  ;;  %v1483_v42 = vld [vmem:[#allocation10 + $0x310] sm:$0xff]  ;;  %v2539_v46 = vpack.c.bf16 %v1500_v30, %v1499_v29  ;;  %v1484_v0 = vld [vmem:[#allocation10 + $0x318] sm:$0xff]  ;;  %v2549_v10 = vpack.c.bf16 %v3491_v16, %v3489_v9  ;;  %v3513_v30 = vld [vmem:[#allocation10 + $0x348] sm:$0xff] }
 0x1bd   : > { %v1319_v35 = vrot.slane %v1302_v47, 4  ;;  %v1326_v50 = vmax.f32 %v1303_v45, %v1325_v48  ;;  %v1470_v48 = vld [vmem:[#allocation10 + $0x2a8] sm:$0xff]  ;;  %v1472_v59 = vld [vmem:[#allocation10 + $0x2b8] sm:$0xff] }
 0x1be   : > { %v1331_v51 = vrot.slane %v1304_v49, 4  ;;  %v1315_v52 = vrot.slane %v1314_v22, 2 }
 0x1bf   : > { %v1320_v53 = vmax.f32 %v1302_v47, %v1319_v35  ;;  %v1327_v54 = vrot.slane %v1326_v50, 2  ;;  %v1469_v47 = vld [vmem:[#allocation10 + $0x2a0] sm:$0xff]  ;;  %v1502_v35 = vld [vmem:[#allocation10 + $0x3a8] sm:$0xff] }
 0x1c0   : > { %v1332_v25 = vmax.f32 %v1304_v49, %v1331_v51  ;;  %v1316_v55 = vmax.f32 %v1314_v22, %v1315_v52  ;;  %v1501_v22 = vld [vmem:[#allocation10 + $0x3a0] sm:$0xff]  ;;  %v2509_v51 = vpack.c.bf16 %v1452_v41, %v1451_v40  ;;  %v3522_v40 = vld [vmem:[#allocation10 + $0x2d0] sm:$0xff]  ;;  %v3524_v41 = vld [vmem:[#allocation10 + $0x2d8] sm:$0xff] }
 0x1c1   : > { %v1321_v56 = vrot.slane %v1320_v53, 2  ;;  %v1328_v57 = vmax.f32 %v1326_v50, %v1327_v54  ;;  %v1453_v52 = vld [vmem:[#allocation10 + $0x220] sm:$0xff]  ;;  %v2541_v54 = vpack.c.bf16 %v1484_v0, %v1483_v42 }
 0x1c2   : > { %v1333_v58 = vrot.slane %v1332_v25, 2  ;;  %v2884_v60 = vpop.eup %2883  ;;  %v1317_v6 = vrot.slane %v1316_v55, 1 }
 0x1c3   : > { %v1322_v61 = vmax.f32 %v1320_v53, %v1321_v56  ;;  %v2886_v1 = vpop.eup %2885  ;;  %v1221_v4 = vadd.f32 2.0, %v2884_v60  ;;  %v1329_v13 = vrot.slane %v1328_v57, 1  ;;  %v1454_v53 = vld [vmem:[#allocation10 + $0x228] sm:$0xff]  ;;  %v1485_v56 = vld [vmem:[#allocation10 + $0x320] sm:$0xff] }
 0x1c4   : > { %v1334_v5 = vmax.f32 %v1332_v25, %v1333_v58  ;;  %v2888_v17 = vpop.eup %2887  ;;  %v1223_v18 = vadd.f32 2.0, %v2886_v1  ;;  %v1318_v39 = vmax.f32 %v1316_v55, %v1317_v6  ;;  %v2511_v25 = vpack.c.bf16 %v1470_v48, %v1469_v47  ;;  %v392_v55 = vld [vmem:[#allocation7 + $0x8] sm:$0xf] }
 0x1c5   : > { %v1323_v19 = vrot.slane %v1322_v61, 1  ;;  %v2890_v21 = vpop.eup %2889  ;;  %v3469_v23 = vmul.f32 %v2884_v60, %v1221_v4  ;;  %v1222_v24 = vadd.f32 2.0, %v2888_v17  ;;  %v1330_v45 = vmax.f32 %v1328_v57, %v1329_v13  ;;  %v1486_v57 = vld [vmem:[#allocation10 + $0x328] sm:$0xff]  ;;  %v1503_v60 = vld [vmem:[#allocation10 + $0x3b0] sm:$0xff] }
 0x1c6   : > { %v1335_v27 = vrot.slane %v1334_v5, 1  ;;  %v3471_v31 = vmul.f32 %v2886_v1, %v1223_v18  ;;  %v1224_v32 = vadd.f32 2.0, %v2890_v21  ;;  %v2543_v58 = vpack.c.bf16 %v1502_v35, %v1501_v22  ;;  %v1474_v13 = vld [vmem:[#allocation10 + $0x2c8] sm:$0xff]  ;;  %v1293_v22 = vld [vmem:[#allocation8 + $0x20] sm:$0xff]  ;;  %v1295_v35 = vld [vmem:[#allocation8 + $0x30] sm:$0xff] }
 0x1c7   : > { %v1324_v33 = vmax.f32 %v1322_v61, %v1323_v19  ;;  %v1245_v36 = vadd.f32 2.0, %v3469_v23  ;;  %v3474_v37 = vmul.f32 %v2888_v17, %v1222_v24  ;;  %v1504_v61 = vld [vmem:[#allocation10 + $0x3b8] sm:$0xff]  ;;  %v430_v1 = vrot.slane %v392_v55, %v397_v11  ;;  %v3493_v17 = vld [vmem:[#allocation10 + $0x2c0] sm:$0xff] }
 0x1c8   : > { %v1336_v38 = vmax.f32 %v1334_v5, %v1335_v27  ;;  %v1247_v43 = vadd.f32 2.0, %v3471_v31  ;;  %v3477_v44 = vmul.f32 %v2890_v21, %v1224_v32  ;;  %v438_v4 = vrot.slane %v392_v55, %v405_v12  ;;  %v3501_v12 = vld [vmem:[#allocation10 + $0x3c8] sm:$0xff]  ;;  %v3503_v24 = vld [vmem:[#allocation10 + $0x240] sm:$0xff] }
 0x1c9   : > { %1641 = vmatprep.mubr.f32.mxu0 %v1324_v33  ;;  %2891 = vrcp.f32 %v1245_v36  ;;  %v1246_v49 = vadd.f32 2.0, %v3474_v37  ;;  %v2513_v5 = vpack.c.bf16 %v1454_v53, %v1453_v52  ;;  %v2545_v6 = vpack.c.bf16 %v1486_v57, %v1485_v56  ;;  %v3505_v27 = vld [vmem:[#allocation10 + $0x248] sm:$0xff] }
 0x1ca   : > { %1711 = vmatprep.mubr.f32.mxu1 %v1336_v38  ;;  %1642 = vmatmul.mubr.f32.vlgmr.msra.gmra.mrb[12].mxu0 %v1318_v39  ;;  %2893 = vrcp.f32 %v1247_v43  ;;  %v1248_v50 = vadd.f32 2.0, %v3477_v44  ;;  %v434_v18 = vrot.slane %v392_v55, %v401_v14  ;;  %v442_v19 = vrot.slane %v392_v55, %v409_v15  ;;  %v3511_v15 = vld [vmem:[#allocation10 + $0x340] sm:$0xff]  ;;  %v1294_v56 = vld [vmem:[#allocation8 + $0x28] sm:$0xff] }
 0x1cb   : > { %1712 = vmatmul.mubr.f32.vlgmr.msra.gmra.mrb[12].mxu1 %v1330_v45  ;;  %2506 = vmatpush3.bf16.msra.mxu0 %v2505_v20  ;;  %2895 = vrcp.f32 %v1246_v49  ;;  %v2515_v11 = vpack.c.bf16 %v1472_v59, %v1471_v26  ;;  %v3499_v20 = vld [vmem:[#allocation10 + $0x3c0] sm:$0xff]  ;;  %v2547_v21 = vpack.c.bf16 %v1504_v61, %v1503_v60  ;;  %v2517_v14 = vpack.c.bf16 %v3483_v63, %v3481_v62  ;;  %v1507_v26 = vld [vmem:[#allocation10 + $0x3d0] sm:$0xff]  ;;  %v1508_v59 = vld [vmem:[#allocation10 + $0x3d8] sm:$0xff] }
 0x1cc   : > { %2538 = vmatpush3.bf16.msra.mxu1 %v2537_v28  ;;  %2508 = vmatprep.subr.bf16.mxu0 %v2507_v34  ;;  %2897 = vrcp.f32 %v1248_v50  ;;  %v2519_v38 = vpack.c.bf16 %v1474_v13, %v3493_v17  ;;  %v2551_v39 = vpack.c.bf16 %v3501_v12, %v3499_v20  ;;  %v2521_v47 = vpack.c.bf16 %v3505_v27, %v3503_v24  ;;  %v1491_v17 = vld [vmem:[#allocation10 + $0x350] sm:$0xff]  ;;  %v1477_v13 = vld [vmem:[#allocation10 + $0x2e0] sm:$0xff]  ;;  %v1478_v20 = vld [vmem:[#allocation10 + $0x2e8] sm:$0xff] }
 0x1cd   : > { %2540 = vmatprep.subr.bf16.mxu1 %v2539_v46  ;;  %v1510_v24 = vld [vmem:[#allocation10 + $0x3e8] sm:$0xff] }
 0x1cf   : > { %2510 = vmatpush3.bf16.msra.mxu0 %v2509_v51 }
 0x1d0   : > { %2542 = vmatpush3.bf16.msra.mxu1 %v2541_v54  ;;  %2512 = vmatprep.subr.bf16.mxu0 %v2511_v25  ;;  %v2553_v54 = vpack.c.bf16 %v3513_v30, %v3511_v15  ;;  %v1461_v15 = vld [vmem:[#allocation10 + $0x260] sm:$0xff]  ;;  %v1462_v30 = vld [vmem:[#allocation10 + $0x268] sm:$0xff] }
 0x1d1   : > { %2544 = vmatprep.subr.bf16.mxu1 %v2543_v58  ;;  %v1133_v28 = vpop.f32.mrb[8].mxu0  ;;  %v1174_v29 = vpop.f32.mrb[8].mxu1  ;;  %v2523_v58 = vpack.c.bf16 %v3524_v41, %v3522_v40  ;;  %v1479_v40 = vld [vmem:[#allocation10 + $0x2f0] sm:$0xff]  ;;  %v1480_v41 = vld [vmem:[#allocation10 + $0x2f8] sm:$0xff] }
 0x1d2   : > { %v3515_v32 = vadd.f32 %v1133_v28, %v430_v1  ;;  %v3517_v33 = vadd.f32 %v1174_v29, %v438_v4  ;;  %v1135_v34 = vpop.f32.mrb[9].mxu0  ;;  %v1176_v36 = vpop.f32.mrb[9].mxu1  ;;  %v1459_v4 = vld [vmem:[#allocation10 + $0x250] sm:$0xff] }
 0x1d3   : > { %2514 = vmatpush3.bf16.msra.mxu0 %v2513_v5  ;;  %v2892_v42 = vpop.eup %2891  ;;  %v3526_v43 = vadd.f32 %v1135_v34, %v434_v18  ;;  %v3528_v45 = vadd.f32 %v1176_v36, %v442_v19  ;;  %v1137_v46 = vpop.f32.mrb[10].mxu0  ;;  %v1492_v18 = vld [vmem:[#allocation10 + $0x358] sm:$0xff]  ;;  %v1493_v34 = vld [vmem:[#allocation10 + $0x360] sm:$0xff] }
 0x1d4   : > { %2546 = vmatpush3.bf16.msra.mxu1 %v2545_v6  ;;  %v1178_v0 = vpop.f32.mrb[10].mxu1  ;;  %2516 = vmatprep.subr.bf16.mxu0 %v2515_v11  ;;  %v2894_v48 = vpop.eup %2893  ;;  %v1269_v49 = vmul.f32 %v2892_v42, %v3469_v23  ;;  %v1189_v50 = vmin.f32 %v3515_v32, 20.0  ;;  %v1191_v51 = vmin.f32 %v3517_v33, 20.0  ;;  %v1296_v11 = vld [vmem:[#allocation8 + $0x38] sm:$0xff]  ;;  %v2557_v29 = vpack.c.bf16 %v1492_v18, %v1491_v17  ;;  %v1546_v17 = vld [vmem:[#allocation10 + $0x508] sm:$0xff] }
 0x1d5   : > { %v1138_v52 = vpop.f32.mrb[11].mxu0  ;;  %v1179_v53 = vpop.f32.mrb[11].mxu1  ;;  %2548 = vmatprep.subr.bf16.mxu1 %v2547_v21  ;;  %v1271_v55 = vmul.f32 %v2894_v48, %v3471_v31  ;;  %v1190_v57 = vmin.f32 %v3526_v43, 20.0  ;;  %v1192_v23 = vmin.f32 %v3528_v45, 20.0  ;;  %v1460_v31 = vld [vmem:[#allocation10 + $0x258] sm:$0xff]  ;;  %v1509_v21 = vld [vmem:[#allocation10 + $0x3e0] sm:$0xff] }
 0x1d6   : > { %v2896_v25 = vpop.eup %2895  ;;  %v1281_v61 = vmul.f32 %v1269_v49, %v3453_v2  ;;  %v1209_v63 = vmul.f32 1.442695, %v1189_v50  ;;  %v1213_v1 = vmul.f32 1.442695, %v1191_v51  ;;  %v1511_v0 = vld [vmem:[#allocation10 + $0x3f0] sm:$0xff]  ;;  %v1464_v50 = vld [vmem:[#allocation10 + $0x278] sm:$0xff] }
 0x1d7   : > { %v2898_v60 = vpop.eup %2897  ;;  %v1270_v62 = vmul.f32 %v2896_v25, %v3474_v37  ;;  %2518 = vmatpush3.bf16.msra.mxu0 %v2517_v14  ;;  %v1283_v5 = vmul.f32 %v1271_v55, %v3455_v3  ;;  %v1211_v9 = vmul.f32 1.442695, %v1190_v57  ;;  %v1215_v16 = vmul.f32 1.442695, %v1192_v23  ;;  %v1495_v51 = vld [vmem:[#allocation10 + $0x370] sm:$0xff]  ;;  %v1496_v55 = vld [vmem:[#allocation10 + $0x378] sm:$0xff] }
 0x1d8   : > { %v1272_v6 = vmul.f32 %v2898_v60, %v3477_v44  ;;  %2550 = vmatpush3.bf16.msra.mxu1 %v2549_v10  ;;  %2520 = vmatprep.subr.bf16.mxu0 %v2519_v38  ;;  %v1305_v19 = vadd.f32 %v1293_v22, %v1281_v61  ;;  %2899 = vpow2.f32 %v1209_v63  ;;  %v2555_v37 = vpack.c.bf16 %v1508_v59, %v1507_v26  ;;  %v1530_v57 = vld [vmem:[#allocation10 + $0x488] sm:$0xff]  ;;  %v1561_v59 = vld [vmem:[#allocation10 + $0x580] sm:$0xff] }
 0x1d9   : > { %v1282_v2 = vmul.f32 %v1270_v62, %v3457_v7  ;;  %2552 = vmatprep.subr.bf16.mxu1 %v2551_v39  ;;  %v1307_v12 = vadd.f32 %v1295_v35, %v1283_v5  ;;  %2901 = vpow2.f32 %v1213_v1  ;;  %v2525_v44 = vpack.c.bf16 %v1460_v31, %v1459_v4  ;;  %v1494_v39 = vld [vmem:[#allocation10 + $0x368] sm:$0xff]  ;;  %v1463_v35 = vld [vmem:[#allocation10 + $0x270] sm:$0xff]  ;;  %v3548_v63 = vld [vmem:[#allocation10 + $0x400] sm:$0xff] }
 0x1da   : > { %v1284_v3 = vmul.f32 %v1272_v6, %v3459_v8  ;;  %v1337_v27 = vrot.slane %v1305_v19, 4  ;;  %2903 = vpow2.f32 %v1211_v9  ;;  %v2527_v10 = vpack.c.bf16 %v1478_v20, %v1477_v13  ;;  %v1562_v60 = vld [vmem:[#allocation10 + $0x588] sm:$0xff]  ;;  %v1531_v13 = vld [vmem:[#allocation10 + $0x490] sm:$0xff]  ;;  %v1532_v20 = vld [vmem:[#allocation10 + $0x498] sm:$0xff] }
 0x1db   : > { %v1306_v28 = vadd.f32 %v1294_v56, %v1282_v2  ;;  %2522 = vmatpush3.bf16.msra.mxu0 %v2521_v47  ;;  %v1349_v14 = vrot.slane %v1307_v12, 4  ;;  %2905 = vpow2.f32 %v1215_v16  ;;  %v2559_v38 = vpack.c.bf16 %v1510_v24, %v1509_v21  ;;  %v1512_v47 = vld [vmem:[#allocation10 + $0x3f8] sm:$0xff]  ;;  %v1529_v56 = vld [vmem:[#allocation10 + $0x480] sm:$0xff]  ;;  %v3550_v1 = vld [vmem:[#allocation10 + $0x408] sm:$0xff] }
 0x1dc   : > { %v1308_v7 = vadd.f32 %v1296_v11, %v1284_v3  ;;  %2554 = vmatpush3.bf16.msra.mxu1 %v2553_v54  ;;  %2524 = vmatprep.subr.bf16.mxu0 %v2523_v58  ;;  %v1338_v36 = vmax.f32 %v1305_v19, %v1337_v27  ;;  %v2529_v22 = vpack.c.bf16 %v1462_v30, %v1461_v15  ;;  %v1545_v16 = vld [vmem:[#allocation10 + $0x500] sm:$0xff]  ;;  %v1564_v15 = vld [vmem:[#allocation10 + $0x598] sm:$0xff] }
 0x1dd   : > { %v1343_v8 = vrot.slane %v1306_v28, 4  ;;  %2556 = vmatprep.subr.bf16.mxu1 %v2555_v37  ;;  %v1350_v42 = vmax.f32 %v1307_v12, %v1349_v14  ;;  %v2561_v54 = vpack.c.bf16 %v1494_v39, %v1493_v34  ;;  %v2531_v25 = vpack.c.bf16 %v1480_v41, %v1479_v40 }
 0x1de   : > { %v1355_v46 = vrot.slane %v1308_v7, 4  ;;  %v1339_v48 = vrot.slane %v1338_v36, 2  ;;  %v2563_v58 = vpack.c.bf16 %v1512_v47, %v1511_v0  ;;  %v2533_v31 = vpack.c.bf16 %v1464_v50, %v1463_v35  ;;  %v1547_v0 = vld [vmem:[#allocation10 + $0x510] sm:$0xff]  ;;  %v1548_v35 = vld [vmem:[#allocation10 + $0x518] sm:$0xff]  ;;  %v1533_v50 = vld [vmem:[#allocation10 + $0x4a0] sm:$0xff] }
 0x1df   : > { %v1344_v49 = vmax.f32 %v1306_v28, %v1343_v8  ;;  %2526 = vmatpush3.bf16.msra.mxu0 %v2525_v44  ;;  %v1351_v52 = vrot.slane %v1350_v42, 2  ;;  %v2565_v5 = vpack.c.bf16 %v1496_v55, %v1495_v51  ;;  %v2567_v9 = vpack.c.bf16 %v1530_v57, %v1529_v56  ;;  %v1534_v51 = vld [vmem:[#allocation10 + $0x4a8] sm:$0xff] }
 0x1e0   : > { %v1356_v53 = vmax.f32 %v1308_v7, %v1355_v46  ;;  %2558 = vmatpush3.bf16.msra.mxu1 %v2557_v29  ;;  %2528 = vmatprep.subr.bf16.mxu0 %v2527_v10  ;;  %v1340_v23 = vmax.f32 %v1338_v36, %v1339_v48  ;;  %v2599_v37 = vpack.c.bf16 %v1562_v60, %v1561_v59  ;;  %v1563_v10 = vld [vmem:[#allocation10 + $0x590] sm:$0xff]  ;;  %v1516_v46 = vld [vmem:[#allocation10 + $0x418] sm:$0xff]  ;;  %v1550_v60 = vld [vmem:[#allocation10 + $0x528] sm:$0xff] }
 0x1e1   : > { %2560 = vmatprep.subr.bf16.mxu1 %v2559_v38  ;;  %v1345_v26 = vrot.slane %v1344_v49, 2  ;;  %v1352_v61 = vmax.f32 %v1350_v42, %v1351_v52  ;;  %v2569_v24 = vpack.c.bf16 %v3550_v1, %v3548_v63  ;;  %v2601_v7 = vpack.c.bf16 %v1546_v17, %v1545_v16  ;;  %v1515_v42 = vld [vmem:[#allocation10 + $0x410] sm:$0xff]  ;;  %v1568_v1 = vld [vmem:[#allocation10 + $0x5b8] sm:$0xff] }
 0x1e2   : > { %v1357_v62 = vrot.slane %v1356_v53, 2  ;;  %v2900_v4 = vpop.eup %2899  ;;  %v1341_v11 = vrot.slane %v1340_v23, 1  ;;  %v2571_v8 = vpack.c.bf16 %v1532_v20, %v1531_v13  ;;  %v2573_v55 = vpack.c.bf16 %v1516_v46, %v1515_v42  ;;  %v1567_v63 = vld [vmem:[#allocation10 + $0x5b0] sm:$0xff]  ;;  %v1521_v20 = vld [vmem:[#allocation10 + $0x440] sm:$0xff] }
 0x1e3   : > { %2530 = vmatpush3.bf16.msra.mxu0 %v2529_v22  ;;  %v1346_v6 = vmax.f32 %v1344_v49, %v1345_v26  ;;  %v2902_v18 = vpop.eup %2901  ;;  %v1225_v19 = vadd.f32 2.0, %v2900_v4  ;;  %v1353_v21 = vrot.slane %v1352_v61, 1  ;;  %v2603_v22 = vpack.c.bf16 %v1564_v15, %v1563_v10  ;;  %v1549_v26 = vld [vmem:[#allocation10 + $0x520] sm:$0xff]  ;;  %v1551_v16 = vld [vmem:[#allocation10 + $0x530] sm:$0xff]  ;;  %v1540_v15 = vld [vmem:[#allocation10 + $0x4d8] sm:$0xff] }
 0x1e4   : > { %2562 = vmatpush3.bf16.msra.mxu1 %v2561_v54  ;;  %2532 = vmatprep.subr.bf16.mxu0 %v2531_v25  ;;  %v1358_v2 = vmax.f32 %v1356_v53, %v1357_v62  ;;  %v2904_v12 = vpop.eup %2903  ;;  %v1227_v3 = vadd.f32 2.0, %v2902_v18  ;;  %v1342_v41 = vmax.f32 %v1340_v23, %v1341_v11  ;;  %v1565_v53 = vld [vmem:[#allocation10 + $0x5a0] sm:$0xff]  ;;  %v1566_v54 = vld [vmem:[#allocation10 + $0x5a8] sm:$0xff]  ;;  %v2605_v56 = vpack.c.bf16 %v1548_v35, %v1547_v0  ;;  %v1536_v62 = vld [vmem:[#allocation10 + $0x4b8] sm:$0xff] }
 0x1e5   : > { %2564 = vmatprep.subr.bf16.mxu1 %v2563_v58  ;;  %v1347_v44 = vrot.slane %v1346_v6, 1  ;;  %v2906_v27 = vpop.eup %2905  ;;  %v3554_v28 = vmul.f32 %v2900_v4, %v1225_v19  ;;  %v1226_v29 = vadd.f32 2.0, %v2904_v12  ;;  %v1354_v49 = vmax.f32 %v1352_v61, %v1353_v21  ;;  %v1517_v23 = vld [vmem:[#allocation10 + $0x420] sm:$0xff]  ;;  %v1518_v58 = vld [vmem:[#allocation10 + $0x428] sm:$0xff]  ;;  %v1535_v61 = vld [vmem:[#allocation10 + $0x4b0] sm:$0xff] }
 0x1e6   : > { %v1359_v14 = vrot.slane %v1358_v2, 1  ;;  %v3556_v30 = vmul.f32 %v2902_v18, %v1227_v3  ;;  %v1228_v34 = vadd.f32 2.0, %v2906_v27  ;;  %v2575_v57 = vpack.c.bf16 %v1534_v51, %v1533_v50  ;;  %v1552_v18 = vld [vmem:[#allocation10 + $0x538] sm:$0xff]  ;;  %v1537_v19 = vld [vmem:[#allocation10 + $0x4c0] sm:$0xff]  ;;  %v1522_v21 = vld [vmem:[#allocation10 + $0x448] sm:$0xff] }
 0x1e7   : > { %2534 = vmatpush3.bf16.msra.mxu0 %v2533_v31  ;;  %v1348_v36 = vmax.f32 %v1346_v6, %v1347_v44  ;;  %v1249_v38 = vadd.f32 2.0, %v3554_v28  ;;  %v3559_v39 = vmul.f32 %v2904_v12, %v1226_v29  ;;  %v2607_v59 = vpack.c.bf16 %v1566_v54, %v1565_v53  ;;  %v1519_v6 = vld [vmem:[#allocation10 + $0x430] sm:$0xff]  ;;  %v1569_v11 = vld [vmem:[#allocation10 + $0x5c0] sm:$0xff] }
 0x1e8   : > { %2566 = vmatpush3.bf16.msra.mxu1 %v2565_v5  ;;  %v1360_v40 = vmax.f32 %v1358_v2, %v1359_v14  ;;  %2568 = vmatprep.subr.bf16.mxu0 %v2567_v9  ;;  %v1251_v47 = vadd.f32 2.0, %v3556_v30  ;;  %v3562_v48 = vmul.f32 %v2906_v27, %v1228_v34  ;;  %v2577_v4 = vpack.c.bf16 %v1518_v58, %v1517_v23  ;;  %v1520_v9 = vld [vmem:[#allocation10 + $0x438] sm:$0xff]  ;;  %v1538_v2 = vld [vmem:[#allocation10 + $0x4c8] sm:$0xff]  ;;  %v1539_v10 = vld [vmem:[#allocation10 + $0x4d0] sm:$0xff] }
 0x1e9   : > { %1781 = vmatprep.mubr.f32.mxu0 %v1348_v36  ;;  %2600 = vmatprep.subr.bf16.mxu1 %v2599_v37  ;;  %2907 = vrcp.f32 %v1249_v38  ;;  %v1250_v52 = vadd.f32 2.0, %v3559_v39  ;;  %v2609_v31 = vpack.c.bf16 %v1550_v60, %v1549_v26  ;;  %v2579_v5 = vpack.c.bf16 %v1536_v62, %v1535_v61  ;;  %v1570_v37 = vld [vmem:[#allocation10 + $0x5c8] sm:$0xff]  ;;  %v1297_v36 = vld [vmem:[#allocation8 + $0x40] sm:$0xff]  ;;  %v1571_v38 = vld [vmem:[#allocation10 + $0x5d0] sm:$0xff] }
 0x1ea   : > { %1851 = vmatprep.mubr.f32.mxu1 %v1360_v40  ;;  %1782 = vmatmul.mubr.f32.vlgmr.msra.gmra.mrb[14].mxu0 %v1342_v41  ;;  %2909 = vrcp.f32 %v1251_v47  ;;  %v1252_v25 = vadd.f32 2.0, %v3562_v48  ;;  %v2611_v17 = vpack.c.bf16 %v1568_v1, %v1567_v63  ;;  %v2581_v13 = vpack.c.bf16 %v1520_v9, %v1519_v6  ;;  %v1554_v27 = vld [vmem:[#allocation10 + $0x548] sm:$0xff]  ;;  %v1572_v40 = vld [vmem:[#allocation10 + $0x5d8] sm:$0xff]  ;;  %v1299_v46 = vld [vmem:[#allocation8 + $0x50] sm:$0xff] }
 0x1eb   : > { %1852 = vmatmul.mubr.f32.vlgmr.msra.gmra.mrb[14].mxu1 %v1354_v49  ;;  %2570 = vmatpush3.bf16.msra.mxu0 %v2569_v24  ;;  %2911 = vrcp.f32 %v1250_v52  ;;  %v2613_v3 = vpack.c.bf16 %v1552_v18, %v1551_v16  ;;  %v2583_v44 = vpack.c.bf16 %v1538_v2, %v1537_v19  ;;  %v1553_v24 = vld [vmem:[#allocation10 + $0x540] sm:$0xff]  ;;  %v1298_v47 = vld [vmem:[#allocation8 + $0x48] sm:$0xff]  ;;  %v1300_v49 = vld [vmem:[#allocation8 + $0x58] sm:$0xff] }
 0x1ec   : > { %2602 = vmatpush3.bf16.msra.mxu1 %v2601_v7  ;;  %2572 = vmatprep.subr.bf16.mxu0 %v2571_v8  ;;  %2913 = vrcp.f32 %v1252_v25  ;;  %v2615_v7 = vpack.c.bf16 %v1570_v37, %v1569_v11  ;;  %v1523_v51 = vld [vmem:[#allocation10 + $0x450] sm:$0xff]  ;;  %v1524_v52 = vld [vmem:[#allocation10 + $0x458] sm:$0xff]  ;;  %v1574_v58 = vld [vmem:[#allocation10 + $0x5e8] sm:$0xff] }
 0x1ed   : > { %2604 = vmatprep.subr.bf16.mxu1 %v2603_v22  ;;  %v2617_v22 = vpack.c.bf16 %v1554_v27, %v1553_v24  ;;  %v1555_v53 = vld [vmem:[#allocation10 + $0x550] sm:$0xff]  ;;  %v1556_v25 = vld [vmem:[#allocation10 + $0x558] sm:$0xff]  ;;  %v1525_v63 = vld [vmem:[#allocation10 + $0x460] sm:$0xff] }
 0x1ee   : > { %v2621_v62 = vpack.c.bf16 %v1556_v25, %v1555_v53  ;;  %v1526_v1 = vld [vmem:[#allocation10 + $0x468] sm:$0xff]  ;;  %v1543_v9 = vld [vmem:[#allocation10 + $0x4f0] sm:$0xff]  ;;  %v1544_v16 = vld [vmem:[#allocation10 + $0x4f8] sm:$0xff] }
 0x1ef   : > { %2574 = vmatpush3.bf16.msra.mxu0 %v2573_v55  ;;  %v1541_v55 = vld [vmem:[#allocation10 + $0x4e0] sm:$0xff]  ;;  %v1575_v19 = vld [vmem:[#allocation10 + $0x5f0] sm:$0xff]  ;;  %v1576_v2 = vld [vmem:[#allocation10 + $0x5f8] sm:$0xff] }
 0x1f0   : > { %2606 = vmatpush3.bf16.msra.mxu1 %v2605_v56  ;;  %2576 = vmatprep.subr.bf16.mxu0 %v2575_v57  ;;  %v1542_v56 = vld [vmem:[#allocation10 + $0x4e8] sm:$0xff]  ;;  %v1528_v24 = vld [vmem:[#allocation10 + $0x478] sm:$0xff] }
 0x1f1   : > { %2608 = vmatprep.subr.bf16.mxu1 %v2607_v59  ;;  %v2589_v59 = vpack.c.bf16 %v1524_v52, %v1523_v51 }
 0x1f3   : > { %2578 = vmatpush3.bf16.msra.mxu0 %v2577_v4  ;;  %v2908_v12 = vpop.eup %2907  ;;  %v1557_v4 = vld [vmem:[#allocation10 + $0x560] sm:$0xff] }
 0x1f4   : > { %2610 = vmatpush3.bf16.msra.mxu1 %v2609_v31  ;;  %2580 = vmatprep.subr.bf16.mxu0 %v2579_v5  ;;  %v2910_v29 = vpop.eup %2909  ;;  %v1273_v14 = vmul.f32 %v2908_v12, %v3554_v28  ;;  %v2585_v28 = vpack.c.bf16 %v1522_v21, %v1521_v20  ;;  %v1527_v21 = vld [vmem:[#allocation10 + $0x470] sm:$0xff] }
 0x1f5   : > { %2612 = vmatprep.subr.bf16.mxu1 %v2611_v17  ;;  %v2912_v34 = vpop.eup %2911  ;;  %v1275_v8 = vmul.f32 %v2910_v29, %v3556_v30  ;;  %v2587_v30 = vpack.c.bf16 %v1540_v15, %v1539_v10  ;;  %v2627_v29 = vpack.c.bf16 %v1576_v2, %v1575_v19 }
 0x1f6   : > { %v2914_v41 = vpop.eup %2913  ;;  %v1285_v42 = vmul.f32 %v1273_v14, %v3515_v32  ;;  %v1274_v0 = vmul.f32 %v2912_v34, %v3559_v39  ;;  %v2619_v39 = vpack.c.bf16 %v1572_v40, %v1571_v38  ;;  %v1559_v14 = vld [vmem:[#allocation10 + $0x570] sm:$0xff] }
 0x1f7   : > { %2582 = vmatpush3.bf16.msra.mxu0 %v2581_v13  ;;  %v1287_v35 = vmul.f32 %v1275_v8, %v3517_v33  ;;  %v1276_v50 = vmul.f32 %v2914_v41, %v3562_v48  ;;  %v1573_v33 = vld [vmem:[#allocation10 + $0x5e0] sm:$0xff]  ;;  %v2593_v13 = vpack.c.bf16 %v1526_v1, %v1525_v63 }
 0x1f8   : > { %2614 = vmatpush3.bf16.msra.mxu1 %v2613_v3  ;;  %2584 = vmatprep.subr.bf16.mxu0 %v2583_v44  ;;  %v1309_v54 = vadd.f32 %v1297_v36, %v1285_v42  ;;  %v1286_v32 = vmul.f32 %v1274_v0, %v3526_v43  ;;  %v2591_v43 = vpack.c.bf16 %v1542_v56, %v1541_v55 }
 0x1f9   : > { %2616 = vmatprep.subr.bf16.mxu1 %v2615_v7  ;;  %v1311_v57 = vadd.f32 %v1299_v46, %v1287_v35  ;;  %v1288_v23 = vmul.f32 %v1276_v50, %v3528_v45  ;;  %v2623_v6 = vpack.c.bf16 %v1574_v58, %v1573_v33  ;;  %v1558_v45 = vld [vmem:[#allocation10 + $0x568] sm:$0xff]  ;;  %v2595_v44 = vpack.c.bf16 %v1544_v16, %v1543_v9  ;;  %v1560_v7 = vld [vmem:[#allocation10 + $0x578] sm:$0xff] }
 0x1fa   : > { %v1361_v48 = vrot.slane %v1309_v54, 4  ;;  %v1310_v26 = vadd.f32 %v1298_v47, %v1286_v32  ;;  %v2625_v3 = vpack.c.bf16 %v1558_v45, %v1557_v4  ;;  %v2597_v36 = vpack.c.bf16 %v1528_v24, %v1527_v21 }
 0x1fb   : > { %2586 = vmatpush3.bf16.msra.mxu0 %v2585_v28  ;;  %v1373_v60 = vrot.slane %v1311_v57, 4  ;;  %v1312_v61 = vadd.f32 %v1300_v49, %v1288_v23  ;;  %v2629_v38 = vpack.c.bf16 %v1560_v7, %v1559_v14 }
 0x1fc   : > { %2618 = vmatpush3.bf16.msra.mxu1 %v2617_v22  ;;  %2588 = vmatprep.subr.bf16.mxu0 %v2587_v30  ;;  %v1362_v31 = vmax.f32 %v1309_v54, %v1361_v48  ;;  %v1367_v5 = vrot.slane %v1310_v26, 4 }
 0x1fd   : > { %2620 = vmatprep.subr.bf16.mxu1 %v2619_v39  ;;  %v1374_v17 = vmax.f32 %v1311_v57, %v1373_v60  ;;  %v1379_v18 = vrot.slane %v1312_v61, 4 }
 0x1fe   : > { %v1363_v11 = vrot.slane %v1362_v31, 2  ;;  %v1368_v37 = vmax.f32 %v1310_v26, %v1367_v5 }
 0x1ff   : > { %2590 = vmatpush3.bf16.msra.mxu0 %v2589_v59  ;;  %v1375_v20 = vrot.slane %v1374_v17, 2  ;;  %v1380_v12 = vmax.f32 %v1312_v61, %v1379_v18 }
 0x200   : > { %2622 = vmatpush3.bf16.msra.mxu1 %v2621_v62  ;;  %2592 = vmatprep.subr.bf16.mxu0 %v2591_v43  ;;  %v1364_v27 = vmax.f32 %v1362_v31, %v1363_v11  ;;  %v1369_v10 = vrot.slane %v1368_v37, 2 }
 0x201   : > { %2624 = vmatprep.subr.bf16.mxu1 %v2623_v6  ;;  %v1376_v15 = vmax.f32 %v1374_v17, %v1375_v20  ;;  %v1381_v34 = vrot.slane %v1380_v12, 2 }
 0x202   : > { %v1370_v8 = vmax.f32 %v1368_v37, %v1369_v10  ;;  %v1365_v41 = vrot.slane %v1364_v27, 1 }
 0x203   : > { %2594 = vmatpush3.bf16.msra.mxu0 %v2593_v13  ;;  %v1382_v40 = vmax.f32 %v1380_v12, %v1381_v34  ;;  %v1377_v46 = vrot.slane %v1376_v15, 1 }
 0x204   : > { %2626 = vmatpush3.bf16.msra.mxu1 %v2625_v3  ;;  %2596 = vmatprep.subr.bf16.mxu0 %v2595_v44  ;;  %v1371_v42 = vrot.slane %v1370_v8, 1  ;;  %v1366_v28 = vmax.f32 %v1364_v27, %v1365_v41 }
 0x205   : > { %2628 = vmatprep.subr.bf16.mxu1 %v2627_v29  ;;  %v1383_v0 = vrot.slane %v1382_v40, 1  ;;  %v1378_v22 = vmax.f32 %v1376_v15, %v1377_v46 }
 0x206   : > { %v1372_v47 = vmax.f32 %v1370_v8, %v1371_v42 }
 0x207   : > { %2598 = vmatpush3.bf16.msra.mxu0 %v2597_v36  ;;  %v1384_v49 = vmax.f32 %v1382_v40, %v1383_v0 }
 0x208   : > { %2630 = vmatpush3.bf16.msra.mxu1 %v2629_v38  ;;  %1921 = vmatprep.mubr.f32.mxu0 %v1372_v47 }
 0x209   : > { %1991 = vmatprep.mubr.f32.mxu1 %v1384_v49 }
 0x20a   : > { %1922 = vmatmul.mubr.f32.vlgmr.msra.gmra.mrb[16].mxu0 %v1366_v28 }
 0x20b   : > { %1992 = vmatmul.mubr.f32.vlgmr.msra.gmra.mrb[16].mxu1 %v1378_v22 }
 0x29d   : > { %v2261_v35 = vpop.f32.mrb[12].mxu0 }
 0x29e   : > { %v2296_v50 = vpop.f32.mrb[12].mxu1  ;;  %v2262_v30 = vpop.f32.mrb[13].mxu0 }
 0x29f   : > { %v2263_v51 = vadd.f32 %v2262_v30, %v2261_v35  ;;  %v2297_v52 = vpop.f32.mrb[13].mxu1 }
 0x2a0   : > { %v2298_v53 = vadd.f32 %v2297_v52, %v2296_v50 }
 0x2a2   : > { %v1714_v54 = vadd.f32 %v2298_v53, %v2263_v51 }
 0x2bd   : > { %v2331_v32 = vpop.f32.mrb[14].mxu0 }
 0x2be   : > { %v2366_v39 = vpop.f32.mrb[14].mxu1  ;;  %v2332_v25 = vpop.f32.mrb[15].mxu0 }
 0x2bf   : > { %v2333_v55 = vadd.f32 %v2332_v25, %v2331_v32  ;;  %v2367_v56 = vpop.f32.mrb[15].mxu1 }
 0x2c0   : > { %v2368_v57 = vadd.f32 %v2367_v56, %v2366_v39 }
 0x2c1   : > { %v1784_v23 = vadd.f32 %v2333_v55, %v1714_v54 }
 0x2c3   : > { %v1854_v33 = vadd.f32 %v2368_v57, %v1784_v23 }
 0x2dd   : > { %v2401_v58 = vpop.f32.mrb[16].mxu0 }
 0x2de   : > { %v2436_v48 = vpop.f32.mrb[16].mxu1  ;;  %v2402_v26 = vpop.f32.mrb[17].mxu0 }
 0x2df   : > { %v2403_v59 = vadd.f32 %v2402_v26, %v2401_v58  ;;  %v2437_v60 = vpop.f32.mrb[17].mxu1 }
 0x2e0   : > { %v2438_v61 = vadd.f32 %v2437_v60, %v2436_v48 }
 0x2e1   : > { %v1924_v62 = vadd.f32 %v2403_v59, %v1854_v33 }
 0x2e3   : > { %v1994_v43 = vadd.f32 %v2438_v61, %v1924_v62 }
 0x2e5   : > { %1997 = vst [vmem:[%s292_s9] sm:$0x1] %v1994_v43 }
 0x2e6   : > { %3070 = shalt.err (!%p3067_p0)
}
 0x2e7   : > { %s3071_s16 = scalar_lea.hbm %s3579_s26, 16  ;;  %s3075_s6 = scalar_lea.hbm %s3628_s5, 32 }
 0x2e8   : > { %p3072_p2 = scmp.ne.s32.totalorder %s3579_s26, %s3071_s16  ;;  %p3076_p10 = scmp.lt.u32.totalorder %s3579_s26, %s3628_s5 }
 0x2e9   : > { %p3077_p11 = scmp.lt.u32.totalorder %s3075_s6, %s3071_s16  ;;  %p3079_p6 = scmp.lt.u32.totalorder %s3071_s16, %s3579_s26 }
 0x2ea   : > { %p3073_p8 = pnand %p3072_p2, %p3646_p5 }
 0x2eb   : > { %p3078_p1 = por %p3077_p11, %p3076_p10 }
 0x2ec   : > { %p3074_p4 = pneg %p3073_p8 }
 0x2ed   : > { %p3080_p7 = por %p3079_p6, %p3078_p1 }
 0x2ef   : > { %p3081_p9 = pnand %p3080_p7, %p3074_p4 }
 0x2f1   : > { %3084 = shalt.err (!%p3081_p9)
}
 0x2f2   : > { %2649 = dma.vmem_to_hbm [thread:$0]  (%p3646_p5), %s3581_s30, 16, %s3579_s26, %s1999_s28  }
 0x2f3 PF: > { %s2023_s25 = sand.u32 1, %s3119_s18   ;;  %p3647_p12 = scmp.ne.s32.totalorder %s3639_s12, 0 }
 0x2f4   : > { %p3648_p3 = scmp.ge.s32.totalorder %s3131_s21, 2  ;;  %s2024_s9 = scalar_lea.sflag [#allocation4], %s2023_s25 }
 0x2f6   : > { %p2669_p13 = pnand %p3648_p3, %p3647_p12 }
 0x2f8   : > { %3114 = dma.done.wait (!%p2669_p13), %s2024_s9, 16  }
 0x2f9   : > { %3116 = vsyncadd (!%p2669_p13), %s2024_s9, 4294967280  ;;  %p20_p0 = scmp.ge.s32.totalorder %s3314_s27, 4   ;;  %s3649_s18 = smov %s3123_s19 }
 0x2fa   : > { %s3650_s19 = smov %s3127_s20  ;;  %s3651_s20 = smov %s3325_s8 }
 0x2fb   : > { %s3652_s21 = smov %s3314_s27  ;;  %22 = sbr.rel (!%p20_p0) target bundleno = 7 (0x7), region = 101 }
 0x302   :  { %2028 = vsyncpa [#allocation3], 1 }
 0x303   :  { %2030 = vsyncpa [#allocation3 + $0x1], 1 }
 0x304   :  { %2031 = vsyncpa [#allocation6], 1 }
 0x305   :  { %2032 = vsyncpa [#allocation9], 1 }
 0x306   :  { %2033 = vsyncpa [#allocation4], 1 }
 0x307   :  { %2035 = vsyncpa [#allocation4 + $0x1], 1 }

// kernel: tpu_custom_call.1
= control target key start
LH: loop header
LB: loop body
LE: loop exit
PB: predicated region body
PF: predicated region fallthrough
CT: control target
= control target key end

     0   :  { %10 = vsyncpa [#allocation3], 0  ;;  %s3623_s0 = inlined_call_operand.hbm [shape: bf16[2,8,128], index: 0, kind: input, shape index: {}]   ;;  %s3624_s1 = inlined_call_operand.hbm [shape: bf16[128,1536], index: 1, kind: input, shape index: {}]   ;;  %s3625_s2 = inlined_call_operand.hbm [shape: f32[1,1536], index: 2, kind: input, shape index: {}]   ;;  %s3626_s3 = inlined_call_operand.hbm [shape: f32[8,1536], index: 3, kind: input, shape index: {}]   ;;  %s3627_s4 = inlined_call_operand.hbm [shape: f32[1536,128], index: 4, kind: input, shape index: {}]   ;;  %s3628_s5 = inlined_call_operand.hbm [shape: f32[2,1,128], index: 5, kind: output, shape index: {}]  }
   0x1   :  { %12 = vsyncpa [#allocation3 + $0x1], 0 }
   0x2   :  { %13 = vsyncpa [#allocation6], 0 }
   0x3   :  { %14 = vsyncpa [#allocation9], 0 }
   0x4   :  { %15 = vsyncpa [#allocation4], 0 }
   0x5   :  { %17 = vsyncpa [#allocation4 + $0x1], 0  ;;  %s3174_s18 = smov 0   ;;  %s3176_s19 = smov 0  }
   0x6   :  { %s3178_s20 = smov 0   ;;  %s3180_s21 = smov 0  }
   0x7 LB: > { %s3133_s22 = smov [#allocation5]   ;;  %s3195_s24 = sadd.s32 4294967295, %s3131_s21   ;;  %s3131_s21 = sphi %s3180_s21, %s3652_s21   ;;  %s3127_s20 = sphi %s3178_s20, %s3651_s20   ;;  %s3123_s19 = sphi %s3176_s19, %s3650_s19   ;;  %s3119_s18 = sphi %s3174_s18, %s3649_s18  }
   0x8   : > { %s176_s23 = sshll.u32 %s3133_s22, 4  ;;  %p2116_p0 = scmp.ge.s32.totalorder %s3131_s21, 1  ;;  %s3200_s23 = int_to_ptr.vmem [resolvable:$true] %s176_s23 }
   0x9   : > { %p3629_p1 = scmp.eq.s32.totalorder %s3195_s24, 0  ;;  %p164_p2 = scmp.lt.s32.totalorder %s3131_s21, 3 }
   0xa   : > { %s3134_s26 = smov [#allocation8]   ;;  %s3135_s29 = smov [#allocation7]  }
   0xb   : > { %p3202_p3 = pnand %p2116_p0, %p164_p2  ;;  %s201_s27 = sshll.u32 %s3134_s26, 4  ;;  %s3215_s27 = int_to_ptr.vmem [resolvable:$true] %s201_s27 }
   0xc   : > { %s190_s30 = sshll.u32 %s3135_s29, 4  ;;  %s2915_s8 = scalar_lea.hbm %s3624_s1, 12288  ;;  %s3217_s30 = int_to_ptr.vmem [resolvable:$true] %s190_s30 }
   0xd   : > { %s3632_s25 = scalar_select %p3202_p3, 1, 0 }
   0xe   : > { %p2651_p5 = pneg %p3202_p3  ;;  %p2916_p7 = scmp.ne.s32.totalorder %s3624_s1, %s2915_s8 }
   0xf   : > { %p2922_p11 = scmp.lt.u32.totalorder %s2915_s8, %s3624_s1 }
  0x10   : > { %p3211_p6 = pnand %p2651_p5, %p3629_p1 }
  0x12   : > { %p3227_p8 = pneg %p3211_p6 }
  0x14   : > { %p2918_p9 = pnand %p3227_p8, %p2916_p7 }
  0x16   : > { %p2919_p10 = pneg %p2918_p9 }
  0x18   : > { %p2924_p12 = pnand %p2922_p11, %p2919_p10 }
  0x1a   : > { %2927 = shalt.err (!%p2924_p12)
}
  0x1b   : > { %s2928_s14 = scalar_lea.vmem %s3200_s23, 12288  ;;  %p2936_p5 = scmp.lt.s32.totalorder %s3200_s23, %s3200_s23 }
  0x1c   : > { %p2929_p13 = scmp.ne.s32.totalorder %s3200_s23, %s2928_s14  ;;  %p2937_p4 = scmp.lt.s32.totalorder %s2928_s14, %s2928_s14 }
  0x1e   : > { %p2931_p0 = pnand %p2929_p13, %p3227_p8  ;;  %p2938_p7 = por %p2937_p4, %p2936_p5 }
  0x20   : > { %p2932_p2 = pneg %p2931_p0 }
  0x22   : > { %p2939_p9 = pnand %p2938_p7, %p2932_p2 }
  0x24   : > { %2942 = shalt.err (!%p2939_p9)
}
  0x25   : > { %s3136_s15 = smov 768   ;;  %s3137_s16 = smov 48  }
  0x26   : > { %2654 = dma.hbm_to_vmem [thread:$0]  (!%p3211_p6), %s3624_s1, 12288, %s3200_s23, [#allocation6], %s3136_s15, %s3136_s15, %s3137_s16  }
  0x27   : > { %s2943_s6 = scalar_lea.hbm %s3626_s3, 1536 }
  0x28   : > { %p2944_p4 = scmp.ne.s32.totalorder %s3626_s3, %s2943_s6  ;;  %p2950_p12 = scmp.lt.u32.totalorder %s2943_s6, %s3626_s3 }
  0x2a   : > { %p2946_p10 = pnand %p2944_p4, %p3227_p8 }
  0x2c   : > { %p2947_p11 = pneg %p2946_p10 }
  0x2e   : > { %p2952_p13 = pnand %p2950_p12, %p2947_p11 }
  0x30   : > { %2955 = shalt.err (!%p2952_p13)
}
  0x31   : > { %s2956_s23 = scalar_lea.vmem %s3215_s27, 1536  ;;  %p2964_p7 = scmp.lt.s32.totalorder %s3215_s27, %s3215_s27 }
  0x32   : > { %p2957_p0 = scmp.ne.s32.totalorder %s3215_s27, %s2956_s23  ;;  %p2965_p9 = scmp.lt.s32.totalorder %s2956_s23, %s2956_s23 }
  0x34   : > { %p2959_p2 = pnand %p2957_p0, %p3227_p8  ;;  %p2966_p4 = por %p2965_p9, %p2964_p7 }
  0x36   : > { %p2960_p5 = pneg %p2959_p2 }
  0x38   : > { %p2967_p10 = pnand %p2966_p4, %p2960_p5 }
  0x3a   : > { %2970 = shalt.err (!%p2967_p10)
}
  0x3b   : > { %2660 = dma.hbm_to_vmem [thread:$0]  (!%p3211_p6), %s3626_s3, 1536, %s3215_s27, [#allocation9]  }
  0x3c   : > { %s2971_s16 = scalar_lea.hbm %s3625_s2, 192 }
  0x3d   : > { %p2972_p11 = scmp.ne.s32.totalorder %s3625_s2, %s2971_s16  ;;  %p2978_p0 = scmp.lt.u32.totalorder %s2971_s16, %s3625_s2 }
  0x3f   : > { %p2974_p12 = pnand %p2972_p11, %p3227_p8 }
  0x41   : > { %p2975_p13 = pneg %p2974_p12 }
  0x43   : > { %p2980_p2 = pnand %p2978_p0, %p2975_p13 }
  0x45   : > { %2983 = shalt.err (!%p2980_p2)
}
  0x46   : > { %s2984_s27 = scalar_lea.vmem %s3217_s30, 192  ;;  %p2992_p4 = scmp.lt.s32.totalorder %s3217_s30, %s3217_s30 }
  0x47   : > { %p2985_p5 = scmp.ne.s32.totalorder %s3217_s30, %s2984_s27  ;;  %p2993_p10 = scmp.lt.s32.totalorder %s2984_s27, %s2984_s27 }
  0x49   : > { %p2987_p7 = pnand %p2985_p5, %p3227_p8  ;;  %p2994_p11 = por %p2993_p10, %p2992_p4 }
  0x4b   : > { %p2988_p9 = pneg %p2987_p7 }
  0x4d   : > { %p2995_p12 = pnand %p2994_p11, %p2988_p9 }
  0x4f   : > { %2998 = shalt.err (!%p2995_p12)
}
  0x50   : > { %2657 = dma.hbm_to_vmem [thread:$0]  (!%p3211_p6), %s3625_s2, 192, %s3217_s30, [#allocation6]  }
  0x51   : > { %s3138_s8 = smov [#allocation10]   ;;  %s2999_s12 = scalar_lea.hbm %s3627_s4, 24576 }
  0x52   : > { %s211_s9 = sshll.u32 %s3138_s8, 4  ;;  %p3000_p13 = scmp.ne.s32.totalorder %s3627_s4, %s2999_s12  ;;  %s212_s9 = int_to_ptr.vmem [resolvable:$true] %s211_s9 }
  0x53   : > { %p3006_p5 = scmp.lt.u32.totalorder %s2999_s12, %s3627_s4 }
  0x54   : > { %p3002_p0 = pnand %p3000_p13, %p3227_p8 }
  0x56   : > { %p3003_p2 = pneg %p3002_p0 }
  0x58   : > { %p3008_p7 = pnand %p3006_p5, %p3003_p2 }
  0x5a   : > { %3011 = shalt.err (!%p3008_p7)
}
  0x5b   : > { %s3012_s30 = scalar_lea.vmem %s212_s9, 24576  ;;  %p3020_p11 = scmp.lt.s32.totalorder %s212_s9, %s212_s9 }
  0x5c   : > { %p3013_p9 = scmp.ne.s32.totalorder %s212_s9, %s3012_s30  ;;  %p3021_p12 = scmp.lt.s32.totalorder %s3012_s30, %s3012_s30 }
  0x5e   : > { %p3015_p4 = pnand %p3013_p9, %p3227_p8  ;;  %p3022_p1 = por %p3021_p12, %p3020_p11 }
  0x60   : > { %p3016_p10 = pneg %p3015_p4 }
  0x62   : > { %p3023_p3 = pnand %p3022_p1, %p3016_p10 }
  0x64   : > { %3026 = shalt.err (!%p3023_p3)
}
  0x65   : > { %s3139_s17 = smov 128   ;;  %s3140_s11 = smov 8  }
  0x66   : > { %2663 = dma.hbm_to_vmem [thread:$0]  (!%p3211_p6), %s3627_s4, 24576, %s212_s9, [#allocation9], %s3139_s17, %s3139_s17, %s3140_s11  }
  0x67   : > { %s2115_s29 = sadd.s32 4294967294, %s3131_s21   ;;  %s3314_s27 = sadd.s32 1, %s3131_s21  }
  0x68   : > { %s27_s6 = ssub.s32 %s3131_s21, %s3314_s27  ;;  %s30_s7 = sadd.s32 1, %s3127_s20 }
  0x69   : > { %p28_p1 = scmp.eq.s32.totalorder %s27_s6, 0  ;;  %p37_p3 = scmp.ne.s32.totalorder %s3127_s20, %s3123_s19 }
  0x6a   : > { %p38_p8 = scmp.eq.s32.totalorder %s3131_s21, 0  ;;  %p43_p13 = scmp.ne.s32.totalorder %s3123_s19, %s3119_s18 }
  0x6b   : > { %s3325_s8 = scalar_select %p28_p1, %s3127_s20, %s30_s7  }
  0x6c   : > { %p3327_p0 = por %p38_p8, %p37_p3  ;;  %p3636_p2 = scmp.eq.s32.totalorder %s3195_s24, 0 }
  0x6d   : > { %p151_p5 = scmp.eq.s32.totalorder %s3195_s24, 1  ;;  %p157_p7 = scmp.eq.s32.totalorder %s2115_s29, 1 }
  0x6e   : > { %p3333_p6 = por %p3636_p2, %p43_p13  ;;  %p2676_p9 = scmp.lt.s32.totalorder %s3131_s21, 2 }
  0x6f   : > { %s225_s10 = sand.u32 1, %s3127_s20   ;;  %p3340_p4 = por %p151_p5, %p37_p3 }
  0x70   : > { %p3344_p10 = por %p157_p7, %p43_p13  ;;  %s2122_s13 = sshll.u32 %s225_s10, 2 }
  0x71   : > { %s3638_s23 = scalar_select %p3340_p4, 1, 0 }
  0x72   : > { %s3639_s12 = scalar_select %p3344_p10, 1, 0 }
  0x73   : > { %s2123_s14 = sshll.u32 %s3131_s21, 6  ;;  %s229_s17 = scalar_lea.vmem [#allocation2], %s2122_s13 }
  0x74   : > { %s3352_s30 = scalar_lea.hbm %s3623_s0, %s2123_s14  ;;  %s236_s11 = sshll.u32 %s229_s17, 4  ;;  %s3354_s11 = int_to_ptr.vmem [resolvable:$true] %s236_s11 }
  0x75   : > { %p3358_p11 = pnand %p2676_p9, %p3327_p0  ;;  %s226_s26 = scalar_lea.sflag [#allocation3], %s225_s10 }
  0x76   : > { %s3027_s29 = scalar_lea.hbm %s3352_s30, 64  ;;  %s3032_s13 = scalar_lea.hbm %s3623_s0, 128 }
  0x77   : > { %p3028_p12 = scmp.ne.s32.totalorder %s3352_s30, %s3027_s29  ;;  %p3029_p1 = pneg %p3358_p11 }
  0x78   : > { %p3033_p13 = scmp.lt.u32.totalorder %s3352_s30, %s3623_s0  ;;  %p3034_p0 = scmp.lt.u32.totalorder %s3032_s13, %s3027_s29 }
  0x79   : > { %p3030_p3 = pnand %p3029_p1, %p3028_p12  ;;  %p3036_p5 = scmp.lt.u32.totalorder %s3027_s29, %s3352_s30 }
  0x7a   : > { %p3035_p2 = por %p3034_p0, %p3033_p13 }
  0x7b   : > { %p3031_p8 = pneg %p3030_p3 }
  0x7c   : > { %p3037_p7 = por %p3036_p5, %p3035_p2 }
  0x7e   : > { %p3038_p9 = pnand %p3037_p7, %p3031_p8 }
  0x80   : > { %3041 = shalt.err (!%p3038_p9)
}
  0x81   : > { %s3042_s10 = scalar_lea.vmem %s3354_s11, 64  ;;  %s3141_s15 = smov [#allocation2]  }
  0x82   : > { %p3043_p12 = scmp.ne.s32.totalorder %s3354_s11, %s3042_s10  ;;  %s3047_s16 = sshll.u32 %s3141_s15, 4  ;;  %s3048_s16 = int_to_ptr.vmem [resolvable:$false] %s3047_s16 }
  0x83   : > { %s3049_s17 = scalar_lea.vmem %s3048_s16, 128  ;;  %p3050_p4 = scmp.lt.s32.totalorder %s3354_s11, %s3048_s16 }
  0x84   : > { %p3045_p3 = pnand %p3043_p12, %p3029_p1  ;;  %p3051_p13 = scmp.lt.s32.totalorder %s3049_s17, %s3042_s10 }
  0x86   : > { %p3046_p10 = pneg %p3045_p3  ;;  %p3052_p0 = por %p3051_p13, %p3050_p4 }
  0x88   : > { %p3053_p2 = pnand %p3052_p0, %p3046_p10 }
  0x8a   : > { %3056 = shalt.err (!%p3053_p2)
}
  0x8b   : > { %2667 = dma.hbm_to_vmem [thread:$0]  (!%p3358_p11), %s3352_s30, 64, %s3354_s11, %s226_s26  }
  0x8c   : > { %p3641_p8 = scmp.ne.s32.totalorder %s3632_s25, 0 }
  0x8d   : > { %s3390_s29 = sand.u32 (!%p3641_p8), 1, %s3123_s19  }
  0x8e   : > { %245 = sbr.rel (%p3641_p8) target bundleno = 755 (0x2f3), region = 40  ;;  %s2125_s6 = sshll.u32 (!%p3641_p8), %s3390_s29, 2 }
  0x8f   : > { %s248_s7 = scalar_lea.sflag (!%p3641_p8), [#allocation3], %s3390_s29  ;;  %s3394_s13 = scalar_lea.vmem (!%p3641_p8), [#allocation2], %s2125_s6 }
  0x95   : > { %3102 = dma.done.wait (%p3333_p6), %s248_s7, 64  }
  0x96   : > { %3104 = vsyncadd (%p3333_p6), %s248_s7, 4294967232  ;;  %p3642_p4 = scmp.eq.s32.totalorder %s3195_s24, 0 }
  0x98   : > { %3106 = dma.done.wait (%p3642_p4), [#allocation6], 12480   ;;  %p3643_p10 = pmov %p3642_p4 }
  0x99   : > { %p3644_p11 = pmov %p3642_p4 }
  0x9a   : > { %3108 = vsyncadd (%p3643_p10), [#allocation6], 4294954816 }
  0x9b   : > { %3110 = dma.done.wait (%p3644_p11), [#allocation9], 26112   ;;  %p3645_p1 = pmov %p3642_p4 }
  0x9c   : > { %v3142_v0 = vmov 0   ;;  %v2723_v1 = vld [vmem:[#allocation5 + $0x4] ss:$48 sps:$4 sm:$0xff]   ;;  %v2725_v2 = vld [vmem:[#allocation5 + $0xc] ss:$48 sps:$4 sm:$0xff]   ;;  %s2226_s25 = sshll.u32 %s3195_s24, 4 }
  0x9d   : > { %3112 = vsyncadd (%p3645_p1), [#allocation9], 4294941184  ;;  %967 = vmatprep.mubr.bf16.mxu0 %v3142_v0  ;;  %1008 = vmatprep.mubr.bf16.mxu1 %v3142_v0  ;;  %v2727_v3 = vld [vmem:[#allocation5] ss:$48 sps:$4 sm:$0xff]   ;;  %v2728_v4 = vld [vmem:[#allocation5 + $0x8] ss:$48 sps:$4 sm:$0xff]   ;;  %s3579_s26 = scalar_lea.hbm %s3628_s5, %s2226_s25 }
  0x9e   : > { %935 = vmatprep.subr.bf16.mxu0 %v2723_v1  ;;  %976 = vmatprep.subr.bf16.mxu1 %v2725_v2  ;;  %v2729_v5 = vld [vmem:[#allocation5 + $0x64] ss:$48 sps:$4 sm:$0xff]   ;;  %v2731_v6 = vld [vmem:[#allocation5 + $0x6c] ss:$48 sps:$4 sm:$0xff]   ;;  %v2733_v7 = vld [vmem:[#allocation5 + $0x60] ss:$48 sps:$4 sm:$0xff]  }
  0x9f   : > { %936 = vmatpush1.bf16.msra.mxu0 %v2727_v3  ;;  %977 = vmatpush1.bf16.msra.mxu1 %v2728_v4  ;;  %v2734_v8 = vld [vmem:[#allocation5 + $0x68] ss:$48 sps:$4 sm:$0xff]   ;;  %v2735_v9 = vld [vmem:[#allocation5 + $0xc4] ss:$48 sps:$4 sm:$0xff]   ;;  %v2737_v10 = vld [vmem:[#allocation5 + $0xcc] ss:$48 sps:$4 sm:$0xff]  }
  0xa0   : > { %937 = vmatprep.subr.bf16.mxu0 %v2729_v5  ;;  %978 = vmatprep.subr.bf16.mxu1 %v2731_v6  ;;  %v2739_v11 = vld [vmem:[#allocation5 + $0xc0] ss:$48 sps:$4 sm:$0xff]   ;;  %v2740_v12 = vld [vmem:[#allocation5 + $0xc8] ss:$48 sps:$4 sm:$0xff]   ;;  %v2741_v13 = vld [vmem:[#allocation5 + $0x124] ss:$48 sps:$4 sm:$0xff]  }
  0xa1   : > { %v2743_v14 = vld [vmem:[#allocation5 + $0x12c] ss:$48 sps:$4 sm:$0xff]   ;;  %v2745_v15 = vld [vmem:[#allocation5 + $0x120] ss:$48 sps:$4 sm:$0xff]   ;;  %v2746_v16 = vld [vmem:[#allocation5 + $0x128] ss:$48 sps:$4 sm:$0xff]  }
  0xa2   : > { %v2747_v17 = vld [vmem:[#allocation5 + $0x184] ss:$48 sps:$4 sm:$0xff]   ;;  %v2749_v18 = vld [vmem:[#allocation5 + $0x18c] ss:$48 sps:$4 sm:$0xff]   ;;  %v2751_v19 = vld [vmem:[#allocation5 + $0x180] ss:$48 sps:$4 sm:$0xff]  }
  0xa3   : > { %938 = vmatpush1.bf16.msra.mxu0 %v2733_v7  ;;  %979 = vmatpush1.bf16.msra.mxu1 %v2734_v8  ;;  %v2752_v20 = vld [vmem:[#allocation5 + $0x188] ss:$48 sps:$4 sm:$0xff]   ;;  %v2753_v21 = vld [vmem:[#allocation5 + $0x1e4] ss:$48 sps:$4 sm:$0xff]   ;;  %v2755_v22 = vld [vmem:[#allocation5 + $0x1ec] ss:$48 sps:$4 sm:$0xff]  }
  0xa4   : > { %939 = vmatprep.subr.bf16.mxu0 %v2735_v9  ;;  %980 = vmatprep.subr.bf16.mxu1 %v2737_v10  ;;  %v2757_v23 = vld [vmem:[#allocation5 + $0x1e0] ss:$48 sps:$4 sm:$0xff]   ;;  %v2758_v24 = vld [vmem:[#allocation5 + $0x1e8] ss:$48 sps:$4 sm:$0xff]   ;;  %v2759_v25 = vld [vmem:[#allocation5 + $0x244] ss:$48 sps:$4 sm:$0xff]  }
  0xa5   : > { %v2761_v26 = vld [vmem:[#allocation5 + $0x24c] ss:$48 sps:$4 sm:$0xff]   ;;  %v2763_v27 = vld [vmem:[#allocation5 + $0x240] ss:$48 sps:$4 sm:$0xff]   ;;  %v2764_v28 = vld [vmem:[#allocation5 + $0x248] ss:$48 sps:$4 sm:$0xff]  }
  0xa6   : > { %v2765_v29 = vld [vmem:[#allocation5 + $0x2a4] ss:$48 sps:$4 sm:$0xff]   ;;  %v2767_v30 = vld [vmem:[#allocation5 + $0x2ac] ss:$48 sps:$4 sm:$0xff]   ;;  %v2769_v31 = vld [vmem:[#allocation5 + $0x2a0] ss:$48 sps:$4 sm:$0xff]  }
  0xa7   : > { %940 = vmatpush1.bf16.msra.mxu0 %v2739_v11  ;;  %981 = vmatpush1.bf16.msra.mxu1 %v2740_v12  ;;  %v2770_v32 = vld [vmem:[#allocation5 + $0x2a8] ss:$48 sps:$4 sm:$0xff]   ;;  %v2773_v33 = vld [vmem:[#allocation5 + $0x14] ss:$48 sps:$4 sm:$0xff]   ;;  %v2776_v34 = vld [vmem:[#allocation5 + $0x1c] ss:$48 sps:$4 sm:$0xff]  }
  0xa8   : > { %941 = vmatprep.subr.bf16.mxu0 %v2741_v13  ;;  %982 = vmatprep.subr.bf16.mxu1 %v2743_v14  ;;  %v3411_v35 = vld [vmem:[%s3394_s13] sm:$0xf]  ;;  %v2771_v36 = vld [vmem:[#allocation5 + $0x10] ss:$48 sps:$4 sm:$0xff]   ;;  %v2779_v38 = vld [vmem:[#allocation5 + $0x74] ss:$48 sps:$4 sm:$0xff]  }
  0xa9   : > { %v2774_v37 = vld [vmem:[#allocation5 + $0x18] ss:$48 sps:$4 sm:$0xff]   ;;  %v2782_v39 = vld [vmem:[#allocation5 + $0x7c] ss:$48 sps:$4 sm:$0xff]   ;;  %v2777_v40 = vld [vmem:[#allocation5 + $0x70] ss:$48 sps:$4 sm:$0xff]  }
  0xaa   : > { %v2780_v41 = vld [vmem:[#allocation5 + $0x78] ss:$48 sps:$4 sm:$0xff]   ;;  %v2785_v42 = vld [vmem:[#allocation5 + $0xd4] ss:$48 sps:$4 sm:$0xff]   ;;  %v2788_v43 = vld [vmem:[#allocation5 + $0xdc] ss:$48 sps:$4 sm:$0xff]  }
  0xab   : > { %942 = vmatpush1.bf16.msra.mxu0 %v2745_v15  ;;  %983 = vmatpush1.bf16.msra.mxu1 %v2746_v16  ;;  %v2783_v44 = vld [vmem:[#allocation5 + $0xd0] ss:$48 sps:$4 sm:$0xff]   ;;  %v2786_v45 = vld [vmem:[#allocation5 + $0xd8] ss:$48 sps:$4 sm:$0xff]   ;;  %v2791_v46 = vld [vmem:[#allocation5 + $0x134] ss:$48 sps:$4 sm:$0xff]  }
  0xac   : > { %943 = vmatprep.subr.bf16.mxu0 %v2747_v17  ;;  %984 = vmatprep.subr.bf16.mxu1 %v2749_v18  ;;  %v2794_v47 = vld [vmem:[#allocation5 + $0x13c] ss:$48 sps:$4 sm:$0xff]   ;;  %v2789_v48 = vld [vmem:[#allocation5 + $0x130] ss:$48 sps:$4 sm:$0xff]   ;;  %v2792_v49 = vld [vmem:[#allocation5 + $0x138] ss:$48 sps:$4 sm:$0xff]  }
  0xad   : > { %v2797_v50 = vld [vmem:[#allocation5 + $0x194] ss:$48 sps:$4 sm:$0xff]   ;;  %v2800_v51 = vld [vmem:[#allocation5 + $0x19c] ss:$48 sps:$4 sm:$0xff]   ;;  %v2795_v52 = vld [vmem:[#allocation5 + $0x190] ss:$48 sps:$4 sm:$0xff]  }
  0xae   : > { %v2798_v53 = vld [vmem:[#allocation5 + $0x198] ss:$48 sps:$4 sm:$0xff]   ;;  %v2803_v54 = vld [vmem:[#allocation5 + $0x1f4] ss:$48 sps:$4 sm:$0xff]   ;;  %v2806_v55 = vld [vmem:[#allocation5 + $0x1fc] ss:$48 sps:$4 sm:$0xff]  }
  0xaf   : > { %944 = vmatpush1.bf16.msra.mxu0 %v2751_v19  ;;  %985 = vmatpush1.bf16.msra.mxu1 %v2752_v20  ;;  %v2801_v56 = vld [vmem:[#allocation5 + $0x1f0] ss:$48 sps:$4 sm:$0xff]   ;;  %v2804_v57 = vld [vmem:[#allocation5 + $0x1f8] ss:$48 sps:$4 sm:$0xff]   ;;  %v2809_v58 = vld [vmem:[#allocation5 + $0x254] ss:$48 sps:$4 sm:$0xff]  }
  0xb0   : > { %945 = vmatprep.subr.bf16.mxu0 %v2753_v21  ;;  %986 = vmatprep.subr.bf16.mxu1 %v2755_v22  ;;  %v2812_v59 = vld [vmem:[#allocation5 + $0x25c] ss:$48 sps:$4 sm:$0xff]   ;;  %v2807_v60 = vld [vmem:[#allocation5 + $0x250] ss:$48 sps:$4 sm:$0xff]   ;;  %v2810_v61 = vld [vmem:[#allocation5 + $0x258] ss:$48 sps:$4 sm:$0xff]  }
  0xb1   : > { %v2815_v62 = vld [vmem:[#allocation5 + $0x2b4] ss:$48 sps:$4 sm:$0xff]   ;;  %v2818_v63 = vld [vmem:[#allocation5 + $0x2bc] ss:$48 sps:$4 sm:$0xff]   ;;  %v2813_v1 = vld [vmem:[#allocation5 + $0x2b0] ss:$48 sps:$4 sm:$0xff]  }
  0xb2   : > { %v2816_v2 = vld [vmem:[#allocation5 + $0x2b8] ss:$48 sps:$4 sm:$0xff]   ;;  %v2821_v3 = vld [vmem:[#allocation5 + $0x24] ss:$48 sps:$4 sm:$0xff]   ;;  %v2824_v4 = vld [vmem:[#allocation5 + $0x2c] ss:$48 sps:$4 sm:$0xff]  }
  0xb3   : > { %946 = vmatpush1.bf16.msra.mxu0 %v2757_v23  ;;  %987 = vmatpush1.bf16.msra.mxu1 %v2758_v24  ;;  %v2819_v5 = vld [vmem:[#allocation5 + $0x20] ss:$48 sps:$4 sm:$0xff]   ;;  %v2822_v6 = vld [vmem:[#allocation5 + $0x28] ss:$48 sps:$4 sm:$0xff]   ;;  %v2827_v7 = vld [vmem:[#allocation5 + $0x84] ss:$48 sps:$4 sm:$0xff]  }
  0xb4   : > { %947 = vmatprep.subr.bf16.mxu0 %v2759_v25  ;;  %988 = vmatprep.subr.bf16.mxu1 %v2761_v26  ;;  %v2830_v8 = vld [vmem:[#allocation5 + $0x8c] ss:$48 sps:$4 sm:$0xff]   ;;  %v2825_v9 = vld [vmem:[#allocation5 + $0x80] ss:$48 sps:$4 sm:$0xff]   ;;  %v2828_v10 = vld [vmem:[#allocation5 + $0x88] ss:$48 sps:$4 sm:$0xff]  }
  0xb5   : > { %v2833_v11 = vld [vmem:[#allocation5 + $0xe4] ss:$48 sps:$4 sm:$0xff]   ;;  %v2836_v12 = vld [vmem:[#allocation5 + $0xec] ss:$48 sps:$4 sm:$0xff]   ;;  %v2831_v13 = vld [vmem:[#allocation5 + $0xe0] ss:$48 sps:$4 sm:$0xff]  }
  0xb6   : > { %v2834_v14 = vld [vmem:[#allocation5 + $0xe8] ss:$48 sps:$4 sm:$0xff]   ;;  %v2839_v15 = vld [vmem:[#allocation5 + $0x144] ss:$48 sps:$4 sm:$0xff]   ;;  %v2842_v16 = vld [vmem:[#allocation5 + $0x14c] ss:$48 sps:$4 sm:$0xff]  }
  0xb7   : > { %948 = vmatpush1.bf16.msra.mxu0 %v2763_v27  ;;  %989 = vmatpush1.bf16.msra.mxu1 %v2764_v28  ;;  %v2837_v17 = vld [vmem:[#allocation5 + $0x140] ss:$48 sps:$4 sm:$0xff]   ;;  %v2840_v18 = vld [vmem:[#allocation5 + $0x148] ss:$48 sps:$4 sm:$0xff]   ;;  %v2845_v19 = vld [vmem:[#allocation5 + $0x1a4] ss:$48 sps:$4 sm:$0xff]  }
  0xb8   : > { %949 = vmatprep.subr.bf16.mxu0 %v2765_v29  ;;  %990 = vmatprep.subr.bf16.mxu1 %v2767_v30  ;;  %v2848_v20 = vld [vmem:[#allocation5 + $0x1ac] ss:$48 sps:$4 sm:$0xff]   ;;  %v2843_v21 = vld [vmem:[#allocation5 + $0x1a0] ss:$48 sps:$4 sm:$0xff]   ;;  %v2851_v22 = vld [vmem:[#allocation5 + $0x204] ss:$48 sps:$4 sm:$0xff]  }
  0xb9   : > { %v2854_v23 = vld [vmem:[#allocation5 + $0x20c] ss:$48 sps:$4 sm:$0xff]   ;;  %v2849_v24 = vld [vmem:[#allocation5 + $0x200] ss:$48 sps:$4 sm:$0xff]   ;;  %v2852_v25 = vld [vmem:[#allocation5 + $0x208] ss:$48 sps:$4 sm:$0xff]  }
  0xba   : > { %v2857_v26 = vld [vmem:[#allocation5 + $0x264] ss:$48 sps:$4 sm:$0xff]   ;;  %v2860_v27 = vld [vmem:[#allocation5 + $0x26c] ss:$48 sps:$4 sm:$0xff]   ;;  %v2855_v28 = vld [vmem:[#allocation5 + $0x260] ss:$48 sps:$4 sm:$0xff]  }
  0xbb   : > { %950 = vmatpush1.bf16.msra.mxu0 %v2769_v31  ;;  %991 = vmatpush1.bf16.msra.mxu1 %v2770_v32  ;;  %v2858_v29 = vld [vmem:[#allocation5 + $0x268] ss:$48 sps:$4 sm:$0xff]   ;;  %v2863_v30 = vld [vmem:[#allocation5 + $0x2c4] ss:$48 sps:$4 sm:$0xff]   ;;  %v2866_v31 = vld [vmem:[#allocation5 + $0x2cc] ss:$48 sps:$4 sm:$0xff]  }
  0xbc   : > { %1017 = vmatprep.subr.bf16.mxu0 %v2773_v33  ;;  %1058 = vmatprep.subr.bf16.mxu1 %v2776_v34  ;;  %v2861_v32 = vld [vmem:[#allocation5 + $0x2c0] ss:$48 sps:$4 sm:$0xff]   ;;  %v2864_v33 = vld [vmem:[#allocation5 + $0x2c8] ss:$48 sps:$4 sm:$0xff]   ;;  %s292_s9 = scalar_lea.vmem [#allocation11], %s3390_s29  ;;  %s1999_s28 = scalar_lea.sflag [#allocation4], %s3390_s29 }
  0xbd   : > { %v1401_v34 = vld [vmem:[#allocation10 + $0x80] sm:$0xff]  ;;  %s2011_s30 = sshll.u32 %s292_s9, 4  ;;  %p3646_p5 = scmp.ne.s32.totalorder %s3638_s23, 0  ;;  %s3581_s30 = int_to_ptr.vmem [resolvable:$true] %s2011_s30 }
  0xbe   : > { %968 = vmatmul.mubr.bf16.vlgmr.msra.gmra.mrb[0].mxu0 %v3411_v35  ;;  %1009 = vmatmul.mubr.bf16.vlgmr.msra.gmra.mrb[0].mxu1 %v3411_v35  ;;  %s3057_s14 = scalar_lea.vmem %s3581_s30, 16  ;;  %s3143_s24 = smov [#allocation11]  }
  0xbf   : > { %1018 = vmatpush1.bf16.msra.mxu0 %v2771_v36  ;;  %1059 = vmatpush1.bf16.msra.mxu1 %v2774_v37  ;;  %v1402_v36 = vld [vmem:[#allocation10 + $0x88] sm:$0xff]  ;;  %v1433_v37 = vld [vmem:[#allocation10 + $0x180] sm:$0xff]  ;;  %p3058_p6 = scmp.ne.s32.totalorder %s3581_s30, %s3057_s14  ;;  %s3061_s10 = sshll.u32 %s3143_s24, 4  ;;  %s3062_s10 = int_to_ptr.vmem [resolvable:$false] %s3061_s10 }
  0xc0   : > { %1019 = vmatprep.subr.bf16.mxu0 %v2779_v38  ;;  %1060 = vmatprep.subr.bf16.mxu1 %v2782_v39  ;;  %v2439_v38 = vpack.c.bf16 %v1402_v36, %v1401_v34  ;;  %v1434_v39 = vld [vmem:[#allocation10 + $0x188] sm:$0xff]  ;;  %v1444_v34 = vld [vmem:[#allocation10 + $0x1d8] sm:$0xff]  ;;  %v1395_v36 = vld [vmem:[#allocation10 + $0x50] sm:$0xff]  ;;  %s3063_s15 = scalar_lea.vmem %s3062_s10, 32  ;;  %p3064_p12 = scmp.lt.s32.totalorder %s3581_s30, %s3062_s10 }
  0xc1   : > { %1049 = vmatprep.mubr.bf16.mxu0 %v3142_v0  ;;  %1090 = vmatprep.mubr.bf16.mxu1 %v3142_v0  ;;  %p3059_p7 = pnand %p3058_p6, %p3646_p5  ;;  %p3065_p3 = scmp.lt.s32.totalorder %s3063_s15, %s3057_s14 }
  0xc3   : > { %1020 = vmatpush1.bf16.msra.mxu0 %v2777_v40  ;;  %1061 = vmatpush1.bf16.msra.mxu1 %v2780_v41  ;;  %v1385_v40 = vld [vmem:[#allocation10] sm:$0xff]  ;;  %v1386_v41 = vld [vmem:[#allocation10 + $0x8] sm:$0xff]  ;;  %p3060_p9 = pneg %p3059_p7  ;;  %p3066_p13 = por %p3065_p3, %p3064_p12 }
  0xc4   : > { %1021 = vmatprep.subr.bf16.mxu0 %v2785_v42  ;;  %1062 = vmatprep.subr.bf16.mxu1 %v2788_v43  ;;  %v2471_v42 = vpack.c.bf16 %v1434_v39, %v1433_v37  ;;  %v2441_v43 = vpack.c.bf16 %v1386_v41, %v1385_v40  ;;  %v1396_v37 = vld [vmem:[#allocation10 + $0x58] sm:$0xff]  ;;  %v1427_v40 = vld [vmem:[#allocation10 + $0x150] sm:$0xff] }
  0xc5   : > { %v2461_v39 = vpack.c.bf16 %v1396_v37, %v1395_v36  ;;  %v1428_v41 = vld [vmem:[#allocation10 + $0x158] sm:$0xff]  ;;  %p3067_p0 = pnand %p3066_p13, %p3060_p9 }
  0xc7   : > { %1022 = vmatpush1.bf16.msra.mxu0 %v2783_v44  ;;  %1063 = vmatpush1.bf16.msra.mxu1 %v2786_v45  ;;  %v1417_v44 = vld [vmem:[#allocation10 + $0x100] sm:$0xff]  ;;  %v1418_v45 = vld [vmem:[#allocation10 + $0x108] sm:$0xff] }
  0xc8   : > { %1023 = vmatprep.subr.bf16.mxu0 %v2791_v46  ;;  %1064 = vmatprep.subr.bf16.mxu1 %v2794_v47  ;;  %v2473_v46 = vpack.c.bf16 %v1418_v45, %v1417_v44  ;;  %v1403_v47 = vld [vmem:[#allocation10 + $0x90] sm:$0xff]  ;;  %v1414_v44 = vld [vmem:[#allocation10 + $0xe8] sm:$0xff]  ;;  %v1445_v45 = vld [vmem:[#allocation10 + $0x1e0] sm:$0xff] }
  0xcb   : > { %1024 = vmatpush1.bf16.msra.mxu0 %v2789_v48  ;;  %1065 = vmatpush1.bf16.msra.mxu1 %v2792_v49  ;;  %v1404_v48 = vld [vmem:[#allocation10 + $0x98] sm:$0xff]  ;;  %v1435_v49 = vld [vmem:[#allocation10 + $0x190] sm:$0xff] }
  0xcc   : > { %1025 = vmatprep.subr.bf16.mxu0 %v2797_v50  ;;  %1066 = vmatprep.subr.bf16.mxu1 %v2800_v51  ;;  %v1436_v50 = vld [vmem:[#allocation10 + $0x198] sm:$0xff]  ;;  %v1387_v51 = vld [vmem:[#allocation10 + $0x10] sm:$0xff] }
  0xcf   : > { %1026 = vmatpush1.bf16.msra.mxu0 %v2795_v52  ;;  %1067 = vmatpush1.bf16.msra.mxu1 %v2798_v53  ;;  %v1388_v52 = vld [vmem:[#allocation10 + $0x18] sm:$0xff]  ;;  %v2475_v53 = vpack.c.bf16 %v1436_v50, %v1435_v49  ;;  %v1398_v49 = vld [vmem:[#allocation10 + $0x68] sm:$0xff] }
  0xd0   : > { %1027 = vmatprep.subr.bf16.mxu0 %v2803_v54  ;;  %1068 = vmatprep.subr.bf16.mxu1 %v2806_v55  ;;  %v2445_v54 = vpack.c.bf16 %v1388_v52, %v1387_v51  ;;  %v1419_v55 = vld [vmem:[#allocation10 + $0x110] sm:$0xff]  ;;  %v1429_v51 = vld [vmem:[#allocation10 + $0x160] sm:$0xff]  ;;  %v1430_v52 = vld [vmem:[#allocation10 + $0x168] sm:$0xff] }
  0xd3   : > { %1028 = vmatpush1.bf16.msra.mxu0 %v2801_v56  ;;  %1069 = vmatpush1.bf16.msra.mxu1 %v2804_v57  ;;  %v1420_v56 = vld [vmem:[#allocation10 + $0x118] sm:$0xff] }
  0xd4   : > { %1029 = vmatprep.subr.bf16.mxu0 %v2809_v58  ;;  %1070 = vmatprep.subr.bf16.mxu1 %v2812_v59  ;;  %v2477_v57 = vpack.c.bf16 %v1420_v56, %v1419_v55  ;;  %v1405_v58 = vld [vmem:[#allocation10 + $0xa0] sm:$0xff]  ;;  %v1406_v59 = vld [vmem:[#allocation10 + $0xa8] sm:$0xff]  ;;  %v1416_v55 = vld [vmem:[#allocation10 + $0xf8] sm:$0xff] }
  0xd5   : > { %v1447_v56 = vld [vmem:[#allocation10 + $0x1f0] sm:$0xff] }
  0xd7   : > { %1030 = vmatpush1.bf16.msra.mxu0 %v2807_v60  ;;  %1071 = vmatpush1.bf16.msra.mxu1 %v2810_v61  ;;  %v1437_v60 = vld [vmem:[#allocation10 + $0x1a0] sm:$0xff]  ;;  %v2447_v61 = vpack.c.bf16 %v1406_v59, %v1405_v58  ;;  %v1448_v58 = vld [vmem:[#allocation10 + $0x1f8] sm:$0xff]  ;;  %v1399_v59 = vld [vmem:[#allocation10 + $0x70] sm:$0xff] }
  0xd8   : > { %1031 = vmatprep.subr.bf16.mxu0 %v2815_v62  ;;  %1072 = vmatprep.subr.bf16.mxu1 %v2818_v63  ;;  %v1438_v62 = vld [vmem:[#allocation10 + $0x1a8] sm:$0xff]  ;;  %v1389_v63 = vld [vmem:[#allocation10 + $0x20] sm:$0xff] }
  0xdb   : > { %1032 = vmatpush1.bf16.msra.mxu0 %v2813_v1  ;;  %1073 = vmatpush1.bf16.msra.mxu1 %v2816_v2  ;;  %v1390_v1 = vld [vmem:[#allocation10 + $0x28] sm:$0xff]  ;;  %v2479_v2 = vpack.c.bf16 %v1438_v62, %v1437_v60  ;;  %v1400_v60 = vld [vmem:[#allocation10 + $0x78] sm:$0xff] }
  0xdc   : > { %1099 = vmatprep.subr.bf16.mxu0 %v2821_v3  ;;  %1140 = vmatprep.subr.bf16.mxu1 %v2824_v4  ;;  %v2449_v3 = vpack.c.bf16 %v1390_v1, %v1389_v63  ;;  %v1421_v4 = vld [vmem:[#allocation10 + $0x120] sm:$0xff]  ;;  %v2469_v62 = vpack.c.bf16 %v1400_v60, %v1399_v59  ;;  %v1431_v63 = vld [vmem:[#allocation10 + $0x170] sm:$0xff]  ;;  %v1432_v1 = vld [vmem:[#allocation10 + $0x178] sm:$0xff] }
  0xde   : > { %1050 = vmatmul.mubr.bf16.vlgmr.msra.gmra.mrb[4].mxu0 %v3411_v35  ;;  %1091 = vmatmul.mubr.bf16.vlgmr.msra.gmra.mrb[4].mxu1 %v3411_v35 }
  0xdf   : > { %1100 = vmatpush1.bf16.msra.mxu0 %v2819_v5  ;;  %1141 = vmatpush1.bf16.msra.mxu1 %v2822_v6  ;;  %v1422_v5 = vld [vmem:[#allocation10 + $0x128] sm:$0xff] }
  0xe0   : > { %1101 = vmatprep.subr.bf16.mxu0 %v2827_v7  ;;  %1142 = vmatprep.subr.bf16.mxu1 %v2830_v8  ;;  %v2481_v6 = vpack.c.bf16 %v1422_v5, %v1421_v4  ;;  %v1407_v7 = vld [vmem:[#allocation10 + $0xb0] sm:$0xff]  ;;  %v1408_v8 = vld [vmem:[#allocation10 + $0xb8] sm:$0xff]  ;;  %v1466_v4 = vld [vmem:[#allocation10 + $0x288] sm:$0xff] }
  0xe1   : > { %1131 = vmatprep.mubr.bf16.mxu0 %v3142_v0  ;;  %1172 = vmatprep.mubr.bf16.mxu1 %v3142_v0  ;;  %v2846_v0 = vld [vmem:[#allocation5 + $0x1a8] ss:$48 sps:$4 sm:$0xff]   ;;  %v1497_v5 = vld [vmem:[#allocation10 + $0x380] sm:$0xff] }
  0xe3   : > { %1102 = vmatpush1.bf16.msra.mxu0 %v2825_v9  ;;  %1143 = vmatpush1.bf16.msra.mxu1 %v2828_v10  ;;  %v1439_v9 = vld [vmem:[#allocation10 + $0x1b0] sm:$0xff]  ;;  %v2451_v10 = vpack.c.bf16 %v1408_v8, %v1407_v7  ;;  %v1498_v7 = vld [vmem:[#allocation10 + $0x388] sm:$0xff] }
  0xe4   : > { %1103 = vmatprep.subr.bf16.mxu0 %v2833_v11  ;;  %1144 = vmatprep.subr.bf16.mxu1 %v2836_v12  ;;  %v1440_v11 = vld [vmem:[#allocation10 + $0x1b8] sm:$0xff]  ;;  %v1391_v12 = vld [vmem:[#allocation10 + $0x30] sm:$0xff]  ;;  %v2535_v8 = vpack.c.bf16 %v1498_v7, %v1497_v5 }
  0xe7   : > { %1104 = vmatpush1.bf16.msra.mxu0 %v2831_v13  ;;  %1145 = vmatpush1.bf16.msra.mxu1 %v2834_v14  ;;  %v1392_v13 = vld [vmem:[#allocation10 + $0x38] sm:$0xff]  ;;  %v2483_v14 = vpack.c.bf16 %v1440_v11, %v1439_v9  ;;  %v395_v9 = vlaneseq }
  0xe8   : > { %1105 = vmatprep.subr.bf16.mxu0 %v2839_v15  ;;  %1146 = vmatprep.subr.bf16.mxu1 %v2842_v16  ;;  %v2453_v15 = vpack.c.bf16 %v1392_v13, %v1391_v12  ;;  %v1423_v16 = vld [vmem:[#allocation10 + $0x130] sm:$0xff] }
  0xe9   : > { %v391_v13 = vld [vmem:[#allocation7] sm:$0xff] }
  0xeb   : > { %1106 = vmatpush1.bf16.msra.mxu0 %v2837_v17  ;;  %1147 = vmatpush1.bf16.msra.mxu1 %v2840_v18  ;;  %v1424_v17 = vld [vmem:[#allocation10 + $0x138] sm:$0xff] }
  0xec   : > { %1107 = vmatprep.subr.bf16.mxu0 %v2845_v19  ;;  %1148 = vmatprep.subr.bf16.mxu1 %v2848_v20  ;;  %v2485_v18 = vpack.c.bf16 %v1424_v17, %v1423_v16  ;;  %v1409_v19 = vld [vmem:[#allocation10 + $0xc0] sm:$0xff]  ;;  %v1410_v20 = vld [vmem:[#allocation10 + $0xc8] sm:$0xff] }
  0xef   : > { %1108 = vmatpush1.bf16.msra.mxu0 %v2843_v21  ;;  %1149 = vmatpush1.bf16.msra.mxu1 %v2846_v0  ;;  %v1441_v21 = vld [vmem:[#allocation10 + $0x1c0] sm:$0xff]  ;;  %v2455_v0 = vpack.c.bf16 %v1410_v20, %v1409_v19 }
  0xf0   : > { %1109 = vmatprep.subr.bf16.mxu0 %v2851_v22  ;;  %1150 = vmatprep.subr.bf16.mxu1 %v2854_v23  ;;  %v1442_v22 = vld [vmem:[#allocation10 + $0x1c8] sm:$0xff]  ;;  %v1393_v23 = vld [vmem:[#allocation10 + $0x40] sm:$0xff] }
  0xf3   : > { %1110 = vmatpush1.bf16.msra.mxu0 %v2849_v24  ;;  %1151 = vmatpush1.bf16.msra.mxu1 %v2852_v25  ;;  %v2487_v24 = vpack.c.bf16 %v1442_v22, %v1441_v21  ;;  %v1394_v25 = vld [vmem:[#allocation10 + $0x48] sm:$0xff] }
  0xf4   : > { %1111 = vmatprep.subr.bf16.mxu0 %v2857_v26  ;;  %1152 = vmatprep.subr.bf16.mxu1 %v2860_v27  ;;  %v1425_v26 = vld [vmem:[#allocation10 + $0x140] sm:$0xff]  ;;  %v2457_v27 = vpack.c.bf16 %v1394_v25, %v1393_v23 }
  0xf7   : > { %1112 = vmatpush1.bf16.msra.mxu0 %v2855_v28  ;;  %1153 = vmatpush1.bf16.msra.mxu1 %v2858_v29  ;;  %v1426_v28 = vld [vmem:[#allocation10 + $0x148] sm:$0xff] }
  0xf8   : > { %1113 = vmatprep.subr.bf16.mxu0 %v2863_v30  ;;  %1154 = vmatprep.subr.bf16.mxu1 %v2866_v31  ;;  %v2489_v29 = vpack.c.bf16 %v1426_v28, %v1425_v26  ;;  %v1411_v30 = vld [vmem:[#allocation10 + $0xd0] sm:$0xff]  ;;  %v1412_v31 = vld [vmem:[#allocation10 + $0xd8] sm:$0xff] }
  0xfb   : > { %1114 = vmatpush1.bf16.msra.mxu0 %v2861_v32  ;;  %1155 = vmatpush1.bf16.msra.mxu1 %v2864_v33  ;;  %v1443_v32 = vld [vmem:[#allocation10 + $0x1d0] sm:$0xff]  ;;  %v2459_v33 = vpack.c.bf16 %v1412_v31, %v1411_v30 }
  0xfc   : > { %2440 = vmatprep.subr.bf16.mxu0 %v2439_v38  ;;  %2472 = vmatprep.subr.bf16.mxu1 %v2471_v42  ;;  %v2491_v38 = vpack.c.bf16 %v1444_v34, %v1443_v32  ;;  %v2493_v42 = vpack.c.bf16 %v1428_v41, %v1427_v40 }
  0xfe   : > { %1132 = vmatmul.mubr.bf16.vlgmr.msra.gmra.mrb[8].mxu0 %v3411_v35  ;;  %1173 = vmatmul.mubr.bf16.vlgmr.msra.gmra.mrb[8].mxu1 %v3411_v35  ;;  %v2443_v35 = vpack.c.bf16 %v1404_v48, %v1403_v47  ;;  %v1446_v47 = vld [vmem:[#allocation10 + $0x1e8] sm:$0xff]  ;;  %v1397_v48 = vld [vmem:[#allocation10 + $0x60] sm:$0xff] }
  0xff   : > { %2442 = vmatpush3.bf16.msra.mxu0 %v2441_v43  ;;  %2474 = vmatpush3.bf16.msra.mxu1 %v2473_v46  ;;  %v1413_v43 = vld [vmem:[#allocation10 + $0xe0] sm:$0xff]  ;;  %v2465_v50 = vpack.c.bf16 %v1398_v49, %v1397_v48 }
 0x100   : > { %2444 = vmatprep.subr.bf16.mxu0 %v2443_v35  ;;  %2476 = vmatprep.subr.bf16.mxu1 %v2475_v53  ;;  %v2463_v46 = vpack.c.bf16 %v1414_v44, %v1413_v43  ;;  %v2495_v35 = vpack.c.bf16 %v1446_v47, %v1445_v45  ;;  %v2497_v53 = vpack.c.bf16 %v1430_v52, %v1429_v51 }
 0x103   : > { %2446 = vmatpush3.bf16.msra.mxu0 %v2445_v54  ;;  %2478 = vmatpush3.bf16.msra.mxu1 %v2477_v57  ;;  %v1415_v54 = vld [vmem:[#allocation10 + $0xf0] sm:$0xff] }
 0x104   : > { %2448 = vmatprep.subr.bf16.mxu0 %v2447_v61  ;;  %2480 = vmatprep.subr.bf16.mxu1 %v2479_v2  ;;  %v2467_v57 = vpack.c.bf16 %v1416_v55, %v1415_v54  ;;  %v2499_v61 = vpack.c.bf16 %v1448_v58, %v1447_v56  ;;  %v2501_v2 = vpack.c.bf16 %v1432_v1, %v1431_v63 }
 0x107   : > { %2450 = vmatpush3.bf16.msra.mxu0 %v2449_v3  ;;  %2482 = vmatpush3.bf16.msra.mxu1 %v2481_v6  ;;  %v1465_v3 = vld [vmem:[#allocation10 + $0x280] sm:$0xff] }
 0x108   : > { %2452 = vmatprep.subr.bf16.mxu0 %v2451_v10  ;;  %2484 = vmatprep.subr.bf16.mxu1 %v2483_v14  ;;  %v2503_v6 = vpack.c.bf16 %v1466_v4, %v1465_v3  ;;  %v3423_v10 = vshrl.u32 %v395_v9, 7 }
 0x10a   : > { %v397_v11 = vsub.s32 0, %v3423_v10  ;;  %v405_v12 = vsub.s32 2, %v3423_v10  ;;  %v401_v14 = vsub.s32 1, %v3423_v10  ;;  %v413_v55 = vsub.s32 4, %v3423_v10 }
 0x10b   : > { %2454 = vmatpush3.bf16.msra.mxu0 %v2453_v15  ;;  %2486 = vmatpush3.bf16.msra.mxu1 %v2485_v18  ;;  %v409_v15 = vsub.s32 3, %v3423_v10  ;;  %v421_v56 = vsub.s32 6, %v3423_v10  ;;  %v425_v58 = vsub.s32 7, %v3423_v10 }
 0x10c   : > { %2456 = vmatprep.subr.bf16.mxu0 %v2455_v0  ;;  %2488 = vmatprep.subr.bf16.mxu1 %v2487_v24  ;;  %v398_v16 = vrot.slane %v391_v13, %v397_v11  ;;  %v406_v17 = vrot.slane %v391_v13, %v405_v12  ;;  %v402_v18 = vrot.slane %v391_v13, %v401_v14 }
 0x10d   : > { %v410_v19 = vrot.slane %v391_v13, %v409_v15  ;;  %v414_v59 = vrot.slane %v391_v13, %v413_v55  ;;  %v422_v60 = vrot.slane %v391_v13, %v421_v56 }
 0x10f   : > { %2458 = vmatpush3.bf16.msra.mxu0 %v2457_v27  ;;  %2490 = vmatpush3.bf16.msra.mxu1 %v2489_v29 }
 0x110   : > { %2460 = vmatprep.subr.bf16.mxu0 %v2459_v33  ;;  %2492 = vmatprep.subr.bf16.mxu1 %v2491_v38 }
 0x113   : > { %2462 = vmatpush3.bf16.msra.mxu0 %v2461_v39  ;;  %2494 = vmatpush3.bf16.msra.mxu1 %v2493_v42 }
 0x114   : > { %2464 = vmatprep.subr.bf16.mxu0 %v2463_v46  ;;  %2496 = vmatprep.subr.bf16.mxu1 %v2495_v35 }
 0x117   : > { %2466 = vmatpush3.bf16.msra.mxu0 %v2465_v50  ;;  %2498 = vmatpush3.bf16.msra.mxu1 %v2497_v53 }
 0x118   : > { %2468 = vmatprep.subr.bf16.mxu0 %v2467_v57  ;;  %2500 = vmatprep.subr.bf16.mxu1 %v2499_v61  ;;  %v417_v57 = vsub.s32 5, %v3423_v10 }
 0x11a   : > { %v418_v61 = vrot.slane %v391_v13, %v417_v57 }
 0x11b   : > { %2470 = vmatpush3.bf16.msra.mxu0 %v2469_v62  ;;  %2502 = vmatpush3.bf16.msra.mxu1 %v2501_v2  ;;  %v426_v62 = vrot.slane %v391_v13, %v425_v58 }
 0x11c   : > { %2504 = vmatprep.subr.bf16.mxu0 %v2503_v6  ;;  %2536 = vmatprep.subr.bf16.mxu1 %v2535_v8 }
 0x191   : > { %v969_v20 = vpop.f32.mrb[0].mxu0  ;;  %v1010_v21 = vpop.f32.mrb[0].mxu1 }
 0x192   : > { %v3437_v0 = vadd.f32 %v969_v20, %v398_v16  ;;  %v3439_v22 = vadd.f32 %v1010_v21, %v406_v17  ;;  %v971_v23 = vpop.f32.mrb[1].mxu0  ;;  %v1012_v24 = vpop.f32.mrb[1].mxu1 }
 0x193   : > { %v3441_v25 = vadd.f32 %v971_v23, %v402_v18  ;;  %v3443_v26 = vadd.f32 %v1012_v24, %v410_v19  ;;  %v973_v27 = vpop.f32.mrb[2].mxu0  ;;  %v1014_v28 = vpop.f32.mrb[2].mxu1  ;;  %v1289_v24 = vld [vmem:[#allocation8] sm:$0xff] }
 0x194   : > { %v1181_v29 = vmin.f32 %v3437_v0, 20.0  ;;  %v1183_v30 = vmin.f32 %v3439_v22, 20.0  ;;  %v974_v31 = vpop.f32.mrb[3].mxu0  ;;  %v1015_v32 = vpop.f32.mrb[3].mxu1 }
 0x195   : > { %v1182_v33 = vmin.f32 %v3441_v25, 20.0  ;;  %v1184_v34 = vmin.f32 %v3443_v26, 20.0  ;;  %v1291_v32 = vld [vmem:[#allocation8 + $0x10] sm:$0xff] }
 0x196   : > { %v1193_v36 = vmul.f32 1.442695, %v1181_v29  ;;  %v1197_v37 = vmul.f32 1.442695, %v1183_v30 }
 0x197   : > { %v1195_v38 = vmul.f32 1.442695, %v1182_v33  ;;  %v1199_v39 = vmul.f32 1.442695, %v1184_v34 }
 0x198   : > { %2867 = vpow2.f32 %v1193_v36 }
 0x199   : > { %2869 = vpow2.f32 %v1197_v37 }
 0x19a   : > { %2871 = vpow2.f32 %v1195_v38  ;;  %v1290_v38 = vld [vmem:[#allocation8 + $0x8] sm:$0xff] }
 0x19b   : > { %2873 = vpow2.f32 %v1199_v39 }
 0x1a2   : > { %v2868_v40 = vpop.eup %2867 }
 0x1a3   : > { %v2870_v41 = vpop.eup %2869  ;;  %v1217_v42 = vadd.f32 2.0, %v2868_v40 }
 0x1a4   : > { %v2872_v43 = vpop.eup %2871  ;;  %v1219_v44 = vadd.f32 2.0, %v2870_v41 }
 0x1a5   : > { %v2874_v45 = vpop.eup %2873  ;;  %v1229_v46 = vmul.f32 %v2868_v40, %v1217_v42  ;;  %v1218_v47 = vadd.f32 2.0, %v2872_v43 }
 0x1a6   : > { %v1231_v48 = vmul.f32 %v2870_v41, %v1219_v44  ;;  %v1220_v49 = vadd.f32 2.0, %v2874_v45  ;;  %v1292_v44 = vld [vmem:[#allocation8 + $0x18] sm:$0xff] }
 0x1a7   : > { %v1241_v35 = vadd.f32 2.0, %v1229_v46  ;;  %v1230_v50 = vmul.f32 %v2872_v43, %v1218_v47 }
 0x1a8   : > { %v1243_v51 = vadd.f32 2.0, %v1231_v48  ;;  %v1232_v52 = vmul.f32 %v2874_v45, %v1220_v49 }
 0x1a9   : > { %2875 = vrcp.f32 %v1241_v35  ;;  %v1242_v53 = vadd.f32 2.0, %v1230_v50 }
 0x1aa   : > { %2877 = vrcp.f32 %v1243_v51  ;;  %v1244_v54 = vadd.f32 2.0, %v1232_v52 }
 0x1ab   : > { %2879 = vrcp.f32 %v1242_v53 }
 0x1ac   : > { %2881 = vrcp.f32 %v1244_v54 }
 0x1b1   : > { %v1051_v63 = vpop.f32.mrb[4].mxu0  ;;  %v1092_v1 = vpop.f32.mrb[4].mxu1 }
 0x1b2   : > { %v3453_v2 = vadd.f32 %v1051_v63, %v414_v59  ;;  %v3455_v3 = vadd.f32 %v1092_v1, %v422_v60  ;;  %v1053_v4 = vpop.f32.mrb[5].mxu0  ;;  %v1094_v5 = vpop.f32.mrb[5].mxu1  ;;  %v1450_v59 = vld [vmem:[#allocation10 + $0x208] sm:$0xff] }
 0x1b3   : > { %v2876_v6 = vpop.eup %2875  ;;  %v3457_v7 = vadd.f32 %v1053_v4, %v418_v61  ;;  %v3459_v8 = vadd.f32 %v1094_v5, %v426_v62  ;;  %v1055_v9 = vpop.f32.mrb[6].mxu0  ;;  %v1481_v62 = vld [vmem:[#allocation10 + $0x300] sm:$0xff]  ;;  %v1482_v63 = vld [vmem:[#allocation10 + $0x308] sm:$0xff] }
 0x1b4   : > { %v1096_v16 = vpop.f32.mrb[6].mxu1  ;;  %v2878_v17 = vpop.eup %2877  ;;  %v1265_v18 = vmul.f32 %v2876_v6, %v1229_v46  ;;  %v1185_v19 = vmin.f32 %v3453_v2, 20.0  ;;  %v1187_v13 = vmin.f32 %v3455_v3, 20.0  ;;  %v1467_v9 = vld [vmem:[#allocation10 + $0x290] sm:$0xff] }
 0x1b5   : > { %v1056_v20 = vpop.f32.mrb[7].mxu0  ;;  %v1097_v21 = vpop.f32.mrb[7].mxu1  ;;  %v1267_v27 = vmul.f32 %v2878_v17, %v1231_v48  ;;  %v1186_v28 = vmin.f32 %v3457_v7, 20.0  ;;  %v1188_v29 = vmin.f32 %v3459_v8, 20.0  ;;  %v1468_v16 = vld [vmem:[#allocation10 + $0x298] sm:$0xff] }
 0x1b6   : > { %v2880_v23 = vpop.eup %2879  ;;  %v1277_v31 = vmul.f32 %v1265_v18, %v3437_v0  ;;  %v1201_v34 = vmul.f32 1.442695, %v1185_v19  ;;  %v1205_v36 = vmul.f32 1.442695, %v1187_v13 }
 0x1b7   : > { %v2882_v30 = vpop.eup %2881  ;;  %v1266_v33 = vmul.f32 %v2880_v23, %v1230_v50  ;;  %v1279_v37 = vmul.f32 %v1267_v27, %v3439_v22  ;;  %v1203_v40 = vmul.f32 1.442695, %v1186_v28  ;;  %v1207_v41 = vmul.f32 1.442695, %v1188_v29  ;;  %v1499_v29 = vld [vmem:[#allocation10 + $0x390] sm:$0xff] }
 0x1b8   : > { %v1268_v39 = vmul.f32 %v2882_v30, %v1232_v52  ;;  %v1301_v42 = vadd.f32 %v1289_v24, %v1277_v31  ;;  %2883 = vpow2.f32 %v1201_v34  ;;  %v2537_v28 = vpack.c.bf16 %v1482_v63, %v1481_v62  ;;  %v1500_v30 = vld [vmem:[#allocation10 + $0x398] sm:$0xff]  ;;  %v3481_v62 = vld [vmem:[#allocation10 + $0x230] sm:$0xff] }
 0x1b9   : > { %v1278_v43 = vmul.f32 %v1266_v33, %v3441_v25  ;;  %v1303_v45 = vadd.f32 %v1291_v32, %v1279_v37  ;;  %2885 = vpow2.f32 %v1205_v36  ;;  %v2507_v34 = vpack.c.bf16 %v1468_v16, %v1467_v9  ;;  %v3483_v63 = vld [vmem:[#allocation10 + $0x238] sm:$0xff]  ;;  %v3489_v9 = vld [vmem:[#allocation10 + $0x330] sm:$0xff] }
 0x1ba   : > { %v1280_v46 = vmul.f32 %v1268_v39, %v3443_v26  ;;  %v1313_v0 = vrot.slane %v1301_v42, 4  ;;  %2887 = vpow2.f32 %v1203_v40  ;;  %v1449_v26 = vld [vmem:[#allocation10 + $0x200] sm:$0xff]  ;;  %v1451_v40 = vld [vmem:[#allocation10 + $0x210] sm:$0xff]  ;;  %v3491_v16 = vld [vmem:[#allocation10 + $0x338] sm:$0xff] }
 0x1bb   : > { %v1302_v47 = vadd.f32 %v1290_v38, %v1278_v43  ;;  %v1325_v48 = vrot.slane %v1303_v45, 4  ;;  %2889 = vpow2.f32 %v1207_v41  ;;  %v2505_v20 = vpack.c.bf16 %v1450_v59, %v1449_v26  ;;  %v1452_v41 = vld [vmem:[#allocation10 + $0x218] sm:$0xff]  ;;  %v1471_v26 = vld [vmem:[#allocation10 + $0x2b0] sm:$0xff] }
 0x1bc   : > { %v1304_v49 = vadd.f32 %v1292_v44, %v1280_v46  ;;  %v1314_v22 = vmax.f32 %v1301_v42, %v1313_v0  ;;  %v1483_v42 = vld [vmem:[#allocation10 + $0x310] sm:$0xff]  ;;  %v2539_v46 = vpack.c.bf16 %v1500_v30, %v1499_v29  ;;  %v1484_v0 = vld [vmem:[#allocation10 + $0x318] sm:$0xff]  ;;  %v2549_v10 = vpack.c.bf16 %v3491_v16, %v3489_v9  ;;  %v3513_v30 = vld [vmem:[#allocation10 + $0x348] sm:$0xff] }
 0x1bd   : > { %v1319_v35 = vrot.slane %v1302_v47, 4  ;;  %v1326_v50 = vmax.f32 %v1303_v45, %v1325_v48  ;;  %v1470_v48 = vld [vmem:[#allocation10 + $0x2a8] sm:$0xff]  ;;  %v1472_v59 = vld [vmem:[#allocation10 + $0x2b8] sm:$0xff] }
 0x1be   : > { %v1331_v51 = vrot.slane %v1304_v49, 4  ;;  %v1315_v52 = vrot.slane %v1314_v22, 2 }
 0x1bf   : > { %v1320_v53 = vmax.f32 %v1302_v47, %v1319_v35  ;;  %v1327_v54 = vrot.slane %v1326_v50, 2  ;;  %v1469_v47 = vld [vmem:[#allocation10 + $0x2a0] sm:$0xff]  ;;  %v1502_v35 = vld [vmem:[#allocation10 + $0x3a8] sm:$0xff] }
 0x1c0   : > { %v1332_v25 = vmax.f32 %v1304_v49, %v1331_v51  ;;  %v1316_v55 = vmax.f32 %v1314_v22, %v1315_v52  ;;  %v1501_v22 = vld [vmem:[#allocation10 + $0x3a0] sm:$0xff]  ;;  %v2509_v51 = vpack.c.bf16 %v1452_v41, %v1451_v40  ;;  %v3522_v40 = vld [vmem:[#allocation10 + $0x2d0] sm:$0xff]  ;;  %v3524_v41 = vld [vmem:[#allocation10 + $0x2d8] sm:$0xff] }
 0x1c1   : > { %v1321_v56 = vrot.slane %v1320_v53, 2  ;;  %v1328_v57 = vmax.f32 %v1326_v50, %v1327_v54  ;;  %v1453_v52 = vld [vmem:[#allocation10 + $0x220] sm:$0xff]  ;;  %v2541_v54 = vpack.c.bf16 %v1484_v0, %v1483_v42 }
 0x1c2   : > { %v1333_v58 = vrot.slane %v1332_v25, 2  ;;  %v2884_v60 = vpop.eup %2883  ;;  %v1317_v6 = vrot.slane %v1316_v55, 1 }
 0x1c3   : > { %v1322_v61 = vmax.f32 %v1320_v53, %v1321_v56  ;;  %v2886_v1 = vpop.eup %2885  ;;  %v1221_v4 = vadd.f32 2.0, %v2884_v60  ;;  %v1329_v13 = vrot.slane %v1328_v57, 1  ;;  %v1454_v53 = vld [vmem:[#allocation10 + $0x228] sm:$0xff]  ;;  %v1485_v56 = vld [vmem:[#allocation10 + $0x320] sm:$0xff] }
 0x1c4   : > { %v1334_v5 = vmax.f32 %v1332_v25, %v1333_v58  ;;  %v2888_v17 = vpop.eup %2887  ;;  %v1223_v18 = vadd.f32 2.0, %v2886_v1  ;;  %v1318_v39 = vmax.f32 %v1316_v55, %v1317_v6  ;;  %v2511_v25 = vpack.c.bf16 %v1470_v48, %v1469_v47  ;;  %v392_v55 = vld [vmem:[#allocation7 + $0x8] sm:$0xf] }
 0x1c5   : > { %v1323_v19 = vrot.slane %v1322_v61, 1  ;;  %v2890_v21 = vpop.eup %2889  ;;  %v3469_v23 = vmul.f32 %v2884_v60, %v1221_v4  ;;  %v1222_v24 = vadd.f32 2.0, %v2888_v17  ;;  %v1330_v45 = vmax.f32 %v1328_v57, %v1329_v13  ;;  %v1486_v57 = vld [vmem:[#allocation10 + $0x328] sm:$0xff]  ;;  %v1503_v60 = vld [vmem:[#allocation10 + $0x3b0] sm:$0xff] }
 0x1c6   : > { %v1335_v27 = vrot.slane %v1334_v5, 1  ;;  %v3471_v31 = vmul.f32 %v2886_v1, %v1223_v18  ;;  %v1224_v32 = vadd.f32 2.0, %v2890_v21  ;;  %v2543_v58 = vpack.c.bf16 %v1502_v35, %v1501_v22  ;;  %v1474_v13 = vld [vmem:[#allocation10 + $0x2c8] sm:$0xff]  ;;  %v1293_v22 = vld [vmem:[#allocation8 + $0x20] sm:$0xff]  ;;  %v1295_v35 = vld [vmem:[#allocation8 + $0x30] sm:$0xff] }
 0x1c7   : > { %v1324_v33 = vmax.f32 %v1322_v61, %v1323_v19  ;;  %v1245_v36 = vadd.f32 2.0, %v3469_v23  ;;  %v3474_v37 = vmul.f32 %v2888_v17, %v1222_v24  ;;  %v1504_v61 = vld [vmem:[#allocation10 + $0x3b8] sm:$0xff]  ;;  %v430_v1 = vrot.slane %v392_v55, %v397_v11  ;;  %v3493_v17 = vld [vmem:[#allocation10 + $0x2c0] sm:$0xff] }
 0x1c8   : > { %v1336_v38 = vmax.f32 %v1334_v5, %v1335_v27  ;;  %v1247_v43 = vadd.f32 2.0, %v3471_v31  ;;  %v3477_v44 = vmul.f32 %v2890_v21, %v1224_v32  ;;  %v438_v4 = vrot.slane %v392_v55, %v405_v12  ;;  %v3501_v12 = vld [vmem:[#allocation10 + $0x3c8] sm:$0xff]  ;;  %v3503_v24 = vld [vmem:[#allocation10 + $0x240] sm:$0xff] }
 0x1c9   : > { %1641 = vmatprep.mubr.f32.mxu0 %v1324_v33  ;;  %2891 = vrcp.f32 %v1245_v36  ;;  %v1246_v49 = vadd.f32 2.0, %v3474_v37  ;;  %v2513_v5 = vpack.c.bf16 %v1454_v53, %v1453_v52  ;;  %v2545_v6 = vpack.c.bf16 %v1486_v57, %v1485_v56  ;;  %v3505_v27 = vld [vmem:[#allocation10 + $0x248] sm:$0xff] }
 0x1ca   : > { %1711 = vmatprep.mubr.f32.mxu1 %v1336_v38  ;;  %1642 = vmatmul.mubr.f32.vlgmr.msra.gmra.mrb[12].mxu0 %v1318_v39  ;;  %2893 = vrcp.f32 %v1247_v43  ;;  %v1248_v50 = vadd.f32 2.0, %v3477_v44  ;;  %v434_v18 = vrot.slane %v392_v55, %v401_v14  ;;  %v442_v19 = vrot.slane %v392_v55, %v409_v15  ;;  %v3511_v15 = vld [vmem:[#allocation10 + $0x340] sm:$0xff]  ;;  %v1294_v56 = vld [vmem:[#allocation8 + $0x28] sm:$0xff] }
 0x1cb   : > { %1712 = vmatmul.mubr.f32.vlgmr.msra.gmra.mrb[12].mxu1 %v1330_v45  ;;  %2506 = vmatpush3.bf16.msra.mxu0 %v2505_v20  ;;  %2895 = vrcp.f32 %v1246_v49  ;;  %v2515_v11 = vpack.c.bf16 %v1472_v59, %v1471_v26  ;;  %v3499_v20 = vld [vmem:[#allocation10 + $0x3c0] sm:$0xff]  ;;  %v2547_v21 = vpack.c.bf16 %v1504_v61, %v1503_v60  ;;  %v2517_v14 = vpack.c.bf16 %v3483_v63, %v3481_v62  ;;  %v1507_v26 = vld [vmem:[#allocation10 + $0x3d0] sm:$0xff]  ;;  %v1508_v59 = vld [vmem:[#allocation10 + $0x3d8] sm:$0xff] }
 0x1cc   : > { %2538 = vmatpush3.bf16.msra.mxu1 %v2537_v28  ;;  %2508 = vmatprep.subr.bf16.mxu0 %v2507_v34  ;;  %2897 = vrcp.f32 %v1248_v50  ;;  %v2519_v38 = vpack.c.bf16 %v1474_v13, %v3493_v17  ;;  %v2551_v39 = vpack.c.bf16 %v3501_v12, %v3499_v20  ;;  %v2521_v47 = vpack.c.bf16 %v3505_v27, %v3503_v24  ;;  %v1491_v17 = vld [vmem:[#allocation10 + $0x350] sm:$0xff]  ;;  %v1477_v13 = vld [vmem:[#allocation10 + $0x2e0] sm:$0xff]  ;;  %v1478_v20 = vld [vmem:[#allocation10 + $0x2e8] sm:$0xff] }
 0x1cd   : > { %2540 = vmatprep.subr.bf16.mxu1 %v2539_v46  ;;  %v1510_v24 = vld [vmem:[#allocation10 + $0x3e8] sm:$0xff] }
 0x1cf   : > { %2510 = vmatpush3.bf16.msra.mxu0 %v2509_v51 }
 0x1d0   : > { %2542 = vmatpush3.bf16.msra.mxu1 %v2541_v54  ;;  %2512 = vmatprep.subr.bf16.mxu0 %v2511_v25  ;;  %v2553_v54 = vpack.c.bf16 %v3513_v30, %v3511_v15  ;;  %v1461_v15 = vld [vmem:[#allocation10 + $0x260] sm:$0xff]  ;;  %v1462_v30 = vld [vmem:[#allocation10 + $0x268] sm:$0xff] }
 0x1d1   : > { %2544 = vmatprep.subr.bf16.mxu1 %v2543_v58  ;;  %v1133_v28 = vpop.f32.mrb[8].mxu0  ;;  %v1174_v29 = vpop.f32.mrb[8].mxu1  ;;  %v2523_v58 = vpack.c.bf16 %v3524_v41, %v3522_v40  ;;  %v1479_v40 = vld [vmem:[#allocation10 + $0x2f0] sm:$0xff]  ;;  %v1480_v41 = vld [vmem:[#allocation10 + $0x2f8] sm:$0xff] }
 0x1d2   : > { %v3515_v32 = vadd.f32 %v1133_v28, %v430_v1  ;;  %v3517_v33 = vadd.f32 %v1174_v29, %v438_v4  ;;  %v1135_v34 = vpop.f32.mrb[9].mxu0  ;;  %v1176_v36 = vpop.f32.mrb[9].mxu1  ;;  %v1459_v4 = vld [vmem:[#allocation10 + $0x250] sm:$0xff] }
 0x1d3   : > { %2514 = vmatpush3.bf16.msra.mxu0 %v2513_v5  ;;  %v2892_v42 = vpop.eup %2891  ;;  %v3526_v43 = vadd.f32 %v1135_v34, %v434_v18  ;;  %v3528_v45 = vadd.f32 %v1176_v36, %v442_v19  ;;  %v1137_v46 = vpop.f32.mrb[10].mxu0  ;;  %v1492_v18 = vld [vmem:[#allocation10 + $0x358] sm:$0xff]  ;;  %v1493_v34 = vld [vmem:[#allocation10 + $0x360] sm:$0xff] }
 0x1d4   : > { %2546 = vmatpush3.bf16.msra.mxu1 %v2545_v6  ;;  %v1178_v0 = vpop.f32.mrb[10].mxu1  ;;  %2516 = vmatprep.subr.bf16.mxu0 %v2515_v11  ;;  %v2894_v48 = vpop.eup %2893  ;;  %v1269_v49 = vmul.f32 %v2892_v42, %v3469_v23  ;;  %v1189_v50 = vmin.f32 %v3515_v32, 20.0  ;;  %v1191_v51 = vmin.f32 %v3517_v33, 20.0  ;;  %v1296_v11 = vld [vmem:[#allocation8 + $0x38] sm:$0xff]  ;;  %v2557_v29 = vpack.c.bf16 %v1492_v18, %v1491_v17  ;;  %v1546_v17 = vld [vmem:[#allocation10 + $0x508] sm:$0xff] }
 0x1d5   : > { %v1138_v52 = vpop.f32.mrb[11].mxu0  ;;  %v1179_v53 = vpop.f32.mrb[11].mxu1  ;;  %2548 = vmatprep.subr.bf16.mxu1 %v2547_v21  ;;  %v1271_v55 = vmul.f32 %v2894_v48, %v3471_v31  ;;  %v1190_v57 = vmin.f32 %v3526_v43, 20.0  ;;  %v1192_v23 = vmin.f32 %v3528_v45, 20.0  ;;  %v1460_v31 = vld [vmem:[#allocation10 + $0x258] sm:$0xff]  ;;  %v1509_v21 = vld [vmem:[#allocation10 + $0x3e0] sm:$0xff] }
 0x1d6   : > { %v2896_v25 = vpop.eup %2895  ;;  %v1281_v61 = vmul.f32 %v1269_v49, %v3453_v2  ;;  %v1209_v63 = vmul.f32 1.442695, %v1189_v50  ;;  %v1213_v1 = vmul.f32 1.442695, %v1191_v51  ;;  %v1511_v0 = vld [vmem:[#allocation10 + $0x3f0] sm:$0xff]  ;;  %v1464_v50 = vld [vmem:[#allocation10 + $0x278] sm:$0xff] }
 0x1d7   : > { %v2898_v60 = vpop.eup %2897  ;;  %v1270_v62 = vmul.f32 %v2896_v25, %v3474_v37  ;;  %2518 = vmatpush3.bf16.msra.mxu0 %v2517_v14  ;;  %v1283_v5 = vmul.f32 %v1271_v55, %v3455_v3  ;;  %v1211_v9 = vmul.f32 1.442695, %v1190_v57  ;;  %v1215_v16 = vmul.f32 1.442695, %v1192_v23  ;;  %v1495_v51 = vld [vmem:[#allocation10 + $0x370] sm:$0xff]  ;;  %v1496_v55 = vld [vmem:[#allocation10 + $0x378] sm:$0xff] }
 0x1d8   : > { %v1272_v6 = vmul.f32 %v2898_v60, %v3477_v44  ;;  %2550 = vmatpush3.bf16.msra.mxu1 %v2549_v10  ;;  %2520 = vmatprep.subr.bf16.mxu0 %v2519_v38  ;;  %v1305_v19 = vadd.f32 %v1293_v22, %v1281_v61  ;;  %2899 = vpow2.f32 %v1209_v63  ;;  %v2555_v37 = vpack.c.bf16 %v1508_v59, %v1507_v26  ;;  %v1530_v57 = vld [vmem:[#allocation10 + $0x488] sm:$0xff]  ;;  %v1561_v59 = vld [vmem:[#allocation10 + $0x580] sm:$0xff] }
 0x1d9   : > { %v1282_v2 = vmul.f32 %v1270_v62, %v3457_v7  ;;  %2552 = vmatprep.subr.bf16.mxu1 %v2551_v39  ;;  %v1307_v12 = vadd.f32 %v1295_v35, %v1283_v5  ;;  %2901 = vpow2.f32 %v1213_v1  ;;  %v2525_v44 = vpack.c.bf16 %v1460_v31, %v1459_v4  ;;  %v1494_v39 = vld [vmem:[#allocation10 + $0x368] sm:$0xff]  ;;  %v1463_v35 = vld [vmem:[#allocation10 + $0x270] sm:$0xff]  ;;  %v3548_v63 = vld [vmem:[#allocation10 + $0x400] sm:$0xff] }
 0x1da   : > { %v1284_v3 = vmul.f32 %v1272_v6, %v3459_v8  ;;  %v1337_v27 = vrot.slane %v1305_v19, 4  ;;  %2903 = vpow2.f32 %v1211_v9  ;;  %v2527_v10 = vpack.c.bf16 %v1478_v20, %v1477_v13  ;;  %v1562_v60 = vld [vmem:[#allocation10 + $0x588] sm:$0xff]  ;;  %v1531_v13 = vld [vmem:[#allocation10 + $0x490] sm:$0xff]  ;;  %v1532_v20 = vld [vmem:[#allocation10 + $0x498] sm:$0xff] }
 0x1db   : > { %v1306_v28 = vadd.f32 %v1294_v56, %v1282_v2  ;;  %2522 = vmatpush3.bf16.msra.mxu0 %v2521_v47  ;;  %v1349_v14 = vrot.slane %v1307_v12, 4  ;;  %2905 = vpow2.f32 %v1215_v16  ;;  %v2559_v38 = vpack.c.bf16 %v1510_v24, %v1509_v21  ;;  %v1512_v47 = vld [vmem:[#allocation10 + $0x3f8] sm:$0xff]  ;;  %v1529_v56 = vld [vmem:[#allocation10 + $0x480] sm:$0xff]  ;;  %v3550_v1 = vld [vmem:[#allocation10 + $0x408] sm:$0xff] }
 0x1dc   : > { %v1308_v7 = vadd.f32 %v1296_v11, %v1284_v3  ;;  %2554 = vmatpush3.bf16.msra.mxu1 %v2553_v54  ;;  %2524 = vmatprep.subr.bf16.mxu0 %v2523_v58  ;;  %v1338_v36 = vmax.f32 %v1305_v19, %v1337_v27  ;;  %v2529_v22 = vpack.c.bf16 %v1462_v30, %v1461_v15  ;;  %v1545_v16 = vld [vmem:[#allocation10 + $0x500] sm:$0xff]  ;;  %v1564_v15 = vld [vmem:[#allocation10 + $0x598] sm:$0xff] }
 0x1dd   : > { %v1343_v8 = vrot.slane %v1306_v28, 4  ;;  %2556 = vmatprep.subr.bf16.mxu1 %v2555_v37  ;;  %v1350_v42 = vmax.f32 %v1307_v12, %v1349_v14  ;;  %v2561_v54 = vpack.c.bf16 %v1494_v39, %v1493_v34  ;;  %v2531_v25 = vpack.c.bf16 %v1480_v41, %v1479_v40 }
 0x1de   : > { %v1355_v46 = vrot.slane %v1308_v7, 4  ;;  %v1339_v48 = vrot.slane %v1338_v36, 2  ;;  %v2563_v58 = vpack.c.bf16 %v1512_v47, %v1511_v0  ;;  %v2533_v31 = vpack.c.bf16 %v1464_v50, %v1463_v35  ;;  %v1547_v0 = vld [vmem:[#allocation10 + $0x510] sm:$0xff]  ;;  %v1548_v35 = vld [vmem:[#allocation10 + $0x518] sm:$0xff]  ;;  %v1533_v50 = vld [vmem:[#allocation10 + $0x4a0] sm:$0xff] }
 0x1df   : > { %v1344_v49 = vmax.f32 %v1306_v28, %v1343_v8  ;;  %2526 = vmatpush3.bf16.msra.mxu0 %v2525_v44  ;;  %v1351_v52 = vrot.slane %v1350_v42, 2  ;;  %v2565_v5 = vpack.c.bf16 %v1496_v55, %v1495_v51  ;;  %v2567_v9 = vpack.c.bf16 %v1530_v57, %v1529_v56  ;;  %v1534_v51 = vld [vmem:[#allocation10 + $0x4a8] sm:$0xff] }
 0x1e0   : > { %v1356_v53 = vmax.f32 %v1308_v7, %v1355_v46  ;;  %2558 = vmatpush3.bf16.msra.mxu1 %v2557_v29  ;;  %2528 = vmatprep.subr.bf16.mxu0 %v2527_v10  ;;  %v1340_v23 = vmax.f32 %v1338_v36, %v1339_v48  ;;  %v2599_v37 = vpack.c.bf16 %v1562_v60, %v1561_v59  ;;  %v1563_v10 = vld [vmem:[#allocation10 + $0x590] sm:$0xff]  ;;  %v1516_v46 = vld [vmem:[#allocation10 + $0x418] sm:$0xff]  ;;  %v1550_v60 = vld [vmem:[#allocation10 + $0x528] sm:$0xff] }
 0x1e1   : > { %2560 = vmatprep.subr.bf16.mxu1 %v2559_v38  ;;  %v1345_v26 = vrot.slane %v1344_v49, 2  ;;  %v1352_v61 = vmax.f32 %v1350_v42, %v1351_v52  ;;  %v2569_v24 = vpack.c.bf16 %v3550_v1, %v3548_v63  ;;  %v2601_v7 = vpack.c.bf16 %v1546_v17, %v1545_v16  ;;  %v1515_v42 = vld [vmem:[#allocation10 + $0x410] sm:$0xff]  ;;  %v1568_v1 = vld [vmem:[#allocation10 + $0x5b8] sm:$0xff] }
 0x1e2   : > { %v1357_v62 = vrot.slane %v1356_v53, 2  ;;  %v2900_v4 = vpop.eup %2899  ;;  %v1341_v11 = vrot.slane %v1340_v23, 1  ;;  %v2571_v8 = vpack.c.bf16 %v1532_v20, %v1531_v13  ;;  %v2573_v55 = vpack.c.bf16 %v1516_v46, %v1515_v42  ;;  %v1567_v63 = vld [vmem:[#allocation10 + $0x5b0] sm:$0xff]  ;;  %v1521_v20 = vld [vmem:[#allocation10 + $0x440] sm:$0xff] }
 0x1e3   : > { %2530 = vmatpush3.bf16.msra.mxu0 %v2529_v22  ;;  %v1346_v6 = vmax.f32 %v1344_v49, %v1345_v26  ;;  %v2902_v18 = vpop.eup %2901  ;;  %v1225_v19 = vadd.f32 2.0, %v2900_v4  ;;  %v1353_v21 = vrot.slane %v1352_v61, 1  ;;  %v2603_v22 = vpack.c.bf16 %v1564_v15, %v1563_v10  ;;  %v1549_v26 = vld [vmem:[#allocation10 + $0x520] sm:$0xff]  ;;  %v1551_v16 = vld [vmem:[#allocation10 + $0x530] sm:$0xff]  ;;  %v1540_v15 = vld [vmem:[#allocation10 + $0x4d8] sm:$0xff] }
 0x1e4   : > { %2562 = vmatpush3.bf16.msra.mxu1 %v2561_v54  ;;  %2532 = vmatprep.subr.bf16.mxu0 %v2531_v25  ;;  %v1358_v2 = vmax.f32 %v1356_v53, %v1357_v62  ;;  %v2904_v12 = vpop.eup %2903  ;;  %v1227_v3 = vadd.f32 2.0, %v2902_v18  ;;  %v1342_v41 = vmax.f32 %v1340_v23, %v1341_v11  ;;  %v1565_v53 = vld [vmem:[#allocation10 + $0x5a0] sm:$0xff]  ;;  %v1566_v54 = vld [vmem:[#allocation10 + $0x5a8] sm:$0xff]  ;;  %v2605_v56 = vpack.c.bf16 %v1548_v35, %v1547_v0  ;;  %v1536_v62 = vld [vmem:[#allocation10 + $0x4b8] sm:$0xff] }
 0x1e5   : > { %2564 = vmatprep.subr.bf16.mxu1 %v2563_v58  ;;  %v1347_v44 = vrot.slane %v1346_v6, 1  ;;  %v2906_v27 = vpop.eup %2905  ;;  %v3554_v28 = vmul.f32 %v2900_v4, %v1225_v19  ;;  %v1226_v29 = vadd.f32 2.0, %v2904_v12  ;;  %v1354_v49 = vmax.f32 %v1352_v61, %v1353_v21  ;;  %v1517_v23 = vld [vmem:[#allocation10 + $0x420] sm:$0xff]  ;;  %v1518_v58 = vld [vmem:[#allocation10 + $0x428] sm:$0xff]  ;;  %v1535_v61 = vld [vmem:[#allocation10 + $0x4b0] sm:$0xff] }
 0x1e6   : > { %v1359_v14 = vrot.slane %v1358_v2, 1  ;;  %v3556_v30 = vmul.f32 %v2902_v18, %v1227_v3  ;;  %v1228_v34 = vadd.f32 2.0, %v2906_v27  ;;  %v2575_v57 = vpack.c.bf16 %v1534_v51, %v1533_v50  ;;  %v1552_v18 = vld [vmem:[#allocation10 + $0x538] sm:$0xff]  ;;  %v1537_v19 = vld [vmem:[#allocation10 + $0x4c0] sm:$0xff]  ;;  %v1522_v21 = vld [vmem:[#allocation10 + $0x448] sm:$0xff] }
 0x1e7   : > { %2534 = vmatpush3.bf16.msra.mxu0 %v2533_v31  ;;  %v1348_v36 = vmax.f32 %v1346_v6, %v1347_v44  ;;  %v1249_v38 = vadd.f32 2.0, %v3554_v28  ;;  %v3559_v39 = vmul.f32 %v2904_v12, %v1226_v29  ;;  %v2607_v59 = vpack.c.bf16 %v1566_v54, %v1565_v53  ;;  %v1519_v6 = vld [vmem:[#allocation10 + $0x430] sm:$0xff]  ;;  %v1569_v11 = vld [vmem:[#allocation10 + $0x5c0] sm:$0xff] }
 0x1e8   : > { %2566 = vmatpush3.bf16.msra.mxu1 %v2565_v5  ;;  %v1360_v40 = vmax.f32 %v1358_v2, %v1359_v14  ;;  %2568 = vmatprep.subr.bf16.mxu0 %v2567_v9  ;;  %v1251_v47 = vadd.f32 2.0, %v3556_v30  ;;  %v3562_v48 = vmul.f32 %v2906_v27, %v1228_v34  ;;  %v2577_v4 = vpack.c.bf16 %v1518_v58, %v1517_v23  ;;  %v1520_v9 = vld [vmem:[#allocation10 + $0x438] sm:$0xff]  ;;  %v1538_v2 = vld [vmem:[#allocation10 + $0x4c8] sm:$0xff]  ;;  %v1539_v10 = vld [vmem:[#allocation10 + $0x4d0] sm:$0xff] }
 0x1e9   : > { %1781 = vmatprep.mubr.f32.mxu0 %v1348_v36  ;;  %2600 = vmatprep.subr.bf16.mxu1 %v2599_v37  ;;  %2907 = vrcp.f32 %v1249_v38  ;;  %v1250_v52 = vadd.f32 2.0, %v3559_v39  ;;  %v2609_v31 = vpack.c.bf16 %v1550_v60, %v1549_v26  ;;  %v2579_v5 = vpack.c.bf16 %v1536_v62, %v1535_v61  ;;  %v1570_v37 = vld [vmem:[#allocation10 + $0x5c8] sm:$0xff]  ;;  %v1297_v36 = vld [vmem:[#allocation8 + $0x40] sm:$0xff]  ;;  %v1571_v38 = vld [vmem:[#allocation10 + $0x5d0] sm:$0xff] }
 0x1ea   : > { %1851 = vmatprep.mubr.f32.mxu1 %v1360_v40  ;;  %1782 = vmatmul.mubr.f32.vlgmr.msra.gmra.mrb[14].mxu0 %v1342_v41  ;;  %2909 = vrcp.f32 %v1251_v47  ;;  %v1252_v25 = vadd.f32 2.0, %v3562_v48  ;;  %v2611_v17 = vpack.c.bf16 %v1568_v1, %v1567_v63  ;;  %v2581_v13 = vpack.c.bf16 %v1520_v9, %v1519_v6  ;;  %v1554_v27 = vld [vmem:[#allocation10 + $0x548] sm:$0xff]  ;;  %v1572_v40 = vld [vmem:[#allocation10 + $0x5d8] sm:$0xff]  ;;  %v1299_v46 = vld [vmem:[#allocation8 + $0x50] sm:$0xff] }
 0x1eb   : > { %1852 = vmatmul.mubr.f32.vlgmr.msra.gmra.mrb[14].mxu1 %v1354_v49  ;;  %2570 = vmatpush3.bf16.msra.mxu0 %v2569_v24  ;;  %2911 = vrcp.f32 %v1250_v52  ;;  %v2613_v3 = vpack.c.bf16 %v1552_v18, %v1551_v16  ;;  %v2583_v44 = vpack.c.bf16 %v1538_v2, %v1537_v19  ;;  %v1553_v24 = vld [vmem:[#allocation10 + $0x540] sm:$0xff]  ;;  %v1298_v47 = vld [vmem:[#allocation8 + $0x48] sm:$0xff]  ;;  %v1300_v49 = vld [vmem:[#allocation8 + $0x58] sm:$0xff] }
 0x1ec   : > { %2602 = vmatpush3.bf16.msra.mxu1 %v2601_v7  ;;  %2572 = vmatprep.subr.bf16.mxu0 %v2571_v8  ;;  %2913 = vrcp.f32 %v1252_v25  ;;  %v2615_v7 = vpack.c.bf16 %v1570_v37, %v1569_v11  ;;  %v1523_v51 = vld [vmem:[#allocation10 + $0x450] sm:$0xff]  ;;  %v1524_v52 = vld [vmem:[#allocation10 + $0x458] sm:$0xff]  ;;  %v1574_v58 = vld [vmem:[#allocation10 + $0x5e8] sm:$0xff] }
 0x1ed   : > { %2604 = vmatprep.subr.bf16.mxu1 %v2603_v22  ;;  %v2617_v22 = vpack.c.bf16 %v1554_v27, %v1553_v24  ;;  %v1555_v53 = vld [vmem:[#allocation10 + $0x550] sm:$0xff]  ;;  %v1556_v25 = vld [vmem:[#allocation10 + $0x558] sm:$0xff]  ;;  %v1525_v63 = vld [vmem:[#allocation10 + $0x460] sm:$0xff] }
 0x1ee   : > { %v2621_v62 = vpack.c.bf16 %v1556_v25, %v1555_v53  ;;  %v1526_v1 = vld [vmem:[#allocation10 + $0x468] sm:$0xff]  ;;  %v1543_v9 = vld [vmem:[#allocation10 + $0x4f0] sm:$0xff]  ;;  %v1544_v16 = vld [vmem:[#allocation10 + $0x4f8] sm:$0xff] }
 0x1ef   : > { %2574 = vmatpush3.bf16.msra.mxu0 %v2573_v55  ;;  %v1541_v55 = vld [vmem:[#allocation10 + $0x4e0] sm:$0xff]  ;;  %v1575_v19 = vld [vmem:[#allocation10 + $0x5f0] sm:$0xff]  ;;  %v1576_v2 = vld [vmem:[#allocation10 + $0x5f8] sm:$0xff] }
 0x1f0   : > { %2606 = vmatpush3.bf16.msra.mxu1 %v2605_v56  ;;  %2576 = vmatprep.subr.bf16.mxu0 %v2575_v57  ;;  %v1542_v56 = vld [vmem:[#allocation10 + $0x4e8] sm:$0xff]  ;;  %v1528_v24 = vld [vmem:[#allocation10 + $0x478] sm:$0xff] }
 0x1f1   : > { %2608 = vmatprep.subr.bf16.mxu1 %v2607_v59  ;;  %v2589_v59 = vpack.c.bf16 %v1524_v52, %v1523_v51 }
 0x1f3   : > { %2578 = vmatpush3.bf16.msra.mxu0 %v2577_v4  ;;  %v2908_v12 = vpop.eup %2907  ;;  %v1557_v4 = vld [vmem:[#allocation10 + $0x560] sm:$0xff] }
 0x1f4   : > { %2610 = vmatpush3.bf16.msra.mxu1 %v2609_v31  ;;  %2580 = vmatprep.subr.bf16.mxu0 %v2579_v5  ;;  %v2910_v29 = vpop.eup %2909  ;;  %v1273_v14 = vmul.f32 %v2908_v12, %v3554_v28  ;;  %v2585_v28 = vpack.c.bf16 %v1522_v21, %v1521_v20  ;;  %v1527_v21 = vld [vmem:[#allocation10 + $0x470] sm:$0xff] }
 0x1f5   : > { %2612 = vmatprep.subr.bf16.mxu1 %v2611_v17  ;;  %v2912_v34 = vpop.eup %2911  ;;  %v1275_v8 = vmul.f32 %v2910_v29, %v3556_v30  ;;  %v2587_v30 = vpack.c.bf16 %v1540_v15, %v1539_v10  ;;  %v2627_v29 = vpack.c.bf16 %v1576_v2, %v1575_v19 }
 0x1f6   : > { %v2914_v41 = vpop.eup %2913  ;;  %v1285_v42 = vmul.f32 %v1273_v14, %v3515_v32  ;;  %v1274_v0 = vmul.f32 %v2912_v34, %v3559_v39  ;;  %v2619_v39 = vpack.c.bf16 %v1572_v40, %v1571_v38  ;;  %v1559_v14 = vld [vmem:[#allocation10 + $0x570] sm:$0xff] }
 0x1f7   : > { %2582 = vmatpush3.bf16.msra.mxu0 %v2581_v13  ;;  %v1287_v35 = vmul.f32 %v1275_v8, %v3517_v33  ;;  %v1276_v50 = vmul.f32 %v2914_v41, %v3562_v48  ;;  %v1573_v33 = vld [vmem:[#allocation10 + $0x5e0] sm:$0xff]  ;;  %v2593_v13 = vpack.c.bf16 %v1526_v1, %v1525_v63 }
 0x1f8   : > { %2614 = vmatpush3.bf16.msra.mxu1 %v2613_v3  ;;  %2584 = vmatprep.subr.bf16.mxu0 %v2583_v44  ;;  %v1309_v54 = vadd.f32 %v1297_v36, %v1285_v42  ;;  %v1286_v32 = vmul.f32 %v1274_v0, %v3526_v43  ;;  %v2591_v43 = vpack.c.bf16 %v1542_v56, %v1541_v55 }
 0x1f9   : > { %2616 = vmatprep.subr.bf16.mxu1 %v2615_v7  ;;  %v1311_v57 = vadd.f32 %v1299_v46, %v1287_v35  ;;  %v1288_v23 = vmul.f32 %v1276_v50, %v3528_v45  ;;  %v2623_v6 = vpack.c.bf16 %v1574_v58, %v1573_v33  ;;  %v1558_v45 = vld [vmem:[#allocation10 + $0x568] sm:$0xff]  ;;  %v2595_v44 = vpack.c.bf16 %v1544_v16, %v1543_v9  ;;  %v1560_v7 = vld [vmem:[#allocation10 + $0x578] sm:$0xff] }
 0x1fa   : > { %v1361_v48 = vrot.slane %v1309_v54, 4  ;;  %v1310_v26 = vadd.f32 %v1298_v47, %v1286_v32  ;;  %v2625_v3 = vpack.c.bf16 %v1558_v45, %v1557_v4  ;;  %v2597_v36 = vpack.c.bf16 %v1528_v24, %v1527_v21 }
 0x1fb   : > { %2586 = vmatpush3.bf16.msra.mxu0 %v2585_v28  ;;  %v1373_v60 = vrot.slane %v1311_v57, 4  ;;  %v1312_v61 = vadd.f32 %v1300_v49, %v1288_v23  ;;  %v2629_v38 = vpack.c.bf16 %v1560_v7, %v1559_v14 }
 0x1fc   : > { %2618 = vmatpush3.bf16.msra.mxu1 %v2617_v22  ;;  %2588 = vmatprep.subr.bf16.mxu0 %v2587_v30  ;;  %v1362_v31 = vmax.f32 %v1309_v54, %v1361_v48  ;;  %v1367_v5 = vrot.slane %v1310_v26, 4 }
 0x1fd   : > { %2620 = vmatprep.subr.bf16.mxu1 %v2619_v39  ;;  %v1374_v17 = vmax.f32 %v1311_v57, %v1373_v60  ;;  %v1379_v18 = vrot.slane %v1312_v61, 4 }
 0x1fe   : > { %v1363_v11 = vrot.slane %v1362_v31, 2  ;;  %v1368_v37 = vmax.f32 %v1310_v26, %v1367_v5 }
 0x1ff   : > { %2590 = vmatpush3.bf16.msra.mxu0 %v2589_v59  ;;  %v1375_v20 = vrot.slane %v1374_v17, 2  ;;  %v1380_v12 = vmax.f32 %v1312_v61, %v1379_v18 }
 0x200   : > { %2622 = vmatpush3.bf16.msra.mxu1 %v2621_v62  ;;  %2592 = vmatprep.subr.bf16.mxu0 %v2591_v43  ;;  %v1364_v27 = vmax.f32 %v1362_v31, %v1363_v11  ;;  %v1369_v10 = vrot.slane %v1368_v37, 2 }
 0x201   : > { %2624 = vmatprep.subr.bf16.mxu1 %v2623_v6  ;;  %v1376_v15 = vmax.f32 %v1374_v17, %v1375_v20  ;;  %v1381_v34 = vrot.slane %v1380_v12, 2 }
 0x202   : > { %v1370_v8 = vmax.f32 %v1368_v37, %v1369_v10  ;;  %v1365_v41 = vrot.slane %v1364_v27, 1 }
 0x203   : > { %2594 = vmatpush3.bf16.msra.mxu0 %v2593_v13  ;;  %v1382_v40 = vmax.f32 %v1380_v12, %v1381_v34  ;;  %v1377_v46 = vrot.slane %v1376_v15, 1 }
 0x204   : > { %2626 = vmatpush3.bf16.msra.mxu1 %v2625_v3  ;;  %2596 = vmatprep.subr.bf16.mxu0 %v2595_v44  ;;  %v1371_v42 = vrot.slane %v1370_v8, 1  ;;  %v1366_v28 = vmax.f32 %v1364_v27, %v1365_v41 }
 0x205   : > { %2628 = vmatprep.subr.bf16.mxu1 %v2627_v29  ;;  %v1383_v0 = vrot.slane %v1382_v40, 1  ;;  %v1378_v22 = vmax.f32 %v1376_v15, %v1377_v46 }
 0x206   : > { %v1372_v47 = vmax.f32 %v1370_v8, %v1371_v42 }
 0x207   : > { %2598 = vmatpush3.bf16.msra.mxu0 %v2597_v36  ;;  %v1384_v49 = vmax.f32 %v1382_v40, %v1383_v0 }
 0x208   : > { %2630 = vmatpush3.bf16.msra.mxu1 %v2629_v38  ;;  %1921 = vmatprep.mubr.f32.mxu0 %v1372_v47 }
 0x209   : > { %1991 = vmatprep.mubr.f32.mxu1 %v1384_v49 }
 0x20a   : > { %1922 = vmatmul.mubr.f32.vlgmr.msra.gmra.mrb[16].mxu0 %v1366_v28 }
 0x20b   : > { %1992 = vmatmul.mubr.f32.vlgmr.msra.gmra.mrb[16].mxu1 %v1378_v22 }
 0x29d   : > { %v2261_v35 = vpop.f32.mrb[12].mxu0 }
 0x29e   : > { %v2296_v50 = vpop.f32.mrb[12].mxu1  ;;  %v2262_v30 = vpop.f32.mrb[13].mxu0 }
 0x29f   : > { %v2263_v51 = vadd.f32 %v2262_v30, %v2261_v35  ;;  %v2297_v52 = vpop.f32.mrb[13].mxu1 }
 0x2a0   : > { %v2298_v53 = vadd.f32 %v2297_v52, %v2296_v50 }
 0x2a2   : > { %v1714_v54 = vadd.f32 %v2298_v53, %v2263_v51 }
 0x2bd   : > { %v2331_v32 = vpop.f32.mrb[14].mxu0 }
 0x2be   : > { %v2366_v39 = vpop.f32.mrb[14].mxu1  ;;  %v2332_v25 = vpop.f32.mrb[15].mxu0 }
 0x2bf   : > { %v2333_v55 = vadd.f32 %v2332_v25, %v2331_v32  ;;  %v2367_v56 = vpop.f32.mrb[15].mxu1 }
 0x2c0   : > { %v2368_v57 = vadd.f32 %v2367_v56, %v2366_v39 }
 0x2c1   : > { %v1784_v23 = vadd.f32 %v2333_v55, %v1714_v54 }
 0x2c3   : > { %v1854_v33 = vadd.f32 %v2368_v57, %v1784_v23 }
 0x2dd   : > { %v2401_v58 = vpop.f32.mrb[16].mxu0 }
 0x2de   : > { %v2436_v48 = vpop.f32.mrb[16].mxu1  ;;  %v2402_v26 = vpop.f32.mrb[17].mxu0 }
 0x2df   : > { %v2403_v59 = vadd.f32 %v2402_v26, %v2401_v58  ;;  %v2437_v60 = vpop.f32.mrb[17].mxu1 }
 0x2e0   : > { %v2438_v61 = vadd.f32 %v2437_v60, %v2436_v48 }
 0x2e1   : > { %v1924_v62 = vadd.f32 %v2403_v59, %v1854_v33 }
 0x2e3   : > { %v1994_v43 = vadd.f32 %v2438_v61, %v1924_v62 }
 0x2e5   : > { %1997 = vst [vmem:[%s292_s9] sm:$0x1] %v1994_v43 }
 0x2e6   : > { %3070 = shalt.err (!%p3067_p0)
}
 0x2e7   : > { %s3071_s16 = scalar_lea.hbm %s3579_s26, 16  ;;  %s3075_s6 = scalar_lea.hbm %s3628_s5, 32 }
 0x2e8   : > { %p3072_p2 = scmp.ne.s32.totalorder %s3579_s26, %s3071_s16  ;;  %p3076_p10 = scmp.lt.u32.totalorder %s3579_s26, %s3628_s5 }
 0x2e9   : > { %p3077_p11 = scmp.lt.u32.totalorder %s3075_s6, %s3071_s16  ;;  %p3079_p6 = scmp.lt.u32.totalorder %s3071_s16, %s3579_s26 }
 0x2ea   : > { %p3073_p8 = pnand %p3072_p2, %p3646_p5 }
 0x2eb   : > { %p3078_p1 = por %p3077_p11, %p3076_p10 }
 0x2ec   : > { %p3074_p4 = pneg %p3073_p8 }
 0x2ed   : > { %p3080_p7 = por %p3079_p6, %p3078_p1 }
 0x2ef   : > { %p3081_p9 = pnand %p3080_p7, %p3074_p4 }
 0x2f1   : > { %3084 = shalt.err (!%p3081_p9)
}
 0x2f2   : > { %2649 = dma.vmem_to_hbm [thread:$0]  (%p3646_p5), %s3581_s30, 16, %s3579_s26, %s1999_s28  }
 0x2f3 PF: > { %s2023_s25 = sand.u32 1, %s3119_s18   ;;  %p3647_p12 = scmp.ne.s32.totalorder %s3639_s12, 0 }
 0x2f4   : > { %p3648_p3 = scmp.ge.s32.totalorder %s3131_s21, 2  ;;  %s2024_s9 = scalar_lea.sflag [#allocation4], %s2023_s25 }
 0x2f6   : > { %p2669_p13 = pnand %p3648_p3, %p3647_p12 }
 0x2f8   : > { %3114 = dma.done.wait (!%p2669_p13), %s2024_s9, 16  }
 0x2f9   : > { %3116 = vsyncadd (!%p2669_p13), %s2024_s9, 4294967280  ;;  %p20_p0 = scmp.ge.s32.totalorder %s3314_s27, 4   ;;  %s3649_s18 = smov %s3123_s19 }
 0x2fa   : > { %s3650_s19 = smov %s3127_s20  ;;  %s3651_s20 = smov %s3325_s8 }
 0x2fb   : > { %s3652_s21 = smov %s3314_s27  ;;  %22 = sbr.rel (!%p20_p0) target bundleno = 7 (0x7), region = 101 }
 0x302   :  { %2028 = vsyncpa [#allocation3], 1 }
 0x303   :  { %2030 = vsyncpa [#allocation3 + $0x1], 1 }
 0x304   :  { %2031 = vsyncpa [#allocation6], 1 }
 0x305   :  { %2032 = vsyncpa [#allocation9], 1 }
 0x306   :  { %2033 = vsyncpa [#allocation4], 1 }
 0x307   :  { %2035 = vsyncpa [#allocation4 + $0x1], 1 }

</bundles_post_ra>
